<compile_context>
chip_gen: v6e
topology: v6e:2x2x1
jax: 0.10.0
libtpu: 0.0.40
codegen_flags: <defaults>
</compile_context>

<pallas_src>
import functools

import jax
import jax.numpy as jnp
from jax.experimental import pallas as pl
from jax.experimental.pallas import tpu as pltpu


# -----------------------------------------------------------------------------
# helpers
# -----------------------------------------------------------------------------
def _round_up(x, m):
    return ((x + m - 1) // m) * m


def _pick_tm(M, K):
    # Keep the bf16 A tile <= ~2 MiB so 2x-buffered tiles fit every generation
    # (incl. v7x 64 MiB VMEM / 32 MiB default scoped budget) with huge headroom.
    cap = max(8, ((2 * 1024 * 1024) // (2 * max(K, 1))) // 8 * 8)
    return max(8, min(1024, cap, _round_up(M, 8)))


# -----------------------------------------------------------------------------
# Pallas kernel: fused (im2col-matmul) conv + folded BN + optional residual + ReLU
# -----------------------------------------------------------------------------
def _fused_matmul_kernel(a_ref, w_ref, scale_ref, shift_ref, *rest, do_relu, has_res):
    if has_res:
        res_ref, o_ref = rest
    else:
        (o_ref,) = rest
    # bf16 x bf16 -> f32 accumulate on the MXU.
    acc = jnp.dot(a_ref[...], w_ref[...], preferred_element_type=jnp.float32)
    out = acc * scale_ref[...] + shift_ref[...]          # f32 epilogue (v5e-safe)
    if has_res:
        out = out + res_ref[...].astype(jnp.float32)     # fused residual add
    if do_relu:
        out = jnp.maximum(out, 0.0)
    o_ref[...] = out.astype(o_ref.dtype)


def fused_matmul(a, w, scale, shift, residual=None, do_relu=True,
                 out_dtype=jnp.bfloat16):
    """out = [relu]((a @ w) * scale + shift [+ residual]).

    a:(M,K)  w:(K,N)  scale,shift:(N,)  residual:(M,N) or None.
    Grid tiles only M; K and N are single full-extent (weight-stationary) blocks
    since they are tiny (<=432 / <=48) in this model.
    """
    M, K = a.shape
    K2, N = w.shape
    assert K == K2
    tm = _pick_tm(M, K)

    a = a.astype(jnp.bfloat16)
    w = w.astype(jnp.bfloat16)
    scale2 = scale.reshape(1, N).astype(jnp.float32)
    shift2 = shift.reshape(1, N).astype(jnp.float32)

    in_specs = [
        pl.BlockSpec((tm, K), lambda i: (i, 0)),   # A row tile (pipelined over M)
        pl.BlockSpec((K, N), lambda i: (0, 0)),    # weight, resident
        pl.BlockSpec((1, N), lambda i: (0, 0)),    # BN scale
        pl.BlockSpec((1, N), lambda i: (0, 0)),    # BN shift (+bias)
    ]
    args = [a, w, scale2, shift2]
    has_res = residual is not None
    if has_res:
        in_specs.append(pl.BlockSpec((tm, N), lambda i: (i, 0)))
        args.append(residual.reshape(M, N).astype(jnp.bfloat16))

    return pl.pallas_call(
        functools.partial(_fused_matmul_kernel, do_relu=do_relu, has_res=has_res),
        out_shape=jax.ShapeDtypeStruct((M, N), out_dtype),
        grid=(pl.cdiv(M, tm),),
        in_specs=in_specs,
        out_specs=pl.BlockSpec((tm, N), lambda i: (i, 0)),
        compiler_params=pltpu.CompilerParams(dimension_semantics=("parallel",)),
    )(*args)


# -----------------------------------------------------------------------------
# Conv glue: NHWC im2col + call into the fused Pallas matmul
# -----------------------------------------------------------------------------
def _im2col_nhwc(x, kh, kw, stride, padding, dilation=1):
    # x: (N, H, W, C)  ->  (N*Ho*Wo, kh*kw*C), patch index = (i*kw+j)*C + c
    N, H, W, C = x.shape
    xp = jnp.pad(x, ((0, 0), (padding, padding), (padding, padding), (0, 0)))
    Ho = (H + 2 * padding - dilation * (kh - 1) - 1) // stride + 1
    Wo = (W + 2 * padding - dilation * (kw - 1) - 1) // stride + 1
    cols = []
    for i in range(kh):
        for j in range(kw):
            sl = xp[:,
                    i * dilation: i * dilation + (Ho - 1) * stride + 1: stride,
                    j * dilation: j * dilation + (Wo - 1) * stride + 1: stride,
                    :]
            cols.append(sl)                              # (N, Ho, Wo, C)
    patches = cols[0] if len(cols) == 1 else jnp.concatenate(cols, axis=-1)
    return patches.reshape(N * Ho * Wo, kh * kw * C), (N, Ho, Wo)


def conv2d_bn_act(x, params, stride=1, padding=0, dilation=1, relu=True,
                  residual=None, out_dtype=jnp.bfloat16):
    w = params["w"]                                      # (Cout, Cin, kh, kw)
    cout, cin, kh, kw = w.shape
    cols, (N, Ho, Wo) = _im2col_nhwc(x, kh, kw, stride, padding, dilation)
    # weight layout matching the (i, j, cin) patch order
    w2 = jnp.transpose(w, (2, 3, 1, 0)).reshape(kh * kw * cin, cout)
    res = None if residual is None else residual.reshape(N * Ho * Wo, cout)
    y = fused_matmul(cols, w2, params["scale"], params["shift"],
                     residual=res, do_relu=relu, out_dtype=out_dtype)
    return y.reshape(N, Ho, Wo, cout)                    # stay in NHWC


# -----------------------------------------------------------------------------
# Bilinear upsample (align_corners=True) as two small Pallas kernels
# -----------------------------------------------------------------------------
def _bilinear_matrix(out_size, in_size):
    if out_size == 1:
        return jax.nn.one_hot(jnp.zeros((1,), jnp.int32), in_size, dtype=jnp.float32)
    pos = jnp.arange(out_size, dtype=jnp.float32) * (in_size - 1) / (out_size - 1)
    lo = jnp.clip(jnp.floor(pos).astype(jnp.int32), 0, in_size - 1)
    hi = jnp.minimum(lo + 1, in_size - 1)
    frac = pos - lo.astype(jnp.float32)
    return (jax.nn.one_hot(lo, in_size, dtype=jnp.float32) * (1.0 - frac)[:, None]
            + jax.nn.one_hot(hi, in_size, dtype=jnp.float32) * frac[:, None])


def _upsample_rows_kernel(lh_ref, x_ref, o_ref):
    # lh: (OH, H)   x: (1, H, W*C)   o: (1, OH, W*C)
    o_ref[0] = jnp.dot(lh_ref[...], x_ref[0],
                       preferred_element_type=jnp.float32).astype(o_ref.dtype)


def _upsample_cols_kernel(lw_ref, y_ref, o_ref, *, th):
    # lw: (OW, W)   y: (1, th, W, C)   o: (1, th, OW, C)
    lw = lw_ref[...]
    for t in range(th):  # small static unroll; rows are independent
        o_ref[0, t] = jnp.dot(lw, y_ref[0, t],
                              preferred_element_type=jnp.float32).astype(o_ref.dtype)


def bilinear_upsample(x, out_h, out_w, out_dtype=jnp.bfloat16):
    # F.interpolate(x, size=(out_h, out_w), mode='bilinear', align_corners=True), NHWC
    N, H, W, C = x.shape
    lh = _bilinear_matrix(out_h, H).astype(x.dtype)
    lw = _bilinear_matrix(out_w, W).astype(x.dtype)

    # pass 1: interpolate rows.  (N, H, W*C) -> (N, OH, W*C)
    xr = x.reshape(N, H, W * C)
    y = pl.pallas_call(
        _upsample_rows_kernel,
        out_shape=jax.ShapeDtypeStruct((N, out_h, W * C), x.dtype),
        grid=(N,),
        in_specs=[pl.BlockSpec((out_h, H), lambda n: (0, 0)),
                  pl.BlockSpec((1, H, W * C), lambda n: (n, 0, 0))],
        out_specs=pl.BlockSpec((1, out_h, W * C), lambda n: (n, 0, 0)),
        compiler_params=pltpu.CompilerParams(dimension_semantics=("parallel",)),
    )(lh, xr)
    y = y.reshape(N, out_h, W, C)

    # pass 2: interpolate columns per output-row tile.  (N, OH, W, C) -> (N, OH, OW, C)
    th = min(8, out_h)
    out = pl.pallas_call(
        functools.partial(_upsample_cols_kernel, th=th),
        out_shape=jax.ShapeDtypeStruct((N, out_h, out_w, C), out_dtype),
        grid=(N, pl.cdiv(out_h, th)),
        in_specs=[pl.BlockSpec((out_w, W), lambda n, r: (0, 0)),
                  pl.BlockSpec((1, th, W, C), lambda n, r: (n, r, 0, 0))],
        out_specs=pl.BlockSpec((1, th, out_w, C), lambda n, r: (n, r, 0, 0)),
        compiler_params=pltpu.CompilerParams(
            dimension_semantics=("parallel", "parallel")),
    )(lw, y)
    return out


# -----------------------------------------------------------------------------
# Parameter construction (deterministic, synthetic)
# -----------------------------------------------------------------------------
def make_conv(key, cin, cout, k, use_bn=True, bias=False):
    kw_key, b_key = jax.random.split(key)
    fan_in = cin * k * k
    w = jax.random.normal(kw_key, (cout, cin, k, k), jnp.float32) * (2.0 / fan_in) ** 0.5
    b = (jax.random.normal(b_key, (cout,), jnp.float32) * 0.01) if bias else jnp.zeros((cout,))
    if use_bn:
        gamma = jnp.ones((cout,)); beta = jnp.zeros((cout,))
        mean = jnp.zeros((cout,)); var = jnp.ones((cout,)); eps = 1e-5
        scale = gamma / jnp.sqrt(var + eps)
        shift = beta - mean * scale + b * scale
    else:
        scale = jnp.ones((cout,)); shift = b
    return {"w": w, "scale": scale, "shift": shift}


def build_deeplab_params(key, num_classes=21):
    keys = jax.random.split(key, 16)
    p = {}
    # --- backbone (simplified ResNet-style, output_stride = 16) ---
    p["bb_conv1"] = make_conv(keys[0], 3, 8, 3)     # stride 2
    p["bb_conv2"] = make_conv(keys[1], 8, 16, 3)    # stride 4  -> low_level_feat
    p["bb_conv3"] = make_conv(keys[2], 16, 24, 3)   # stride 8  -> feature_map
    p["bb_conv4"] = make_conv(keys[3], 24, 32, 3)   # stride 16 -> x
    # --- stack_resudial (2 residual 3x3 conv blocks; deform conv -> plain conv) ---
    p["res1_a"] = make_conv(keys[4], 32, 32, 3)
    p["res1_b"] = make_conv(keys[5], 32, 32, 3)
    p["res2_a"] = make_conv(keys[6], 32, 32, 3)
    p["res2_b"] = make_conv(keys[7], 32, 32, 3)
    # --- decoder ---
    p["dec_low"] = make_conv(keys[8], 16, 16, 1)            # 1x1 on low-level feats
    p["dec_c1"] = make_conv(keys[9], 32 + 16, 32, 3)
    p["dec_c2"] = make_conv(keys[10], 32, 32, 3)
    p["dec_cls"] = make_conv(keys[11], 32, num_classes, 1, use_bn=False, bias=True)
    return p


# -----------------------------------------------------------------------------
# Forward pass (mirrors DeepLab.forward), NHWC + bf16 internally
# -----------------------------------------------------------------------------
def deeplab_forward(params, inp):
    N, C, H, W = inp.shape
    x = jnp.transpose(inp, (0, 2, 3, 1)).astype(jnp.bfloat16)   # NCHW -> NHWC once

    # backbone(input) -> x, feature_map, low_level_feat
    h = conv2d_bn_act(x, params["bb_conv1"], stride=2, padding=1)
    low_level_feat = conv2d_bn_act(h, params["bb_conv2"], stride=2, padding=1)
    feature_map = conv2d_bn_act(low_level_feat, params["bb_conv3"], stride=2, padding=1)
    x = conv2d_bn_act(feature_map, params["bb_conv4"], stride=2, padding=1)
    del feature_map  # returned by backbone but unused in DeepLab.forward

    # stack_resudial(x): relu(conv_bn(relu(conv_bn(x))) + x), residual fused in-kernel
    for blk_a, blk_b in (("res1_a", "res1_b"), ("res2_a", "res2_b")):
        y = conv2d_bn_act(x, params[blk_a], stride=1, padding=1, relu=True)
        x = conv2d_bn_act(y, params[blk_b], stride=1, padding=1, relu=True, residual=x)

    # decoder(x, low_level_feat)
    low = conv2d_bn_act(low_level_feat, params["dec_low"], stride=1, padding=0)
    x = bilinear_upsample(x, low.shape[1], low.shape[2], out_dtype=jnp.bfloat16)
    x = jnp.concatenate([x, low], axis=-1)
    x = conv2d_bn_act(x, params["dec_c1"], stride=1, padding=1)
    x = conv2d_bn_act(x, params["dec_c2"], stride=1, padding=1)
    x = conv2d_bn_act(x, params["dec_cls"], stride=1, padding=0, relu=False,
                      out_dtype=jnp.float32)

    # F.interpolate(x, size=input.size()[2:], mode='bilinear', align_corners=True)
    x = bilinear_upsample(x, H, W, out_dtype=jnp.float32)
    return jnp.transpose(x, (0, 3, 1, 2))                       # NHWC -> NCHW once


# -----------------------------------------------------------------------------
if __name__ == "__main__":
    key = jax.random.PRNGKey(0)
    pkey, xkey = jax.random.split(key)

    num_classes = 21
    params = build_deeplab_params(pkey, num_classes=num_classes)

    # input: NCHW, small but stride-16 compatible
    inp = jax.random.normal(xkey, (2, 3, 32, 32), jnp.float32)

    out = jax.jit(deeplab_forward)(params, inp)
    out = jax.block_until_ready(out)

    assert out.shape == (2, num_classes, 32, 32), out.shape
    assert jnp.all(jnp.isfinite(out))
    print("KERNEL_OK")
</pallas_src>

<mosaic_0001>
module attributes {stable_mosaic.version = 11 : i64} {
  func.func @_fused_matmul_kernel(%arg0: i32, %arg1: memref<512x27xbf16, #tpu.memory_space<vmem>>, %arg2: memref<27x8xbf16, #tpu.memory_space<vmem>>, %arg3: memref<1x8xf32, #tpu.memory_space<vmem>>, %arg4: memref<1x8xf32, #tpu.memory_space<vmem>>, %arg5: memref<512x8xbf16, #tpu.memory_space<vmem>>) attributes {dimension_semantics = [#tpu.dimension_semantics<parallel>], iteration_bounds = array<i64: 1>, scalar_prefetch = 0 : i64, scratch_operands = 0 : i64, tpu.core_type = #tpu.core_type<tc>, window_params = [{transform_indices = @transform_0, window_bounds = array<i64: 512, 27>}, {pipeline_mode = #tpu.pipeline_mode<synchronous>, transform_indices = @transform_1, window_bounds = array<i64: 27, 8>}, {pipeline_mode = #tpu.pipeline_mode<synchronous>, transform_indices = @transform_2, window_bounds = array<i64: 1, 8>}, {pipeline_mode = #tpu.pipeline_mode<synchronous>, transform_indices = @transform_3, window_bounds = array<i64: 1, 8>}, {transform_indices = @transform_4, window_bounds = array<i64: 512, 8>}]} {
    %c0 = arith.constant 0 : index
    %c0_0 = arith.constant 0 : index
    %0 = vector.load %arg1[%c0, %c0_0] : memref<512x27xbf16, #tpu.memory_space<vmem>>, vector<512x27xbf16>
    %c0_1 = arith.constant 0 : index
    %c0_2 = arith.constant 0 : index
    %1 = vector.load %arg2[%c0_1, %c0_2] : memref<27x8xbf16, #tpu.memory_space<vmem>>, vector<27x8xbf16>
    %cst = arith.constant dense<0.000000e+00> : vector<512x8xf32>
    %2 = tpu.matmul %0, %1, %cst {dimension_numbers = #tpu.dot_dimension_numbers<[1], [0], [0], [1], [0, 0, 1, 1], [], []>} : vector<512x27xbf16>, vector<27x8xbf16>, vector<512x8xf32> -> vector<512x8xf32>
    %c0_3 = arith.constant 0 : index
    %c0_4 = arith.constant 0 : index
    %3 = vector.load %arg3[%c0_3, %c0_4] : memref<1x8xf32, #tpu.memory_space<vmem>>, vector<1x8xf32>
    %4 = vector.broadcast %3 : vector<1x8xf32> to vector<512x8xf32>
    %5 = arith.mulf %2, %4 : vector<512x8xf32>
    %c0_5 = arith.constant 0 : index
    %c0_6 = arith.constant 0 : index
    %6 = vector.load %arg4[%c0_5, %c0_6] : memref<1x8xf32, #tpu.memory_space<vmem>>, vector<1x8xf32>
    %7 = vector.broadcast %6 : vector<1x8xf32> to vector<512x8xf32>
    %8 = arith.addf %5, %7 : vector<512x8xf32>
    %cst_7 = arith.constant 0.000000e+00 : f32
    %9 = vector.broadcast %cst_7 : f32 to vector<512x8xf32>
    %10 = arith.maximumf %8, %9 : vector<512x8xf32>
    %11 = arith.truncf %10 : vector<512x8xf32> to vector<512x8xbf16>
    %c0_8 = arith.constant 0 : index
    %c0_9 = arith.constant 0 : index
    %12 = vector.load %arg5[%c0_8, %c0_9] : memref<512x8xbf16, #tpu.memory_space<vmem>>, vector<512x8xbf16>
    tpu.vector_store %arg5[%c0_8, %c0_9], %11 {strides = array<i32>} : memref<512x8xbf16, #tpu.memory_space<vmem>>, vector<512x8xbf16>,
    return
  }
  func.func @transform_0(%arg0: i32) -> (i32, i32) {
    %c0_i32 = arith.constant 0 : i32
    %c0_i32_0 = arith.constant 0 : i32
    return %arg0, %c0_i32 : i32, i32
  }
  func.func @transform_1(%arg0: i32) -> (i32, i32) {
    %c0_i32 = arith.constant 0 : i32
    %c0_i32_0 = arith.constant 0 : i32
    %c0_i32_1 = arith.constant 0 : i32
    return %c0_i32, %c0_i32_0 : i32, i32
  }
  func.func @transform_2(%arg0: i32) -> (i32, i32) {
    %c0_i32 = arith.constant 0 : i32
    %c0_i32_0 = arith.constant 0 : i32
    %c0_i32_1 = arith.constant 0 : i32
    return %c0_i32, %c0_i32_0 : i32, i32
  }
  func.func @transform_3(%arg0: i32) -> (i32, i32) {
    %c0_i32 = arith.constant 0 : i32
    %c0_i32_0 = arith.constant 0 : i32
    %c0_i32_1 = arith.constant 0 : i32
    return %c0_i32, %c0_i32_0 : i32, i32
  }
  func.func @transform_4(%arg0: i32) -> (i32, i32) {
    %c0_i32 = arith.constant 0 : i32
    %c0_i32_0 = arith.constant 0 : i32
    return %arg0, %c0_i32 : i32, i32
  }
}

module attributes {stable_mosaic.version = 11 : i64} {
  func.func @_fused_matmul_kernel(%arg0: i32, %arg1: memref<128x72xbf16, #tpu.memory_space<vmem>>, %arg2: memref<72x16xbf16, #tpu.memory_space<vmem>>, %arg3: memref<1x16xf32, #tpu.memory_space<vmem>>, %arg4: memref<1x16xf32, #tpu.memory_space<vmem>>, %arg5: memref<128x16xbf16, #tpu.memory_space<vmem>>) attributes {dimension_semantics = [#tpu.dimension_semantics<parallel>], iteration_bounds = array<i64: 1>, scalar_prefetch = 0 : i64, scratch_operands = 0 : i64, tpu.core_type = #tpu.core_type<tc>, window_params = [{transform_indices = @transform_0, window_bounds = array<i64: 128, 72>}, {pipeline_mode = #tpu.pipeline_mode<synchronous>, transform_indices = @transform_1, window_bounds = array<i64: 72, 16>}, {pipeline_mode = #tpu.pipeline_mode<synchronous>, transform_indices = @transform_2, window_bounds = array<i64: 1, 16>}, {pipeline_mode = #tpu.pipeline_mode<synchronous>, transform_indices = @transform_3, window_bounds = array<i64: 1, 16>}, {transform_indices = @transform_4, window_bounds = array<i64: 128, 16>}]} {
    %c0 = arith.constant 0 : index
    %c0_0 = arith.constant 0 : index
    %0 = vector.load %arg1[%c0, %c0_0] : memref<128x72xbf16, #tpu.memory_space<vmem>>, vector<128x72xbf16>
    %c0_1 = arith.constant 0 : index
    %c0_2 = arith.constant 0 : index
    %1 = vector.load %arg2[%c0_1, %c0_2] : memref<72x16xbf16, #tpu.memory_space<vmem>>, vector<72x16xbf16>
    %cst = arith.constant dense<0.000000e+00> : vector<128x16xf32>
    %2 = tpu.matmul %0, %1, %cst {dimension_numbers = #tpu.dot_dimension_numbers<[1], [0], [0], [1], [0, 0, 1, 1], [], []>} : vector<128x72xbf16>, vector<72x16xbf16>, vector<128x16xf32> -> vector<128x16xf32>
    %c0_3 = arith.constant 0 : index
    %c0_4 = arith.constant 0 : index
    %3 = vector.load %arg3[%c0_3, %c0_4] : memref<1x16xf32, #tpu.memory_space<vmem>>, vector<1x16xf32>
    %4 = vector.broadcast %3 : vector<1x16xf32> to vector<128x16xf32>
    %5 = arith.mulf %2, %4 : vector<128x16xf32>
    %c0_5 = arith.constant 0 : index
    %c0_6 = arith.constant 0 : index
    %6 = vector.load %arg4[%c0_5, %c0_6] : memref<1x16xf32, #tpu.memory_space<vmem>>, vector<1x16xf32>
    %7 = vector.broadcast %6 : vector<1x16xf32> to vector<128x16xf32>
    %8 = arith.addf %5, %7 : vector<128x16xf32>
    %cst_7 = arith.constant 0.000000e+00 : f32
    %9 = vector.broadcast %cst_7 : f32 to vector<128x16xf32>
    %10 = arith.maximumf %8, %9 : vector<128x16xf32>
    %11 = arith.truncf %10 : vector<128x16xf32> to vector<128x16xbf16>
    %c0_8 = arith.constant 0 : index
    %c0_9 = arith.constant 0 : index
    %12 = vector.load %arg5[%c0_8, %c0_9] : memref<128x16xbf16, #tpu.memory_space<vmem>>, vector<128x16xbf16>
    tpu.vector_store %arg5[%c0_8, %c0_9], %11 {strides = array<i32>} : memref<128x16xbf16, #tpu.memory_space<vmem>>, vector<128x16xbf16>,
    return
  }
  func.func @transform_0(%arg0: i32) -> (i32, i32) {
    %c0_i32 = arith.constant 0 : i32
    %c0_i32_0 = arith.constant 0 : i32
    return %arg0, %c0_i32 : i32, i32
  }
  func.func @transform_1(%arg0: i32) -> (i32, i32) {
    %c0_i32 = arith.constant 0 : i32
    %c0_i32_0 = arith.constant 0 : i32
    %c0_i32_1 = arith.constant 0 : i32
    return %c0_i32, %c0_i32_0 : i32, i32
  }
  func.func @transform_2(%arg0: i32) -> (i32, i32) {
    %c0_i32 = arith.constant 0 : i32
    %c0_i32_0 = arith.constant 0 : i32
    %c0_i32_1 = arith.constant 0 : i32
    return %c0_i32, %c0_i32_0 : i32, i32
  }
  func.func @transform_3(%arg0: i32) -> (i32, i32) {
    %c0_i32 = arith.constant 0 : i32
    %c0_i32_0 = arith.constant 0 : i32
    %c0_i32_1 = arith.constant 0 : i32
    return %c0_i32, %c0_i32_0 : i32, i32
  }
  func.func @transform_4(%arg0: i32) -> (i32, i32) {
    %c0_i32 = arith.constant 0 : i32
    %c0_i32_0 = arith.constant 0 : i32
    return %arg0, %c0_i32 : i32, i32
  }
}

module attributes {stable_mosaic.version = 11 : i64} {
  func.func @_fused_matmul_kernel(%arg0: i32, %arg1: memref<128x16xbf16, #tpu.memory_space<vmem>>, %arg2: memref<16x16xbf16, #tpu.memory_space<vmem>>, %arg3: memref<1x16xf32, #tpu.memory_space<vmem>>, %arg4: memref<1x16xf32, #tpu.memory_space<vmem>>, %arg5: memref<128x16xbf16, #tpu.memory_space<vmem>>) attributes {dimension_semantics = [#tpu.dimension_semantics<parallel>], iteration_bounds = array<i64: 1>, scalar_prefetch = 0 : i64, scratch_operands = 0 : i64, tpu.core_type = #tpu.core_type<tc>, window_params = [{transform_indices = @transform_0, window_bounds = array<i64: 128, 16>}, {pipeline_mode = #tpu.pipeline_mode<synchronous>, transform_indices = @transform_1, window_bounds = array<i64: 16, 16>}, {pipeline_mode = #tpu.pipeline_mode<synchronous>, transform_indices = @transform_2, window_bounds = array<i64: 1, 16>}, {pipeline_mode = #tpu.pipeline_mode<synchronous>, transform_indices = @transform_3, window_bounds = array<i64: 1, 16>}, {transform_indices = @transform_4, window_bounds = array<i64: 128, 16>}]} {
    %c0 = arith.constant 0 : index
    %c0_0 = arith.constant 0 : index
    %0 = vector.load %arg1[%c0, %c0_0] : memref<128x16xbf16, #tpu.memory_space<vmem>>, vector<128x16xbf16>
    %c0_1 = arith.constant 0 : index
    %c0_2 = arith.constant 0 : index
    %1 = vector.load %arg2[%c0_1, %c0_2] : memref<16x16xbf16, #tpu.memory_space<vmem>>, vector<16x16xbf16>
    %cst = arith.constant dense<0.000000e+00> : vector<128x16xf32>
    %2 = tpu.matmul %0, %1, %cst {dimension_numbers = #tpu.dot_dimension_numbers<[1], [0], [0], [1], [0, 0, 1, 1], [], []>} : vector<128x16xbf16>, vector<16x16xbf16>, vector<128x16xf32> -> vector<128x16xf32>
    %c0_3 = arith.constant 0 : index
    %c0_4 = arith.constant 0 : index
    %3 = vector.load %arg3[%c0_3, %c0_4] : memref<1x16xf32, #tpu.memory_space<vmem>>, vector<1x16xf32>
    %4 = vector.broadcast %3 : vector<1x16xf32> to vector<128x16xf32>
    %5 = arith.mulf %2, %4 : vector<128x16xf32>
    %c0_5 = arith.constant 0 : index
    %c0_6 = arith.constant 0 : index
    %6 = vector.load %arg4[%c0_5, %c0_6] : memref<1x16xf32, #tpu.memory_space<vmem>>, vector<1x16xf32>
    %7 = vector.broadcast %6 : vector<1x16xf32> to vector<128x16xf32>
    %8 = arith.addf %5, %7 : vector<128x16xf32>
    %cst_7 = arith.constant 0.000000e+00 : f32
    %9 = vector.broadcast %cst_7 : f32 to vector<128x16xf32>
    %10 = arith.maximumf %8, %9 : vector<128x16xf32>
    %11 = arith.truncf %10 : vector<128x16xf32> to vector<128x16xbf16>
    %c0_8 = arith.constant 0 : index
    %c0_9 = arith.constant 0 : index
    %12 = vector.load %arg5[%c0_8, %c0_9] : memref<128x16xbf16, #tpu.memory_space<vmem>>, vector<128x16xbf16>
    tpu.vector_store %arg5[%c0_8, %c0_9], %11 {strides = array<i32>} : memref<128x16xbf16, #tpu.memory_space<vmem>>, vector<128x16xbf16>,
    return
  }
  func.func @transform_0(%arg0: i32) -> (i32, i32) {
    %c0_i32 = arith.constant 0 : i32
    %c0_i32_0 = arith.constant 0 : i32
    return %arg0, %c0_i32 : i32, i32
  }
  func.func @transform_1(%arg0: i32) -> (i32, i32) {
    %c0_i32 = arith.constant 0 : i32
    %c0_i32_0 = arith.constant 0 : i32
    %c0_i32_1 = arith.constant 0 : i32
    return %c0_i32, %c0_i32_0 : i32, i32
  }
  func.func @transform_2(%arg0: i32) -> (i32, i32) {
    %c0_i32 = arith.constant 0 : i32
    %c0_i32_0 = arith.constant 0 : i32
    %c0_i32_1 = arith.constant 0 : i32
    return %c0_i32, %c0_i32_0 : i32, i32
  }
  func.func @transform_3(%arg0: i32) -> (i32, i32) {
    %c0_i32 = arith.constant 0 : i32
    %c0_i32_0 = arith.constant 0 : i32
    %c0_i32_1 = arith.constant 0 : i32
    return %c0_i32, %c0_i32_0 : i32, i32
  }
  func.func @transform_4(%arg0: i32) -> (i32, i32) {
    %c0_i32 = arith.constant 0 : i32
    %c0_i32_0 = arith.constant 0 : i32
    return %arg0, %c0_i32 : i32, i32
  }
}

module attributes {stable_mosaic.version = 11 : i64} {
  func.func @_fused_matmul_kernel(%arg0: i32, %arg1: memref<32x144xbf16, #tpu.memory_space<vmem>>, %arg2: memref<144x24xbf16, #tpu.memory_space<vmem>>, %arg3: memref<1x24xf32, #tpu.memory_space<vmem>>, %arg4: memref<1x24xf32, #tpu.memory_space<vmem>>, %arg5: memref<32x24xbf16, #tpu.memory_space<vmem>>) attributes {dimension_semantics = [#tpu.dimension_semantics<parallel>], iteration_bounds = array<i64: 1>, scalar_prefetch = 0 : i64, scratch_operands = 0 : i64, tpu.core_type = #tpu.core_type<tc>, window_params = [{transform_indices = @transform_0, window_bounds = array<i64: 32, 144>}, {pipeline_mode = #tpu.pipeline_mode<synchronous>, transform_indices = @transform_1, window_bounds = array<i64: 144, 24>}, {pipeline_mode = #tpu.pipeline_mode<synchronous>, transform_indices = @transform_2, window_bounds = array<i64: 1, 24>}, {pipeline_mode = #tpu.pipeline_mode<synchronous>, transform_indices = @transform_3, window_bounds = array<i64: 1, 24>}, {transform_indices = @transform_4, window_bounds = array<i64: 32, 24>}]} {
    %c0 = arith.constant 0 : index
    %c0_0 = arith.constant 0 : index
    %0 = vector.load %arg1[%c0, %c0_0] : memref<32x144xbf16, #tpu.memory_space<vmem>>, vector<32x144xbf16>
    %c0_1 = arith.constant 0 : index
    %c0_2 = arith.constant 0 : index
    %1 = vector.load %arg2[%c0_1, %c0_2] : memref<144x24xbf16, #tpu.memory_space<vmem>>, vector<144x24xbf16>
    %cst = arith.constant dense<0.000000e+00> : vector<32x24xf32>
    %2 = tpu.matmul %0, %1, %cst {dimension_numbers = #tpu.dot_dimension_numbers<[1], [0], [0], [1], [0, 0, 1, 1], [], []>} : vector<32x144xbf16>, vector<144x24xbf16>, vector<32x24xf32> -> vector<32x24xf32>
    %c0_3 = arith.constant 0 : index
    %c0_4 = arith.constant 0 : index
    %3 = vector.load %arg3[%c0_3, %c0_4] : memref<1x24xf32, #tpu.memory_space<vmem>>, vector<1x24xf32>
    %4 = vector.broadcast %3 : vector<1x24xf32> to vector<32x24xf32>
    %5 = arith.mulf %2, %4 : vector<32x24xf32>
    %c0_5 = arith.constant 0 : index
    %c0_6 = arith.constant 0 : index
    %6 = vector.load %arg4[%c0_5, %c0_6] : memref<1x24xf32, #tpu.memory_space<vmem>>, vector<1x24xf32>
    %7 = vector.broadcast %6 : vector<1x24xf32> to vector<32x24xf32>
    %8 = arith.addf %5, %7 : vector<32x24xf32>
    %cst_7 = arith.constant 0.000000e+00 : f32
    %9 = vector.broadcast %cst_7 : f32 to vector<32x24xf32>
    %10 = arith.maximumf %8, %9 : vector<32x24xf32>
    %11 = arith.truncf %10 : vector<32x24xf32> to vector<32x24xbf16>
    %c0_8 = arith.constant 0 : index
    %c0_9 = arith.constant 0 : index
    %12 = vector.load %arg5[%c0_8, %c0_9] : memref<32x24xbf16, #tpu.memory_space<vmem>>, vector<32x24xbf16>
    tpu.vector_store %arg5[%c0_8, %c0_9], %11 {strides = array<i32>} : memref<32x24xbf16, #tpu.memory_space<vmem>>, vector<32x24xbf16>,
    return
  }
  func.func @transform_0(%arg0: i32) -> (i32, i32) {
    %c0_i32 = arith.constant 0 : i32
    %c0_i32_0 = arith.constant 0 : i32
    return %arg0, %c0_i32 : i32, i32
  }
  func.func @transform_1(%arg0: i32) -> (i32, i32) {
    %c0_i32 = arith.constant 0 : i32
    %c0_i32_0 = arith.constant 0 : i32
    %c0_i32_1 = arith.constant 0 : i32
    return %c0_i32, %c0_i32_0 : i32, i32
  }
  func.func @transform_2(%arg0: i32) -> (i32, i32) {
    %c0_i32 = arith.constant 0 : i32
    %c0_i32_0 = arith.constant 0 : i32
    %c0_i32_1 = arith.constant 0 : i32
    return %c0_i32, %c0_i32_0 : i32, i32
  }
  func.func @transform_3(%arg0: i32) -> (i32, i32) {
    %c0_i32 = arith.constant 0 : i32
    %c0_i32_0 = arith.constant 0 : i32
    %c0_i32_1 = arith.constant 0 : i32
    return %c0_i32, %c0_i32_0 : i32, i32
  }
  func.func @transform_4(%arg0: i32) -> (i32, i32) {
    %c0_i32 = arith.constant 0 : i32
    %c0_i32_0 = arith.constant 0 : i32
    return %arg0, %c0_i32 : i32, i32
  }
}

module attributes {stable_mosaic.version = 11 : i64} {
  func.func @_fused_matmul_kernel(%arg0: i32, %arg1: memref<8x216xbf16, #tpu.memory_space<vmem>>, %arg2: memref<216x32xbf16, #tpu.memory_space<vmem>>, %arg3: memref<1x32xf32, #tpu.memory_space<vmem>>, %arg4: memref<1x32xf32, #tpu.memory_space<vmem>>, %arg5: memref<8x32xbf16, #tpu.memory_space<vmem>>) attributes {dimension_semantics = [#tpu.dimension_semantics<parallel>], iteration_bounds = array<i64: 1>, scalar_prefetch = 0 : i64, scratch_operands = 0 : i64, tpu.core_type = #tpu.core_type<tc>, window_params = [{transform_indices = @transform_0, window_bounds = array<i64: 8, 216>}, {pipeline_mode = #tpu.pipeline_mode<synchronous>, transform_indices = @transform_1, window_bounds = array<i64: 216, 32>}, {pipeline_mode = #tpu.pipeline_mode<synchronous>, transform_indices = @transform_2, window_bounds = array<i64: 1, 32>}, {pipeline_mode = #tpu.pipeline_mode<synchronous>, transform_indices = @transform_3, window_bounds = array<i64: 1, 32>}, {transform_indices = @transform_4, window_bounds = array<i64: 8, 32>}]} {
    %c0 = arith.constant 0 : index
    %c0_0 = arith.constant 0 : index
    %0 = vector.load %arg1[%c0, %c0_0] : memref<8x216xbf16, #tpu.memory_space<vmem>>, vector<8x216xbf16>
    %c0_1 = arith.constant 0 : index
    %c0_2 = arith.constant 0 : index
    %1 = vector.load %arg2[%c0_1, %c0_2] : memref<216x32xbf16, #tpu.memory_space<vmem>>, vector<216x32xbf16>
    %cst = arith.constant dense<0.000000e+00> : vector<8x32xf32>
    %2 = tpu.matmul %0, %1, %cst {dimension_numbers = #tpu.dot_dimension_numbers<[1], [0], [0], [1], [0, 0, 1, 1], [], []>} : vector<8x216xbf16>, vector<216x32xbf16>, vector<8x32xf32> -> vector<8x32xf32>
    %c0_3 = arith.constant 0 : index
    %c0_4 = arith.constant 0 : index
    %3 = vector.load %arg3[%c0_3, %c0_4] : memref<1x32xf32, #tpu.memory_space<vmem>>, vector<1x32xf32>
    %4 = vector.broadcast %3 : vector<1x32xf32> to vector<8x32xf32>
    %5 = arith.mulf %2, %4 : vector<8x32xf32>
    %c0_5 = arith.constant 0 : index
    %c0_6 = arith.constant 0 : index
    %6 = vector.load %arg4[%c0_5, %c0_6] : memref<1x32xf32, #tpu.memory_space<vmem>>, vector<1x32xf32>
    %7 = vector.broadcast %6 : vector<1x32xf32> to vector<8x32xf32>
    %8 = arith.addf %5, %7 : vector<8x32xf32>
    %cst_7 = arith.constant 0.000000e+00 : f32
    %9 = vector.broadcast %cst_7 : f32 to vector<8x32xf32>
    %10 = arith.maximumf %8, %9 : vector<8x32xf32>
    %11 = arith.truncf %10 : vector<8x32xf32> to vector<8x32xbf16>
    %c0_8 = arith.constant 0 : index
    %c0_9 = arith.constant 0 : index
    %12 = vector.load %arg5[%c0_8, %c0_9] : memref<8x32xbf16, #tpu.memory_space<vmem>>, vector<8x32xbf16>
    tpu.vector_store %arg5[%c0_8, %c0_9], %11 {strides = array<i32>} : memref<8x32xbf16, #tpu.memory_space<vmem>>, vector<8x32xbf16>,
    return
  }
  func.func @transform_0(%arg0: i32) -> (i32, i32) {
    %c0_i32 = arith.constant 0 : i32
    %c0_i32_0 = arith.constant 0 : i32
    return %arg0, %c0_i32 : i32, i32
  }
  func.func @transform_1(%arg0: i32) -> (i32, i32) {
    %c0_i32 = arith.constant 0 : i32
    %c0_i32_0 = arith.constant 0 : i32
    %c0_i32_1 = arith.constant 0 : i32
    return %c0_i32, %c0_i32_0 : i32, i32
  }
  func.func @transform_2(%arg0: i32) -> (i32, i32) {
    %c0_i32 = arith.constant 0 : i32
    %c0_i32_0 = arith.constant 0 : i32
    %c0_i32_1 = arith.constant 0 : i32
    return %c0_i32, %c0_i32_0 : i32, i32
  }
  func.func @transform_3(%arg0: i32) -> (i32, i32) {
    %c0_i32 = arith.constant 0 : i32
    %c0_i32_0 = arith.constant 0 : i32
    %c0_i32_1 = arith.constant 0 : i32
    return %c0_i32, %c0_i32_0 : i32, i32
  }
  func.func @transform_4(%arg0: i32) -> (i32, i32) {
    %c0_i32 = arith.constant 0 : i32
    %c0_i32_0 = arith.constant 0 : i32
    return %arg0, %c0_i32 : i32, i32
  }
}

module attributes {stable_mosaic.version = 11 : i64} {
  func.func @_fused_matmul_kernel(%arg0: i32, %arg1: memref<8x288xbf16, #tpu.memory_space<vmem>>, %arg2: memref<288x32xbf16, #tpu.memory_space<vmem>>, %arg3: memref<1x32xf32, #tpu.memory_space<vmem>>, %arg4: memref<1x32xf32, #tpu.memory_space<vmem>>, %arg5: memref<8x32xbf16, #tpu.memory_space<vmem>>) attributes {dimension_semantics = [#tpu.dimension_semantics<parallel>], iteration_bounds = array<i64: 1>, scalar_prefetch = 0 : i64, scratch_operands = 0 : i64, tpu.core_type = #tpu.core_type<tc>, window_params = [{transform_indices = @transform_0, window_bounds = array<i64: 8, 288>}, {pipeline_mode = #tpu.pipeline_mode<synchronous>, transform_indices = @transform_1, window_bounds = array<i64: 288, 32>}, {pipeline_mode = #tpu.pipeline_mode<synchronous>, transform_indices = @transform_2, window_bounds = array<i64: 1, 32>}, {pipeline_mode = #tpu.pipeline_mode<synchronous>, transform_indices = @transform_3, window_bounds = array<i64: 1, 32>}, {transform_indices = @transform_4, window_bounds = array<i64: 8, 32>}]} {
    %c0 = arith.constant 0 : index
    %c0_0 = arith.constant 0 : index
    %0 = vector.load %arg1[%c0, %c0_0] : memref<8x288xbf16, #tpu.memory_space<vmem>>, vector<8x288xbf16>
    %c0_1 = arith.constant 0 : index
    %c0_2 = arith.constant 0 : index
    %1 = vector.load %arg2[%c0_1, %c0_2] : memref<288x32xbf16, #tpu.memory_space<vmem>>, vector<288x32xbf16>
    %cst = arith.constant dense<0.000000e+00> : vector<8x32xf32>
    %2 = tpu.matmul %0, %1, %cst {dimension_numbers = #tpu.dot_dimension_numbers<[1], [0], [0], [1], [0, 0, 1, 1], [], []>} : vector<8x288xbf16>, vector<288x32xbf16>, vector<8x32xf32> -> vector<8x32xf32>
    %c0_3 = arith.constant 0 : index
    %c0_4 = arith.constant 0 : index
    %3 = vector.load %arg3[%c0_3, %c0_4] : memref<1x32xf32, #tpu.memory_space<vmem>>, vector<1x32xf32>
    %4 = vector.broadcast %3 : vector<1x32xf32> to vector<8x32xf32>
    %5 = arith.mulf %2, %4 : vector<8x32xf32>
    %c0_5 = arith.constant 0 : index
    %c0_6 = arith.constant 0 : index
    %6 = vector.load %arg4[%c0_5, %c0_6] : memref<1x32xf32, #tpu.memory_space<vmem>>, vector<1x32xf32>
    %7 = vector.broadcast %6 : vector<1x32xf32> to vector<8x32xf32>
    %8 = arith.addf %5, %7 : vector<8x32xf32>
    %cst_7 = arith.constant 0.000000e+00 : f32
    %9 = vector.broadcast %cst_7 : f32 to vector<8x32xf32>
    %10 = arith.maximumf %8, %9 : vector<8x32xf32>
    %11 = arith.truncf %10 : vector<8x32xf32> to vector<8x32xbf16>
    %c0_8 = arith.constant 0 : index
    %c0_9 = arith.constant 0 : index
    %12 = vector.load %arg5[%c0_8, %c0_9] : memref<8x32xbf16, #tpu.memory_space<vmem>>, vector<8x32xbf16>
    tpu.vector_store %arg5[%c0_8, %c0_9], %11 {strides = array<i32>} : memref<8x32xbf16, #tpu.memory_space<vmem>>, vector<8x32xbf16>,
    return
  }
  func.func @transform_0(%arg0: i32) -> (i32, i32) {
    %c0_i32 = arith.constant 0 : i32
    %c0_i32_0 = arith.constant 0 : i32
    return %arg0, %c0_i32 : i32, i32
  }
  func.func @transform_1(%arg0: i32) -> (i32, i32) {
    %c0_i32 = arith.constant 0 : i32
    %c0_i32_0 = arith.constant 0 : i32
    %c0_i32_1 = arith.constant 0 : i32
    return %c0_i32, %c0_i32_0 : i32, i32
  }
  func.func @transform_2(%arg0: i32) -> (i32, i32) {
    %c0_i32 = arith.constant 0 : i32
    %c0_i32_0 = arith.constant 0 : i32
    %c0_i32_1 = arith.constant 0 : i32
    return %c0_i32, %c0_i32_0 : i32, i32
  }
  func.func @transform_3(%arg0: i32) -> (i32, i32) {
    %c0_i32 = arith.constant 0 : i32
    %c0_i32_0 = arith.constant 0 : i32
    %c0_i32_1 = arith.constant 0 : i32
    return %c0_i32, %c0_i32_0 : i32, i32
  }
  func.func @transform_4(%arg0: i32) -> (i32, i32) {
    %c0_i32 = arith.constant 0 : i32
    %c0_i32_0 = arith.constant 0 : i32
    return %arg0, %c0_i32 : i32, i32
  }
}

module attributes {stable_mosaic.version = 11 : i64} {
  func.func @_upsample_rows_kernel(%arg0: i32, %arg1: memref<8x2xbf16, #tpu.memory_space<vmem>>, %arg2: memref<1x2x64xbf16, #tpu.memory_space<vmem>>, %arg3: memref<1x8x64xbf16, #tpu.memory_space<vmem>>) attributes {dimension_semantics = [#tpu.dimension_semantics<parallel>], iteration_bounds = array<i64: 2>, scalar_prefetch = 0 : i64, scratch_operands = 0 : i64, tpu.core_type = #tpu.core_type<tc>, window_params = [{pipeline_mode = #tpu.pipeline_mode<synchronous>, transform_indices = @transform_0, window_bounds = array<i64: 8, 2>}, {transform_indices = @transform_1, window_bounds = array<i64: 1, 2, 64>}, {transform_indices = @transform_2, window_bounds = array<i64: 1, 8, 64>}]} {
    %c0 = arith.constant 0 : index
    %c0_0 = arith.constant 0 : index
    %0 = vector.load %arg1[%c0, %c0_0] : memref<8x2xbf16, #tpu.memory_space<vmem>>, vector<8x2xbf16>
    %c0_1 = arith.constant 0 : index
    %c0_2 = arith.constant 0 : index
    %c0_3 = arith.constant 0 : index
    %1 = vector.load %arg2[%c0_1, %c0_2, %c0_3] : memref<1x2x64xbf16, #tpu.memory_space<vmem>>, vector<1x2x64xbf16>
    %2 = vector.shape_cast %1 : vector<1x2x64xbf16> to vector<2x64xbf16>
    %cst = arith.constant dense<0.000000e+00> : vector<8x64xf32>
    %3 = tpu.matmul %0, %2, %cst {dimension_numbers = #tpu.dot_dimension_numbers<[1], [0], [0], [1], [0, 0, 1, 1], [], []>} : vector<8x2xbf16>, vector<2x64xbf16>, vector<8x64xf32> -> vector<8x64xf32>
    %4 = arith.truncf %3 : vector<8x64xf32> to vector<8x64xbf16>
    %c0_4 = arith.constant 0 : index
    %c0_5 = arith.constant 0 : index
    %c0_6 = arith.constant 0 : index
    %5 = vector.load %arg3[%c0_4, %c0_5, %c0_6] : memref<1x8x64xbf16, #tpu.memory_space<vmem>>, vector<1x8x64xbf16>
    %6 = vector.shape_cast %5 : vector<1x8x64xbf16> to vector<8x64xbf16>
    %7 = vector.shape_cast %4 : vector<8x64xbf16> to vector<1x8x64xbf16>
    tpu.vector_store %arg3[%c0_4, %c0_5, %c0_6], %7 {strides = array<i32>} : memref<1x8x64xbf16, #tpu.memory_space<vmem>>, vector<1x8x64xbf16>,
    return
  }
  func.func @transform_0(%arg0: i32) -> (i32, i32) {
    %c0_i32 = arith.constant 0 : i32
    %c0_i32_0 = arith.constant 0 : i32
    %c0_i32_1 = arith.constant 0 : i32
    return %c0_i32, %c0_i32_0 : i32, i32
  }
  func.func @transform_1(%arg0: i32) -> (i32, i32, i32) {
    %c0_i32 = arith.constant 0 : i32
    %c0_i32_0 = arith.constant 0 : i32
    %c0_i32_1 = arith.constant 0 : i32
    return %arg0, %c0_i32, %c0_i32_0 : i32, i32, i32
  }
  func.func @transform_2(%arg0: i32) -> (i32, i32, i32) {
    %c0_i32 = arith.constant 0 : i32
    %c0_i32_0 = arith.constant 0 : i32
    %c0_i32_1 = arith.constant 0 : i32
    return %arg0, %c0_i32, %c0_i32_0 : i32, i32, i32
  }
}

module attributes {stable_mosaic.version = 11 : i64} {
  func.func @_fused_matmul_kernel(%arg0: i32, %arg1: memref<8x288xbf16, #tpu.memory_space<vmem>>, %arg2: memref<288x32xbf16, #tpu.memory_space<vmem>>, %arg3: memref<1x32xf32, #tpu.memory_space<vmem>>, %arg4: memref<1x32xf32, #tpu.memory_space<vmem>>, %arg5: memref<8x32xbf16, #tpu.memory_space<vmem>>, %arg6: memref<8x32xbf16, #tpu.memory_space<vmem>>) attributes {dimension_semantics = [#tpu.dimension_semantics<parallel>], iteration_bounds = array<i64: 1>, scalar_prefetch = 0 : i64, scratch_operands = 0 : i64, tpu.core_type = #tpu.core_type<tc>, window_params = [{transform_indices = @transform_0, window_bounds = array<i64: 8, 288>}, {pipeline_mode = #tpu.pipeline_mode<synchronous>, transform_indices = @transform_1, window_bounds = array<i64: 288, 32>}, {pipeline_mode = #tpu.pipeline_mode<synchronous>, transform_indices = @transform_2, window_bounds = array<i64: 1, 32>}, {pipeline_mode = #tpu.pipeline_mode<synchronous>, transform_indices = @transform_3, window_bounds = array<i64: 1, 32>}, {transform_indices = @transform_4, window_bounds = array<i64: 8, 32>}, {transform_indices = @transform_5, window_bounds = array<i64: 8, 32>}]} {
    %c0 = arith.constant 0 : index
    %c0_0 = arith.constant 0 : index
    %0 = vector.load %arg1[%c0, %c0_0] : memref<8x288xbf16, #tpu.memory_space<vmem>>, vector<8x288xbf16>
    %c0_1 = arith.constant 0 : index
    %c0_2 = arith.constant 0 : index
    %1 = vector.load %arg2[%c0_1, %c0_2] : memref<288x32xbf16, #tpu.memory_space<vmem>>, vector<288x32xbf16>
    %cst = arith.constant dense<0.000000e+00> : vector<8x32xf32>
    %2 = tpu.matmul %0, %1, %cst {dimension_numbers = #tpu.dot_dimension_numbers<[1], [0], [0], [1], [0, 0, 1, 1], [], []>} : vector<8x288xbf16>, vector<288x32xbf16>, vector<8x32xf32> -> vector<8x32xf32>
    %c0_3 = arith.constant 0 : index
    %c0_4 = arith.constant 0 : index
    %3 = vector.load %arg3[%c0_3, %c0_4] : memref<1x32xf32, #tpu.memory_space<vmem>>, vector<1x32xf32>
    %4 = vector.broadcast %3 : vector<1x32xf32> to vector<8x32xf32>
    %5 = arith.mulf %2, %4 : vector<8x32xf32>
    %c0_5 = arith.constant 0 : index
    %c0_6 = arith.constant 0 : index
    %6 = vector.load %arg4[%c0_5, %c0_6] : memref<1x32xf32, #tpu.memory_space<vmem>>, vector<1x32xf32>
    %7 = vector.broadcast %6 : vector<1x32xf32> to vector<8x32xf32>
    %8 = arith.addf %5, %7 : vector<8x32xf32>
    %c0_7 = arith.constant 0 : index
    %c0_8 = arith.constant 0 : index
    %9 = vector.load %arg5[%c0_7, %c0_8] : memref<8x32xbf16, #tpu.memory_space<vmem>>, vector<8x32xbf16>
    %10 = arith.extf %9 : vector<8x32xbf16> to vector<8x32xf32>
    %11 = arith.addf %8, %10 : vector<8x32xf32>
    %cst_9 = arith.constant 0.000000e+00 : f32
    %12 = vector.broadcast %cst_9 : f32 to vector<8x32xf32>
    %13 = arith.maximumf %11, %12 : vector<8x32xf32>
    %14 = arith.truncf %13 : vector<8x32xf32> to vector<8x32xbf16>
    %c0_10 = arith.constant 0 : index
    %c0_11 = arith.constant 0 : index
    %15 = vector.load %arg6[%c0_10, %c0_11] : memref<8x32xbf16, #tpu.memory_space<vmem>>, vector<8x32xbf16>
    tpu.vector_store %arg6[%c0_10, %c0_11], %14 {strides = array<i32>} : memref<8x32xbf16, #tpu.memory_space<vmem>>, vector<8x32xbf16>,
    return
  }
  func.func @transform_0(%arg0: i32) -> (i32, i32) {
    %c0_i32 = arith.constant 0 : i32
    %c0_i32_0 = arith.constant 0 : i32
    return %arg0, %c0_i32 : i32, i32
  }
  func.func @transform_1(%arg0: i32) -> (i32, i32) {
    %c0_i32 = arith.constant 0 : i32
    %c0_i32_0 = arith.constant 0 : i32
    %c0_i32_1 = arith.constant 0 : i32
    return %c0_i32, %c0_i32_0 : i32, i32
  }
  func.func @transform_2(%arg0: i32) -> (i32, i32) {
    %c0_i32 = arith.constant 0 : i32
    %c0_i32_0 = arith.constant 0 : i32
    %c0_i32_1 = arith.constant 0 : i32
    return %c0_i32, %c0_i32_0 : i32, i32
  }
  func.func @transform_3(%arg0: i32) -> (i32, i32) {
    %c0_i32 = arith.constant 0 : i32
    %c0_i32_0 = arith.constant 0 : i32
    %c0_i32_1 = arith.constant 0 : i32
    return %c0_i32, %c0_i32_0 : i32, i32
  }
  func.func @transform_4(%arg0: i32) -> (i32, i32) {
    %c0_i32 = arith.constant 0 : i32
    %c0_i32_0 = arith.constant 0 : i32
    return %arg0, %c0_i32 : i32, i32
  }
  func.func @transform_5(%arg0: i32) -> (i32, i32) {
    %c0_i32 = arith.constant 0 : i32
    %c0_i32_0 = arith.constant 0 : i32
    return %arg0, %c0_i32 : i32, i32
  }
}

module attributes {stable_mosaic.version = 11 : i64} {
  func.func @_upsample_cols_kernel(%arg0: i32, %arg1: i32, %arg2: memref<8x2xbf16, #tpu.memory_space<vmem>>, %arg3: memref<1x8x2x32xbf16, #tpu.memory_space<vmem>>, %arg4: memref<1x8x8x32xbf16, #tpu.memory_space<vmem>>) attributes {dimension_semantics = [#tpu.dimension_semantics<parallel>, #tpu.dimension_semantics<parallel>], iteration_bounds = array<i64: 2, 1>, scalar_prefetch = 0 : i64, scratch_operands = 0 : i64, tpu.core_type = #tpu.core_type<tc>, window_params = [{pipeline_mode = #tpu.pipeline_mode<synchronous>, transform_indices = @transform_0, window_bounds = array<i64: 8, 2>}, {transform_indices = @transform_1, window_bounds = array<i64: 1, 8, 2, 32>}, {transform_indices = @transform_2, window_bounds = array<i64: 1, 8, 8, 32>}]} {
    %c0 = arith.constant 0 : index
    %c0_0 = arith.constant 0 : index
    %0 = vector.load %arg2[%c0, %c0_0] : memref<8x2xbf16, #tpu.memory_space<vmem>>, vector<8x2xbf16>
    %c0_1 = arith.constant 0 : index
    %c0_2 = arith.constant 0 : index
    %c0_3 = arith.constant 0 : index
    %c0_4 = arith.constant 0 : index
    %1 = vector.load %arg3[%c0_1, %c0_2, %c0_3, %c0_4] : memref<1x8x2x32xbf16, #tpu.memory_space<vmem>>, vector<1x1x2x32xbf16>
    %2 = vector.shape_cast %1 : vector<1x1x2x32xbf16> to vector<2x32xbf16>
    %cst = arith.constant dense<0.000000e+00> : vector<8x32xf32>
    %3 = tpu.matmul %0, %2, %cst {dimension_numbers = #tpu.dot_dimension_numbers<[1], [0], [0], [1], [0, 0, 1, 1], [], []>} : vector<8x2xbf16>, vector<2x32xbf16>, vector<8x32xf32> -> vector<8x32xf32>
    %4 = arith.truncf %3 : vector<8x32xf32> to vector<8x32xbf16>
    %c0_5 = arith.constant 0 : index
    %c0_6 = arith.constant 0 : index
    %c0_7 = arith.constant 0 : index
    %c0_8 = arith.constant 0 : index
    %5 = vector.load %arg4[%c0_5, %c0_6, %c0_7, %c0_8] : memref<1x8x8x32xbf16, #tpu.memory_space<vmem>>, vector<1x1x8x32xbf16>
    %6 = vector.shape_cast %5 : vector<1x1x8x32xbf16> to vector<8x32xbf16>
    %7 = vector.shape_cast %4 : vector<8x32xbf16> to vector<1x1x8x32xbf16>
    tpu.vector_store %arg4[%c0_5, %c0_6, %c0_7, %c0_8], %7 {strides = array<i32>} : memref<1x8x8x32xbf16, #tpu.memory_space<vmem>>, vector<1x1x8x32xbf16>,
    %c0_9 = arith.constant 0 : index
    %c1 = arith.constant 1 : index
    %c0_10 = arith.constant 0 : index
    %c0_11 = arith.constant 0 : index
    %8 = vector.load %arg3[%c0_9, %c1, %c0_10, %c0_11] : memref<1x8x2x32xbf16, #tpu.memory_space<vmem>>, vector<1x1x2x32xbf16>
    %9 = vector.shape_cast %8 : vector<1x1x2x32xbf16> to vector<2x32xbf16>
    %cst_12 = arith.constant dense<0.000000e+00> : vector<8x32xf32>
    %10 = tpu.matmul %0, %9, %cst_12 {dimension_numbers = #tpu.dot_dimension_numbers<[1], [0], [0], [1], [0, 0, 1, 1], [], []>} : vector<8x2xbf16>, vector<2x32xbf16>, vector<8x32xf32> -> vector<8x32xf32>
    %11 = arith.truncf %10 : vector<8x32xf32> to vector<8x32xbf16>
    %c0_13 = arith.constant 0 : index
    %c1_14 = arith.constant 1 : index
    %c0_15 = arith.constant 0 : index
    %c0_16 = arith.constant 0 : index
    %12 = vector.load %arg4[%c0_13, %c1_14, %c0_15, %c0_16] : memref<1x8x8x32xbf16, #tpu.memory_space<vmem>>, vector<1x1x8x32xbf16>
    %13 = vector.shape_cast %12 : vector<1x1x8x32xbf16> to vector<8x32xbf16>
    %14 = vector.shape_cast %11 : vector<8x32xbf16> to vector<1x1x8x32xbf16>
    tpu.vector_store %arg4[%c0_13, %c1_14, %c0_15, %c0_16], %14 {strides = array<i32>} : memref<1x8x8x32xbf16, #tpu.memory_space<vmem>>, vector<1x1x8x32xbf16>,
    %c0_17 = arith.constant 0 : index
    %c2 = arith.constant 2 : index
    %c0_18 = arith.constant 0 : index
    %c0_19 = arith.constant 0 : index
    %15 = vector.load %arg3[%c0_17, %c2, %c0_18, %c0_19] : memref<1x8x2x32xbf16, #tpu.memory_space<vmem>>, vector<1x1x2x32xbf16>
    %16 = vector.shape_cast %15 : vector<1x1x2x32xbf16> to vector<2x32xbf16>
    %cst_20 = arith.constant dense<0.000000e+00> : vector<8x32xf32>
    %17 = tpu.matmul %0, %16, %cst_20 {dimension_numbers = #tpu.dot_dimension_numbers<[1], [0], [0], [1], [0, 0, 1, 1], [], []>} : vector<8x2xbf16>, vector<2x32xbf16>, vector<8x32xf32> -> vector<8x32xf32>
    %18 = arith.truncf %17 : vector<8x32xf32> to vector<8x32xbf16>
    %c0_21 = arith.constant 0 : index
    %c2_22 = arith.constant 2 : index
    %c0_23 = arith.constant 0 : index
    %c0_24 = arith.constant 0 : index
    %19 = vector.load %arg4[%c0_21, %c2_22, %c0_23, %c0_24] : memref<1x8x8x32xbf16, #tpu.memory_space<vmem>>, vector<1x1x8x32xbf16>
    %20 = vector.shape_cast %19 : vector<1x1x8x32xbf16> to vector<8x32xbf16>
    %21 = vector.shape_cast %18 : vector<8x32xbf16> to vector<1x1x8x32xbf16>
    tpu.vector_store %arg4[%c0_21, %c2_22, %c0_23, %c0_24], %21 {strides = array<i32>} : memref<1x8x8x32xbf16, #tpu.memory_space<vmem>>, vector<1x1x8x32xbf16>,
    %c0_25 = arith.constant 0 : index
    %c3 = arith.constant 3 : index
    %c0_26 = arith.constant 0 : index
    %c0_27 = arith.constant 0 : index
    %22 = vector.load %arg3[%c0_25, %c3, %c0_26, %c0_27] : memref<1x8x2x32xbf16, #tpu.memory_space<vmem>>, vector<1x1x2x32xbf16>
    %23 = vector.shape_cast %22 : vector<1x1x2x32xbf16> to vector<2x32xbf16>
    %cst_28 = arith.constant dense<0.000000e+00> : vector<8x32xf32>
    %24 = tpu.matmul %0, %23, %cst_28 {dimension_numbers = #tpu.dot_dimension_numbers<[1], [0], [0], [1], [0, 0, 1, 1], [], []>} : vector<8x2xbf16>, vector<2x32xbf16>, vector<8x32xf32> -> vector<8x32xf32>
    %25 = arith.truncf %24 : vector<8x32xf32> to vector<8x32xbf16>
    %c0_29 = arith.constant 0 : index
    %c3_30 = arith.constant 3 : index
    %c0_31 = arith.constant 0 : index
    %c0_32 = arith.constant 0 : index
    %26 = vector.load %arg4[%c0_29, %c3_30, %c0_31, %c0_32] : memref<1x8x8x32xbf16, #tpu.memory_space<vmem>>, vector<1x1x8x32xbf16>
    %27 = vector.shape_cast %26 : vector<1x1x8x32xbf16> to vector<8x32xbf16>
    %28 = vector.shape_cast %25 : vector<8x32xbf16> to vector<1x1x8x32xbf16>
    tpu.vector_store %arg4[%c0_29, %c3_30, %c0_31, %c0_32], %28 {strides = array<i32>} : memref<1x8x8x32xbf16, #tpu.memory_space<vmem>>, vector<1x1x8x32xbf16>,
    %c0_33 = arith.constant 0 : index
    %c4 = arith.constant 4 : index
    %c0_34 = arith.constant 0 : index
    %c0_35 = arith.constant 0 : index
    %29 = vector.load %arg3[%c0_33, %c4, %c0_34, %c0_35] : memref<1x8x2x32xbf16, #tpu.memory_space<vmem>>, vector<1x1x2x32xbf16>
    %30 = vector.shape_cast %29 : vector<1x1x2x32xbf16> to vector<2x32xbf16>
    %cst_36 = arith.constant dense<0.000000e+00> : vector<8x32xf32>
    %31 = tpu.matmul %0, %30, %cst_36 {dimension_numbers = #tpu.dot_dimension_numbers<[1], [0], [0], [1], [0, 0, 1, 1], [], []>} : vector<8x2xbf16>, vector<2x32xbf16>, vector<8x32xf32> -> vector<8x32xf32>
    %32 = arith.truncf %31 : vector<8x32xf32> to vector<8x32xbf16>
    %c0_37 = arith.constant 0 : index
    %c4_38 = arith.constant 4 : index
    %c0_39 = arith.constant 0 : index
    %c0_40 = arith.constant 0 : index
    %33 = vector.load %arg4[%c0_37, %c4_38, %c0_39, %c0_40] : memref<1x8x8x32xbf16, #tpu.memory_space<vmem>>, vector<1x1x8x32xbf16>
    %34 = vector.shape_cast %33 : vector<1x1x8x32xbf16> to vector<8x32xbf16>
    %35 = vector.shape_cast %32 : vector<8x32xbf16> to vector<1x1x8x32xbf16>
    tpu.vector_store %arg4[%c0_37, %c4_38, %c0_39, %c0_40], %35 {strides = array<i32>} : memref<1x8x8x32xbf16, #tpu.memory_space<vmem>>, vector<1x1x8x32xbf16>,
    %c0_41 = arith.constant 0 : index
    %c5 = arith.constant 5 : index
    %c0_42 = arith.constant 0 : index
    %c0_43 = arith.constant 0 : index
    %36 = vector.load %arg3[%c0_41, %c5, %c0_42, %c0_43] : memref<1x8x2x32xbf16, #tpu.memory_space<vmem>>, vector<1x1x2x32xbf16>
    %37 = vector.shape_cast %36 : vector<1x1x2x32xbf16> to vector<2x32xbf16>
    %cst_44 = arith.constant dense<0.000000e+00> : vector<8x32xf32>
    %38 = tpu.matmul %0, %37, %cst_44 {dimension_numbers = #tpu.dot_dimension_numbers<[1], [0], [0], [1], [0, 0, 1, 1], [], []>} : vector<8x2xbf16>, vector<2x32xbf16>, vector<8x32xf32> -> vector<8x32xf32>
    %39 = arith.truncf %38 : vector<8x32xf32> to vector<8x32xbf16>
    %c0_45 = arith.constant 0 : index
    %c5_46 = arith.constant 5 : index
    %c0_47 = arith.constant 0 : index
    %c0_48 = arith.constant 0 : index
    %40 = vector.load %arg4[%c0_45, %c5_46, %c0_47, %c0_48] : memref<1x8x8x32xbf16, #tpu.memory_space<vmem>>, vector<1x1x8x32xbf16>
    %41 = vector.shape_cast %40 : vector<1x1x8x32xbf16> to vector<8x32xbf16>
    %42 = vector.shape_cast %39 : vector<8x32xbf16> to vector<1x1x8x32xbf16>
    tpu.vector_store %arg4[%c0_45, %c5_46, %c0_47, %c0_48], %42 {strides = array<i32>} : memref<1x8x8x32xbf16, #tpu.memory_space<vmem>>, vector<1x1x8x32xbf16>,
    %c0_49 = arith.constant 0 : index
    %c6 = arith.constant 6 : index
    %c0_50 = arith.constant 0 : index
    %c0_51 = arith.constant 0 : index
    %43 = vector.load %arg3[%c0_49, %c6, %c0_50, %c0_51] : memref<1x8x2x32xbf16, #tpu.memory_space<vmem>>, vector<1x1x2x32xbf16>
    %44 = vector.shape_cast %43 : vector<1x1x2x32xbf16> to vector<2x32xbf16>
    %cst_52 = arith.constant dense<0.000000e+00> : vector<8x32xf32>
    %45 = tpu.matmul %0, %44, %cst_52 {dimension_numbers = #tpu.dot_dimension_numbers<[1], [0], [0], [1], [0, 0, 1, 1], [], []>} : vector<8x2xbf16>, vector<2x32xbf16>, vector<8x32xf32> -> vector<8x32xf32>
    %46 = arith.truncf %45 : vector<8x32xf32> to vector<8x32xbf16>
    %c0_53 = arith.constant 0 : index
    %c6_54 = arith.constant 6 : index
    %c0_55 = arith.constant 0 : index
    %c0_56 = arith.constant 0 : index
    %47 = vector.load %arg4[%c0_53, %c6_54, %c0_55, %c0_56] : memref<1x8x8x32xbf16, #tpu.memory_space<vmem>>, vector<1x1x8x32xbf16>
    %48 = vector.shape_cast %47 : vector<1x1x8x32xbf16> to vector<8x32xbf16>
    %49 = vector.shape_cast %46 : vector<8x32xbf16> to vector<1x1x8x32xbf16>
    tpu.vector_store %arg4[%c0_53, %c6_54, %c0_55, %c0_56], %49 {strides = array<i32>} : memref<1x8x8x32xbf16, #tpu.memory_space<vmem>>, vector<1x1x8x32xbf16>,
    %c0_57 = arith.constant 0 : index
    %c7 = arith.constant 7 : index
    %c0_58 = arith.constant 0 : index
    %c0_59 = arith.constant 0 : index
    %50 = vector.load %arg3[%c0_57, %c7, %c0_58, %c0_59] : memref<1x8x2x32xbf16, #tpu.memory_space<vmem>>, vector<1x1x2x32xbf16>
    %51 = vector.shape_cast %50 : vector<1x1x2x32xbf16> to vector<2x32xbf16>
    %cst_60 = arith.constant dense<0.000000e+00> : vector<8x32xf32>
    %52 = tpu.matmul %0, %51, %cst_60 {dimension_numbers = #tpu.dot_dimension_numbers<[1], [0], [0], [1], [0, 0, 1, 1], [], []>} : vector<8x2xbf16>, vector<2x32xbf16>, vector<8x32xf32> -> vector<8x32xf32>
    %53 = arith.truncf %52 : vector<8x32xf32> to vector<8x32xbf16>
    %c0_61 = arith.constant 0 : index
    %c7_62 = arith.constant 7 : index
    %c0_63 = arith.constant 0 : index
    %c0_64 = arith.constant 0 : index
    %54 = vector.load %arg4[%c0_61, %c7_62, %c0_63, %c0_64] : memref<1x8x8x32xbf16, #tpu.memory_space<vmem>>, vector<1x1x8x32xbf16>
    %55 = vector.shape_cast %54 : vector<1x1x8x32xbf16> to vector<8x32xbf16>
    %56 = vector.shape_cast %53 : vector<8x32xbf16> to vector<1x1x8x32xbf16>
    tpu.vector_store %arg4[%c0_61, %c7_62, %c0_63, %c0_64], %56 {strides = array<i32>} : memref<1x8x8x32xbf16, #tpu.memory_space<vmem>>, vector<1x1x8x32xbf16>,
    return
  }
  func.func @transform_0(%arg0: i32, %arg1: i32) -> (i32, i32) {
    %c0_i32 = arith.constant 0 : i32
    %c0_i32_0 = arith.constant 0 : i32
    %c0_i32_1 = arith.constant 0 : i32
    return %c0_i32, %c0_i32_0 : i32, i32
  }
  func.func @transform_1(%arg0: i32, %arg1: i32) -> (i32, i32, i32, i32) {
    %c0_i32 = arith.constant 0 : i32
    %c0_i32_0 = arith.constant 0 : i32
    %c0_i32_1 = arith.constant 0 : i32
    return %arg0, %arg1, %c0_i32, %c0_i32_0 : i32, i32, i32, i32
  }
  func.func @transform_2(%arg0: i32, %arg1: i32) -> (i32, i32, i32, i32) {
    %c0_i32 = arith.constant 0 : i32
    %c0_i32_0 = arith.constant 0 : i32
    %c0_i32_1 = arith.constant 0 : i32
    return %arg0, %arg1, %c0_i32, %c0_i32_0 : i32, i32, i32, i32
  }
}

module attributes {stable_mosaic.version = 11 : i64} {
  func.func @_fused_matmul_kernel(%arg0: i32, %arg1: memref<128x432xbf16, #tpu.memory_space<vmem>>, %arg2: memref<432x32xbf16, #tpu.memory_space<vmem>>, %arg3: memref<1x32xf32, #tpu.memory_space<vmem>>, %arg4: memref<1x32xf32, #tpu.memory_space<vmem>>, %arg5: memref<128x32xbf16, #tpu.memory_space<vmem>>) attributes {dimension_semantics = [#tpu.dimension_semantics<parallel>], iteration_bounds = array<i64: 1>, scalar_prefetch = 0 : i64, scratch_operands = 0 : i64, tpu.core_type = #tpu.core_type<tc>, window_params = [{transform_indices = @transform_0, window_bounds = array<i64: 128, 432>}, {pipeline_mode = #tpu.pipeline_mode<synchronous>, transform_indices = @transform_1, window_bounds = array<i64: 432, 32>}, {pipeline_mode = #tpu.pipeline_mode<synchronous>, transform_indices = @transform_2, window_bounds = array<i64: 1, 32>}, {pipeline_mode = #tpu.pipeline_mode<synchronous>, transform_indices = @transform_3, window_bounds = array<i64: 1, 32>}, {transform_indices = @transform_4, window_bounds = array<i64: 128, 32>}]} {
    %c0 = arith.constant 0 : index
    %c0_0 = arith.constant 0 : index
    %0 = vector.load %arg1[%c0, %c0_0] : memref<128x432xbf16, #tpu.memory_space<vmem>>, vector<128x432xbf16>
    %c0_1 = arith.constant 0 : index
    %c0_2 = arith.constant 0 : index
    %1 = vector.load %arg2[%c0_1, %c0_2] : memref<432x32xbf16, #tpu.memory_space<vmem>>, vector<432x32xbf16>
    %cst = arith.constant dense<0.000000e+00> : vector<128x32xf32>
    %2 = tpu.matmul %0, %1, %cst {dimension_numbers = #tpu.dot_dimension_numbers<[1], [0], [0], [1], [0, 0, 1, 1], [], []>} : vector<128x432xbf16>, vector<432x32xbf16>, vector<128x32xf32> -> vector<128x32xf32>
    %c0_3 = arith.constant 0 : index
    %c0_4 = arith.constant 0 : index
    %3 = vector.load %arg3[%c0_3, %c0_4] : memref<1x32xf32, #tpu.memory_space<vmem>>, vector<1x32xf32>
    %4 = vector.broadcast %3 : vector<1x32xf32> to vector<128x32xf32>
    %5 = arith.mulf %2, %4 : vector<128x32xf32>
    %c0_5 = arith.constant 0 : index
    %c0_6 = arith.constant 0 : index
    %6 = vector.load %arg4[%c0_5, %c0_6] : memref<1x32xf32, #tpu.memory_space<vmem>>, vector<1x32xf32>
    %7 = vector.broadcast %6 : vector<1x32xf32> to vector<128x32xf32>
    %8 = arith.addf %5, %7 : vector<128x32xf32>
    %cst_7 = arith.constant 0.000000e+00 : f32
    %9 = vector.broadcast %cst_7 : f32 to vector<128x32xf32>
    %10 = arith.maximumf %8, %9 : vector<128x32xf32>
    %11 = arith.truncf %10 : vector<128x32xf32> to vector<128x32xbf16>
    %c0_8 = arith.constant 0 : index
    %c0_9 = arith.constant 0 : index
    %12 = vector.load %arg5[%c0_8, %c0_9] : memref<128x32xbf16, #tpu.memory_space<vmem>>, vector<128x32xbf16>
    tpu.vector_store %arg5[%c0_8, %c0_9], %11 {strides = array<i32>} : memref<128x32xbf16, #tpu.memory_space<vmem>>, vector<128x32xbf16>,
    return
  }
  func.func @transform_0(%arg0: i32) -> (i32, i32) {
    %c0_i32 = arith.constant 0 : i32
    %c0_i32_0 = arith.constant 0 : i32
    return %arg0, %c0_i32 : i32, i32
  }
  func.func @transform_1(%arg0: i32) -> (i32, i32) {
    %c0_i32 = arith.constant 0 : i32
    %c0_i32_0 = arith.constant 0 : i32
    %c0_i32_1 = arith.constant 0 : i32
    return %c0_i32, %c0_i32_0 : i32, i32
  }
  func.func @transform_2(%arg0: i32) -> (i32, i32) {
    %c0_i32 = arith.constant 0 : i32
    %c0_i32_0 = arith.constant 0 : i32
    %c0_i32_1 = arith.constant 0 : i32
    return %c0_i32, %c0_i32_0 : i32, i32
  }
  func.func @transform_3(%arg0: i32) -> (i32, i32) {
    %c0_i32 = arith.constant 0 : i32
    %c0_i32_0 = arith.constant 0 : i32
    %c0_i32_1 = arith.constant 0 : i32
    return %c0_i32, %c0_i32_0 : i32, i32
  }
  func.func @transform_4(%arg0: i32) -> (i32, i32) {
    %c0_i32 = arith.constant 0 : i32
    %c0_i32_0 = arith.constant 0 : i32
    return %arg0, %c0_i32 : i32, i32
  }
}

module attributes {stable_mosaic.version = 11 : i64} {
  func.func @_fused_matmul_kernel(%arg0: i32, %arg1: memref<128x288xbf16, #tpu.memory_space<vmem>>, %arg2: memref<288x32xbf16, #tpu.memory_space<vmem>>, %arg3: memref<1x32xf32, #tpu.memory_space<vmem>>, %arg4: memref<1x32xf32, #tpu.memory_space<vmem>>, %arg5: memref<128x32xbf16, #tpu.memory_space<vmem>>) attributes {dimension_semantics = [#tpu.dimension_semantics<parallel>], iteration_bounds = array<i64: 1>, scalar_prefetch = 0 : i64, scratch_operands = 0 : i64, tpu.core_type = #tpu.core_type<tc>, window_params = [{transform_indices = @transform_0, window_bounds = array<i64: 128, 288>}, {pipeline_mode = #tpu.pipeline_mode<synchronous>, transform_indices = @transform_1, window_bounds = array<i64: 288, 32>}, {pipeline_mode = #tpu.pipeline_mode<synchronous>, transform_indices = @transform_2, window_bounds = array<i64: 1, 32>}, {pipeline_mode = #tpu.pipeline_mode<synchronous>, transform_indices = @transform_3, window_bounds = array<i64: 1, 32>}, {transform_indices = @transform_4, window_bounds = array<i64: 128, 32>}]} {
    %c0 = arith.constant 0 : index
    %c0_0 = arith.constant 0 : index
    %0 = vector.load %arg1[%c0, %c0_0] : memref<128x288xbf16, #tpu.memory_space<vmem>>, vector<128x288xbf16>
    %c0_1 = arith.constant 0 : index
    %c0_2 = arith.constant 0 : index
    %1 = vector.load %arg2[%c0_1, %c0_2] : memref<288x32xbf16, #tpu.memory_space<vmem>>, vector<288x32xbf16>
    %cst = arith.constant dense<0.000000e+00> : vector<128x32xf32>
    %2 = tpu.matmul %0, %1, %cst {dimension_numbers = #tpu.dot_dimension_numbers<[1], [0], [0], [1], [0, 0, 1, 1], [], []>} : vector<128x288xbf16>, vector<288x32xbf16>, vector<128x32xf32> -> vector<128x32xf32>
    %c0_3 = arith.constant 0 : index
    %c0_4 = arith.constant 0 : index
    %3 = vector.load %arg3[%c0_3, %c0_4] : memref<1x32xf32, #tpu.memory_space<vmem>>, vector<1x32xf32>
    %4 = vector.broadcast %3 : vector<1x32xf32> to vector<128x32xf32>
    %5 = arith.mulf %2, %4 : vector<128x32xf32>
    %c0_5 = arith.constant 0 : index
    %c0_6 = arith.constant 0 : index
    %6 = vector.load %arg4[%c0_5, %c0_6] : memref<1x32xf32, #tpu.memory_space<vmem>>, vector<1x32xf32>
    %7 = vector.broadcast %6 : vector<1x32xf32> to vector<128x32xf32>
    %8 = arith.addf %5, %7 : vector<128x32xf32>
    %cst_7 = arith.constant 0.000000e+00 : f32
    %9 = vector.broadcast %cst_7 : f32 to vector<128x32xf32>
    %10 = arith.maximumf %8, %9 : vector<128x32xf32>
    %11 = arith.truncf %10 : vector<128x32xf32> to vector<128x32xbf16>
    %c0_8 = arith.constant 0 : index
    %c0_9 = arith.constant 0 : index
    %12 = vector.load %arg5[%c0_8, %c0_9] : memref<128x32xbf16, #tpu.memory_space<vmem>>, vector<128x32xbf16>
    tpu.vector_store %arg5[%c0_8, %c0_9], %11 {strides = array<i32>} : memref<128x32xbf16, #tpu.memory_space<vmem>>, vector<128x32xbf16>,
    return
  }
  func.func @transform_0(%arg0: i32) -> (i32, i32) {
    %c0_i32 = arith.constant 0 : i32
    %c0_i32_0 = arith.constant 0 : i32
    return %arg0, %c0_i32 : i32, i32
  }
  func.func @transform_1(%arg0: i32) -> (i32, i32) {
    %c0_i32 = arith.constant 0 : i32
    %c0_i32_0 = arith.constant 0 : i32
    %c0_i32_1 = arith.constant 0 : i32
    return %c0_i32, %c0_i32_0 : i32, i32
  }
  func.func @transform_2(%arg0: i32) -> (i32, i32) {
    %c0_i32 = arith.constant 0 : i32
    %c0_i32_0 = arith.constant 0 : i32
    %c0_i32_1 = arith.constant 0 : i32
    return %c0_i32, %c0_i32_0 : i32, i32
  }
  func.func @transform_3(%arg0: i32) -> (i32, i32) {
    %c0_i32 = arith.constant 0 : i32
    %c0_i32_0 = arith.constant 0 : i32
    %c0_i32_1 = arith.constant 0 : i32
    return %c0_i32, %c0_i32_0 : i32, i32
  }
  func.func @transform_4(%arg0: i32) -> (i32, i32) {
    %c0_i32 = arith.constant 0 : i32
    %c0_i32_0 = arith.constant 0 : i32
    return %arg0, %c0_i32 : i32, i32
  }
}

module attributes {stable_mosaic.version = 11 : i64} {
  func.func @_fused_matmul_kernel(%arg0: i32, %arg1: memref<128x32xbf16, #tpu.memory_space<vmem>>, %arg2: memref<32x21xbf16, #tpu.memory_space<vmem>>, %arg3: memref<1x21xf32, #tpu.memory_space<vmem>>, %arg4: memref<1x21xf32, #tpu.memory_space<vmem>>, %arg5: memref<128x21xf32, #tpu.memory_space<vmem>>) attributes {dimension_semantics = [#tpu.dimension_semantics<parallel>], iteration_bounds = array<i64: 1>, scalar_prefetch = 0 : i64, scratch_operands = 0 : i64, tpu.core_type = #tpu.core_type<tc>, window_params = [{transform_indices = @transform_0, window_bounds = array<i64: 128, 32>}, {pipeline_mode = #tpu.pipeline_mode<synchronous>, transform_indices = @transform_1, window_bounds = array<i64: 32, 21>}, {pipeline_mode = #tpu.pipeline_mode<synchronous>, transform_indices = @transform_2, window_bounds = array<i64: 1, 21>}, {pipeline_mode = #tpu.pipeline_mode<synchronous>, transform_indices = @transform_3, window_bounds = array<i64: 1, 21>}, {transform_indices = @transform_4, window_bounds = array<i64: 128, 21>}]} {
    %c0 = arith.constant 0 : index
    %c0_0 = arith.constant 0 : index
    %0 = vector.load %arg1[%c0, %c0_0] : memref<128x32xbf16, #tpu.memory_space<vmem>>, vector<128x32xbf16>
    %c0_1 = arith.constant 0 : index
    %c0_2 = arith.constant 0 : index
    %1 = vector.load %arg2[%c0_1, %c0_2] : memref<32x21xbf16, #tpu.memory_space<vmem>>, vector<32x21xbf16>
    %cst = arith.constant dense<0.000000e+00> : vector<128x21xf32>
    %2 = tpu.matmul %0, %1, %cst {dimension_numbers = #tpu.dot_dimension_numbers<[1], [0], [0], [1], [0, 0, 1, 1], [], []>} : vector<128x32xbf16>, vector<32x21xbf16>, vector<128x21xf32> -> vector<128x21xf32>
    %c0_3 = arith.constant 0 : index
    %c0_4 = arith.constant 0 : index
    %3 = vector.load %arg3[%c0_3, %c0_4] : memref<1x21xf32, #tpu.memory_space<vmem>>, vector<1x21xf32>
    %4 = vector.broadcast %3 : vector<1x21xf32> to vector<128x21xf32>
    %5 = arith.mulf %2, %4 : vector<128x21xf32>
    %c0_5 = arith.constant 0 : index
    %c0_6 = arith.constant 0 : index
    %6 = vector.load %arg4[%c0_5, %c0_6] : memref<1x21xf32, #tpu.memory_space<vmem>>, vector<1x21xf32>
    %7 = vector.broadcast %6 : vector<1x21xf32> to vector<128x21xf32>
    %8 = arith.addf %5, %7 : vector<128x21xf32>
    %c0_7 = arith.constant 0 : index
    %c0_8 = arith.constant 0 : index
    %9 = vector.load %arg5[%c0_7, %c0_8] : memref<128x21xf32, #tpu.memory_space<vmem>>, vector<128x21xf32>
    tpu.vector_store %arg5[%c0_7, %c0_8], %8 {strides = array<i32>} : memref<128x21xf32, #tpu.memory_space<vmem>>, vector<128x21xf32>,
    return
  }
  func.func @transform_0(%arg0: i32) -> (i32, i32) {
    %c0_i32 = arith.constant 0 : i32
    %c0_i32_0 = arith.constant 0 : i32
    return %arg0, %c0_i32 : i32, i32
  }
  func.func @transform_1(%arg0: i32) -> (i32, i32) {
    %c0_i32 = arith.constant 0 : i32
    %c0_i32_0 = arith.constant 0 : i32
    %c0_i32_1 = arith.constant 0 : i32
    return %c0_i32, %c0_i32_0 : i32, i32
  }
  func.func @transform_2(%arg0: i32) -> (i32, i32) {
    %c0_i32 = arith.constant 0 : i32
    %c0_i32_0 = arith.constant 0 : i32
    %c0_i32_1 = arith.constant 0 : i32
    return %c0_i32, %c0_i32_0 : i32, i32
  }
  func.func @transform_3(%arg0: i32) -> (i32, i32) {
    %c0_i32 = arith.constant 0 : i32
    %c0_i32_0 = arith.constant 0 : i32
    %c0_i32_1 = arith.constant 0 : i32
    return %c0_i32, %c0_i32_0 : i32, i32
  }
  func.func @transform_4(%arg0: i32) -> (i32, i32) {
    %c0_i32 = arith.constant 0 : i32
    %c0_i32_0 = arith.constant 0 : i32
    return %arg0, %c0_i32 : i32, i32
  }
}

module attributes {stable_mosaic.version = 11 : i64} {
  func.func @_upsample_rows_kernel(%arg0: i32, %arg1: memref<32x8xf32, #tpu.memory_space<vmem>>, %arg2: memref<1x8x168xf32, #tpu.memory_space<vmem>>, %arg3: memref<1x32x168xf32, #tpu.memory_space<vmem>>) attributes {dimension_semantics = [#tpu.dimension_semantics<parallel>], iteration_bounds = array<i64: 2>, scalar_prefetch = 0 : i64, scratch_operands = 0 : i64, tpu.core_type = #tpu.core_type<tc>, window_params = [{pipeline_mode = #tpu.pipeline_mode<synchronous>, transform_indices = @transform_0, window_bounds = array<i64: 32, 8>}, {transform_indices = @transform_1, window_bounds = array<i64: 1, 8, 168>}, {transform_indices = @transform_2, window_bounds = array<i64: 1, 32, 168>}]} {
    %c0 = arith.constant 0 : index
    %c0_0 = arith.constant 0 : index
    %0 = vector.load %arg1[%c0, %c0_0] : memref<32x8xf32, #tpu.memory_space<vmem>>, vector<32x8xf32>
    %c0_1 = arith.constant 0 : index
    %c0_2 = arith.constant 0 : index
    %c0_3 = arith.constant 0 : index
    %1 = vector.load %arg2[%c0_1, %c0_2, %c0_3] : memref<1x8x168xf32, #tpu.memory_space<vmem>>, vector<1x8x168xf32>
    %2 = vector.shape_cast %1 : vector<1x8x168xf32> to vector<8x168xf32>
    %cst = arith.constant dense<0.000000e+00> : vector<32x168xf32>
    %3 = tpu.matmul %0, %2, %cst {dimension_numbers = #tpu.dot_dimension_numbers<[1], [0], [0], [1], [0, 0, 1, 1], [], []>} : vector<32x8xf32>, vector<8x168xf32>, vector<32x168xf32> -> vector<32x168xf32>
    %c0_4 = arith.constant 0 : index
    %c0_5 = arith.constant 0 : index
    %c0_6 = arith.constant 0 : index
    %4 = vector.load %arg3[%c0_4, %c0_5, %c0_6] : memref<1x32x168xf32, #tpu.memory_space<vmem>>, vector<1x32x168xf32>
    %5 = vector.shape_cast %4 : vector<1x32x168xf32> to vector<32x168xf32>
    %6 = vector.shape_cast %3 : vector<32x168xf32> to vector<1x32x168xf32>
    tpu.vector_store %arg3[%c0_4, %c0_5, %c0_6], %6 {strides = array<i32>} : memref<1x32x168xf32, #tpu.memory_space<vmem>>, vector<1x32x168xf32>,
    return
  }
  func.func @transform_0(%arg0: i32) -> (i32, i32) {
    %c0_i32 = arith.constant 0 : i32
    %c0_i32_0 = arith.constant 0 : i32
    %c0_i32_1 = arith.constant 0 : i32
    return %c0_i32, %c0_i32_0 : i32, i32
  }
  func.func @transform_1(%arg0: i32) -> (i32, i32, i32) {
    %c0_i32 = arith.constant 0 : i32
    %c0_i32_0 = arith.constant 0 : i32
    %c0_i32_1 = arith.constant 0 : i32
    return %arg0, %c0_i32, %c0_i32_0 : i32, i32, i32
  }
  func.func @transform_2(%arg0: i32) -> (i32, i32, i32) {
    %c0_i32 = arith.constant 0 : i32
    %c0_i32_0 = arith.constant 0 : i32
    %c0_i32_1 = arith.constant 0 : i32
    return %arg0, %c0_i32, %c0_i32_0 : i32, i32, i32
  }
}

module attributes {stable_mosaic.version = 11 : i64} {
  func.func @_upsample_cols_kernel(%arg0: i32, %arg1: i32, %arg2: memref<32x8xf32, #tpu.memory_space<vmem>>, %arg3: memref<1x8x8x21xf32, #tpu.memory_space<vmem>>, %arg4: memref<1x8x32x21xf32, #tpu.memory_space<vmem>>) attributes {dimension_semantics = [#tpu.dimension_semantics<parallel>, #tpu.dimension_semantics<parallel>], iteration_bounds = array<i64: 2, 4>, scalar_prefetch = 0 : i64, scratch_operands = 0 : i64, tpu.core_type = #tpu.core_type<tc>, window_params = [{pipeline_mode = #tpu.pipeline_mode<synchronous>, transform_indices = @transform_0, window_bounds = array<i64: 32, 8>}, {transform_indices = @transform_1, window_bounds = array<i64: 1, 8, 8, 21>}, {transform_indices = @transform_2, window_bounds = array<i64: 1, 8, 32, 21>}]} {
    %c0 = arith.constant 0 : index
    %c0_0 = arith.constant 0 : index
    %0 = vector.load %arg2[%c0, %c0_0] : memref<32x8xf32, #tpu.memory_space<vmem>>, vector<32x8xf32>
    %c0_1 = arith.constant 0 : index
    %c0_2 = arith.constant 0 : index
    %c0_3 = arith.constant 0 : index
    %c0_4 = arith.constant 0 : index
    %1 = vector.load %arg3[%c0_1, %c0_2, %c0_3, %c0_4] : memref<1x8x8x21xf32, #tpu.memory_space<vmem>>, vector<1x1x8x21xf32>
    %2 = vector.shape_cast %1 : vector<1x1x8x21xf32> to vector<8x21xf32>
    %cst = arith.constant dense<0.000000e+00> : vector<32x21xf32>
    %3 = tpu.matmul %0, %2, %cst {dimension_numbers = #tpu.dot_dimension_numbers<[1], [0], [0], [1], [0, 0, 1, 1], [], []>} : vector<32x8xf32>, vector<8x21xf32>, vector<32x21xf32> -> vector<32x21xf32>
    %c0_5 = arith.constant 0 : index
    %c0_6 = arith.constant 0 : index
    %c0_7 = arith.constant 0 : index
    %c0_8 = arith.constant 0 : index
    %4 = vector.load %arg4[%c0_5, %c0_6, %c0_7, %c0_8] : memref<1x8x32x21xf32, #tpu.memory_space<vmem>>, vector<1x1x32x21xf32>
    %5 = vector.shape_cast %4 : vector<1x1x32x21xf32> to vector<32x21xf32>
    %6 = vector.shape_cast %3 : vector<32x21xf32> to vector<1x1x32x21xf32>
    tpu.vector_store %arg4[%c0_5, %c0_6, %c0_7, %c0_8], %6 {strides = array<i32>} : memref<1x8x32x21xf32, #tpu.memory_space<vmem>>, vector<1x1x32x21xf32>,
    %c0_9 = arith.constant 0 : index
    %c1 = arith.constant 1 : index
    %c0_10 = arith.constant 0 : index
    %c0_11 = arith.constant 0 : index
    %7 = vector.load %arg3[%c0_9, %c1, %c0_10, %c0_11] : memref<1x8x8x21xf32, #tpu.memory_space<vmem>>, vector<1x1x8x21xf32>
    %8 = vector.shape_cast %7 : vector<1x1x8x21xf32> to vector<8x21xf32>
    %cst_12 = arith.constant dense<0.000000e+00> : vector<32x21xf32>
    %9 = tpu.matmul %0, %8, %cst_12 {dimension_numbers = #tpu.dot_dimension_numbers<[1], [0], [0], [1], [0, 0, 1, 1], [], []>} : vector<32x8xf32>, vector<8x21xf32>, vector<32x21xf32> -> vector<32x21xf32>
    %c0_13 = arith.constant 0 : index
    %c1_14 = arith.constant 1 : index
    %c0_15 = arith.constant 0 : index
    %c0_16 = arith.constant 0 : index
    %10 = vector.load %arg4[%c0_13, %c1_14, %c0_15, %c0_16] : memref<1x8x32x21xf32, #tpu.memory_space<vmem>>, vector<1x1x32x21xf32>
    %11 = vector.shape_cast %10 : vector<1x1x32x21xf32> to vector<32x21xf32>
    %12 = vector.shape_cast %9 : vector<32x21xf32> to vector<1x1x32x21xf32>
    tpu.vector_store %arg4[%c0_13, %c1_14, %c0_15, %c0_16], %12 {strides = array<i32>} : memref<1x8x32x21xf32, #tpu.memory_space<vmem>>, vector<1x1x32x21xf32>,
    %c0_17 = arith.constant 0 : index
    %c2 = arith.constant 2 : index
    %c0_18 = arith.constant 0 : index
    %c0_19 = arith.constant 0 : index
    %13 = vector.load %arg3[%c0_17, %c2, %c0_18, %c0_19] : memref<1x8x8x21xf32, #tpu.memory_space<vmem>>, vector<1x1x8x21xf32>
    %14 = vector.shape_cast %13 : vector<1x1x8x21xf32> to vector<8x21xf32>
    %cst_20 = arith.constant dense<0.000000e+00> : vector<32x21xf32>
    %15 = tpu.matmul %0, %14, %cst_20 {dimension_numbers = #tpu.dot_dimension_numbers<[1], [0], [0], [1], [0, 0, 1, 1], [], []>} : vector<32x8xf32>, vector<8x21xf32>, vector<32x21xf32> -> vector<32x21xf32>
    %c0_21 = arith.constant 0 : index
    %c2_22 = arith.constant 2 : index
    %c0_23 = arith.constant 0 : index
    %c0_24 = arith.constant 0 : index
    %16 = vector.load %arg4[%c0_21, %c2_22, %c0_23, %c0_24] : memref<1x8x32x21xf32, #tpu.memory_space<vmem>>, vector<1x1x32x21xf32>
    %17 = vector.shape_cast %16 : vector<1x1x32x21xf32> to vector<32x21xf32>
    %18 = vector.shape_cast %15 : vector<32x21xf32> to vector<1x1x32x21xf32>
    tpu.vector_store %arg4[%c0_21, %c2_22, %c0_23, %c0_24], %18 {strides = array<i32>} : memref<1x8x32x21xf32, #tpu.memory_space<vmem>>, vector<1x1x32x21xf32>,
    %c0_25 = arith.constant 0 : index
    %c3 = arith.constant 3 : index
    %c0_26 = arith.constant 0 : index
    %c0_27 = arith.constant 0 : index
    %19 = vector.load %arg3[%c0_25, %c3, %c0_26, %c0_27] : memref<1x8x8x21xf32, #tpu.memory_space<vmem>>, vector<1x1x8x21xf32>
    %20 = vector.shape_cast %19 : vector<1x1x8x21xf32> to vector<8x21xf32>
    %cst_28 = arith.constant dense<0.000000e+00> : vector<32x21xf32>
    %21 = tpu.matmul %0, %20, %cst_28 {dimension_numbers = #tpu.dot_dimension_numbers<[1], [0], [0], [1], [0, 0, 1, 1], [], []>} : vector<32x8xf32>, vector<8x21xf32>, vector<32x21xf32> -> vector<32x21xf32>
    %c0_29 = arith.constant 0 : index
    %c3_30 = arith.constant 3 : index
    %c0_31 = arith.constant 0 : index
    %c0_32 = arith.constant 0 : index
    %22 = vector.load %arg4[%c0_29, %c3_30, %c0_31, %c0_32] : memref<1x8x32x21xf32, #tpu.memory_space<vmem>>, vector<1x1x32x21xf32>
    %23 = vector.shape_cast %22 : vector<1x1x32x21xf32> to vector<32x21xf32>
    %24 = vector.shape_cast %21 : vector<32x21xf32> to vector<1x1x32x21xf32>
    tpu.vector_store %arg4[%c0_29, %c3_30, %c0_31, %c0_32], %24 {strides = array<i32>} : memref<1x8x32x21xf32, #tpu.memory_space<vmem>>, vector<1x1x32x21xf32>,
    %c0_33 = arith.constant 0 : index
    %c4 = arith.constant 4 : index
    %c0_34 = arith.constant 0 : index
    %c0_35 = arith.constant 0 : index
    %25 = vector.load %arg3[%c0_33, %c4, %c0_34, %c0_35] : memref<1x8x8x21xf32, #tpu.memory_space<vmem>>, vector<1x1x8x21xf32>
    %26 = vector.shape_cast %25 : vector<1x1x8x21xf32> to vector<8x21xf32>
    %cst_36 = arith.constant dense<0.000000e+00> : vector<32x21xf32>
    %27 = tpu.matmul %0, %26, %cst_36 {dimension_numbers = #tpu.dot_dimension_numbers<[1], [0], [0], [1], [0, 0, 1, 1], [], []>} : vector<32x8xf32>, vector<8x21xf32>, vector<32x21xf32> -> vector<32x21xf32>
    %c0_37 = arith.constant 0 : index
    %c4_38 = arith.constant 4 : index
    %c0_39 = arith.constant 0 : index
    %c0_40 = arith.constant 0 : index
    %28 = vector.load %arg4[%c0_37, %c4_38, %c0_39, %c0_40] : memref<1x8x32x21xf32, #tpu.memory_space<vmem>>, vector<1x1x32x21xf32>
    %29 = vector.shape_cast %28 : vector<1x1x32x21xf32> to vector<32x21xf32>
    %30 = vector.shape_cast %27 : vector<32x21xf32> to vector<1x1x32x21xf32>
    tpu.vector_store %arg4[%c0_37, %c4_38, %c0_39, %c0_40], %30 {strides = array<i32>} : memref<1x8x32x21xf32, #tpu.memory_space<vmem>>, vector<1x1x32x21xf32>,
    %c0_41 = arith.constant 0 : index
    %c5 = arith.constant 5 : index
    %c0_42 = arith.constant 0 : index
    %c0_43 = arith.constant 0 : index
    %31 = vector.load %arg3[%c0_41, %c5, %c0_42, %c0_43] : memref<1x8x8x21xf32, #tpu.memory_space<vmem>>, vector<1x1x8x21xf32>
    %32 = vector.shape_cast %31 : vector<1x1x8x21xf32> to vector<8x21xf32>
    %cst_44 = arith.constant dense<0.000000e+00> : vector<32x21xf32>
    %33 = tpu.matmul %0, %32, %cst_44 {dimension_numbers = #tpu.dot_dimension_numbers<[1], [0], [0], [1], [0, 0, 1, 1], [], []>} : vector<32x8xf32>, vector<8x21xf32>, vector<32x21xf32> -> vector<32x21xf32>
    %c0_45 = arith.constant 0 : index
    %c5_46 = arith.constant 5 : index
    %c0_47 = arith.constant 0 : index
    %c0_48 = arith.constant 0 : index
    %34 = vector.load %arg4[%c0_45, %c5_46, %c0_47, %c0_48] : memref<1x8x32x21xf32, #tpu.memory_space<vmem>>, vector<1x1x32x21xf32>
    %35 = vector.shape_cast %34 : vector<1x1x32x21xf32> to vector<32x21xf32>
    %36 = vector.shape_cast %33 : vector<32x21xf32> to vector<1x1x32x21xf32>
    tpu.vector_store %arg4[%c0_45, %c5_46, %c0_47, %c0_48], %36 {strides = array<i32>} : memref<1x8x32x21xf32, #tpu.memory_space<vmem>>, vector<1x1x32x21xf32>,
    %c0_49 = arith.constant 0 : index
    %c6 = arith.constant 6 : index
    %c0_50 = arith.constant 0 : index
    %c0_51 = arith.constant 0 : index
    %37 = vector.load %arg3[%c0_49, %c6, %c0_50, %c0_51] : memref<1x8x8x21xf32, #tpu.memory_space<vmem>>, vector<1x1x8x21xf32>
    %38 = vector.shape_cast %37 : vector<1x1x8x21xf32> to vector<8x21xf32>
    %cst_52 = arith.constant dense<0.000000e+00> : vector<32x21xf32>
    %39 = tpu.matmul %0, %38, %cst_52 {dimension_numbers = #tpu.dot_dimension_numbers<[1], [0], [0], [1], [0, 0, 1, 1], [], []>} : vector<32x8xf32>, vector<8x21xf32>, vector<32x21xf32> -> vector<32x21xf32>
    %c0_53 = arith.constant 0 : index
    %c6_54 = arith.constant 6 : index
    %c0_55 = arith.constant 0 : index
    %c0_56 = arith.constant 0 : index
    %40 = vector.load %arg4[%c0_53, %c6_54, %c0_55, %c0_56] : memref<1x8x32x21xf32, #tpu.memory_space<vmem>>, vector<1x1x32x21xf32>
    %41 = vector.shape_cast %40 : vector<1x1x32x21xf32> to vector<32x21xf32>
    %42 = vector.shape_cast %39 : vector<32x21xf32> to vector<1x1x32x21xf32>
    tpu.vector_store %arg4[%c0_53, %c6_54, %c0_55, %c0_56], %42 {strides = array<i32>} : memref<1x8x32x21xf32, #tpu.memory_space<vmem>>, vector<1x1x32x21xf32>,
    %c0_57 = arith.constant 0 : index
    %c7 = arith.constant 7 : index
    %c0_58 = arith.constant 0 : index
    %c0_59 = arith.constant 0 : index
    %43 = vector.load %arg3[%c0_57, %c7, %c0_58, %c0_59] : memref<1x8x8x21xf32, #tpu.memory_space<vmem>>, vector<1x1x8x21xf32>
    %44 = vector.shape_cast %43 : vector<1x1x8x21xf32> to vector<8x21xf32>
    %cst_60 = arith.constant dense<0.000000e+00> : vector<32x21xf32>
    %45 = tpu.matmul %0, %44, %cst_60 {dimension_numbers = #tpu.dot_dimension_numbers<[1], [0], [0], [1], [0, 0, 1, 1], [], []>} : vector<32x8xf32>, vector<8x21xf32>, vector<32x21xf32> -> vector<32x21xf32>
    %c0_61 = arith.constant 0 : index
    %c7_62 = arith.constant 7 : index
    %c0_63 = arith.constant 0 : index
    %c0_64 = arith.constant 0 : index
    %46 = vector.load %arg4[%c0_61, %c7_62, %c0_63, %c0_64] : memref<1x8x32x21xf32, #tpu.memory_space<vmem>>, vector<1x1x32x21xf32>
    %47 = vector.shape_cast %46 : vector<1x1x32x21xf32> to vector<32x21xf32>
    %48 = vector.shape_cast %45 : vector<32x21xf32> to vector<1x1x32x21xf32>
    tpu.vector_store %arg4[%c0_61, %c7_62, %c0_63, %c0_64], %48 {strides = array<i32>} : memref<1x8x32x21xf32, #tpu.memory_space<vmem>>, vector<1x1x32x21xf32>,
    return
  }
  func.func @transform_0(%arg0: i32, %arg1: i32) -> (i32, i32) {
    %c0_i32 = arith.constant 0 : i32
    %c0_i32_0 = arith.constant 0 : i32
    %c0_i32_1 = arith.constant 0 : i32
    return %c0_i32, %c0_i32_0 : i32, i32
  }
  func.func @transform_1(%arg0: i32, %arg1: i32) -> (i32, i32, i32, i32) {
    %c0_i32 = arith.constant 0 : i32
    %c0_i32_0 = arith.constant 0 : i32
    %c0_i32_1 = arith.constant 0 : i32
    return %arg0, %arg1, %c0_i32, %c0_i32_0 : i32, i32, i32, i32
  }
  func.func @transform_2(%arg0: i32, %arg1: i32) -> (i32, i32, i32, i32) {
    %c0_i32 = arith.constant 0 : i32
    %c0_i32_0 = arith.constant 0 : i32
    %c0_i32_1 = arith.constant 0 : i32
    return %arg0, %arg1, %c0_i32, %c0_i32_0 : i32, i32, i32, i32
  }
}

</mosaic_0001>

<bundles_post_ra>
// kernel: deeplab_forward.17
= control target key start
LH: loop header
LB: loop body
LE: loop exit
PB: predicated region body
PF: predicated region fallthrough
CT: control target
= control target key end

     0   :  { %vm135_vm0 = vcmask 1043456   ;;  %vm110_vm1 = vcmask 588800   ;;  %vm362_vm2 = vcmask 125952   ;;  %s680_s1 = inlined_call_operand.vmem [shape: bf16[72,16], index: 1, kind: input, shape index: {}]   ;;  %s681_s0 = inlined_call_operand.vmem [shape: bf16[128,72], index: 0, kind: input, shape index: {}]   ;;  %s682_s2 = inlined_call_operand.vmem [shape: f32[1,16], index: 2, kind: input, shape index: {}]   ;;  %s683_s3 = inlined_call_operand.vmem [shape: f32[1,16], index: 3, kind: input, shape index: {}]   ;;  %s684_s4 = inlined_call_operand.vmem [shape: bf16[128,16], index: 4, kind: output, shape index: {}]  }
   0x1   :  { %v489_v0 = vld [vmem:[%s680_s1 + $0x20] ss:$0 sps:$4 sm:$0xff]   ;;  %v490_v1 = vld [vmem:[%s680_s1 + $0x18] sm:$0xff]   ;;  %v491_v3 = vld [vmem:[%s680_s1 + $0x10] sm:$0xff]  }
   0x2   :  { %487 = vmatprep.subr.msk.bf16.mxu0 %vm135_vm0, %v489_v0  ;;  %488 = vmatprep.subr.msk.bf16.mxu1 %vm135_vm0, %v489_v0  ;;  %v137_v2 = vsel %vm135_vm0, %v489_v0, 0  ;;  %v494_v4 = vld [vmem:[%s681_s0] sm:$0xff]   ;;  %v492_v6 = vld [vmem:[%s680_s1 + $0x8] sm:$0xff]   ;;  %v498_v10 = vld [vmem:[%s681_s0 + $0x10] sm:$0xff]  }
   0x3   :  { %452 = vmatpush3.bf16.msra.mxu0 %v137_v2  ;;  %482 = vmatpush3.bf16.msra.mxu1 %v137_v2  ;;  %v495_v5 = vld [vmem:[%s681_s0 + $0x20] sm:$0xff]   ;;  %v496_v8 = vld [vmem:[%s681_s0 + $0x8] sm:$0xff]   ;;  %v499_v11 = vld [vmem:[%s681_s0 + $0x30] sm:$0xff]  }
   0x4   :  { %453 = vmatprep.subr.bf16.mxu0 %v490_v1  ;;  %478 = vmatprep.subr.bf16.mxu1 %v490_v1  ;;  %v493_v7 = vld [vmem:[%s680_s1] sm:$0xff]   ;;  %v497_v9 = vld [vmem:[%s681_s0 + $0x28] sm:$0xff]   ;;  %v500_v12 = vld [vmem:[%s681_s0 + $0x18] sm:$0xff]  }
   0x5   :  { %461 = vmatprep.mubr.msk.bf16.mxu0 %vm110_vm1, %v494_v4  ;;  %469 = vmatprep.mubr.msk.bf16.mxu1 %vm110_vm1, %v495_v5  ;;  %v501_v13 = vld [vmem:[%s681_s0 + $0x38] sm:$0xff]   ;;  %v577_v14 = vld [vmem:[%s682_s2] ss:$0 sm:$0xff] }
   0x6   :  { %v582_v16 = vld [vmem:[%s683_s3] ss:$0 sm:$0xff] }
   0x7   :  { %454 = vmatpush3.bf16.msra.mxu0 %v490_v1  ;;  %483 = vmatpush3.bf16.msra.mxu1 %v490_v1 }
   0x8   :  { %455 = vmatprep.subr.bf16.mxu0 %v491_v3  ;;  %479 = vmatprep.subr.bf16.mxu1 %v491_v3 }
   0xb   :  { %456 = vmatpush3.bf16.msra.mxu0 %v491_v3  ;;  %484 = vmatpush3.bf16.msra.mxu1 %v491_v3 }
   0xc   :  { %457 = vmatprep.subr.bf16.mxu0 %v492_v6  ;;  %480 = vmatprep.subr.bf16.mxu1 %v492_v6 }
   0xf   :  { %458 = vmatpush3.bf16.msra.mxu0 %v492_v6  ;;  %485 = vmatpush3.bf16.msra.mxu1 %v492_v6 }
  0x10   :  { %459 = vmatprep.subr.bf16.mxu0 %v493_v7  ;;  %481 = vmatprep.subr.bf16.mxu1 %v493_v7 }
  0x13   :  { %460 = vmatpush3.bf16.msra.mxu0 %v493_v7  ;;  %486 = vmatpush3.bf16.msra.mxu1 %v493_v7 }
  0x16   :  { %462 = vmatmul.mubr.msk.bf16.vlgmr.msra.gmra.mxu0 %vm110_vm1, %v496_v8  ;;  %470 = vmatmul.mubr.msk.bf16.vlgmr.msra.gmra.mxu1 %vm110_vm1, %v497_v9 }
  0x17   :  { %465 = vmatprep.mubr.msk.bf16.mxu0 %vm110_vm1, %v498_v10  ;;  %473 = vmatprep.mubr.msk.bf16.mxu1 %vm110_vm1, %v499_v11 }
  0x1e   :  { %466 = vmatmul.mubr.msk.bf16.gmra.mxu0 %vm110_vm1, %v500_v12  ;;  %474 = vmatmul.mubr.msk.bf16.gmra.mxu1 %vm110_vm1, %v501_v13 }
  0xd6   :  { %v463_v15 = vpop.f32.mrf.mxu0  ;;  %v471_v17 = vpop.f32.mrf.mxu1 }
  0xd7   :  { %v245_v18 = vmul.f32 %v463_v15, %v577_v14  ;;  %v253_v19 = vmul.f32 %v471_v17, %v577_v14 }
  0xd8   :  { %v173_v20 = vpop.f32.mrf.mxu0  ;;  %v205_v21 = vpop.f32.mrf.mxu1 }
  0xd9   :  { %v268_v22 = vadd.f32 %v582_v16, %v245_v18  ;;  %v276_v23 = vadd.f32 %v582_v16, %v253_v19  ;;  %v243_v24 = vmul.f32 %v577_v14, %v173_v20  ;;  %v251_v25 = vmul.f32 %v577_v14, %v205_v21 }
  0xda   :  { %v464_v26 = vpop.f32.mrf.mxu0  ;;  %v472_v27 = vpop.f32.mrf.mxu1 }
  0xdb   :  { %v284_v28 = vmax.f32 %v268_v22, 0.0  ;;  %v292_v29 = vmax.f32 %v276_v23, 0.0  ;;  %v266_v30 = vadd.f32 %v582_v16, %v243_v24  ;;  %v274_v31 = vadd.f32 %v582_v16, %v251_v25 }
  0xdc   :  { %v246_v32 = vmul.f32 %v464_v26, %v577_v14  ;;  %v254_v33 = vmul.f32 %v472_v27, %v577_v14  ;;  %v176_v34 = vpop.f32.mrf.mxu0  ;;  %v208_v35 = vpop.f32.mrf.mxu1 }
  0xdd   :  { %v424_v36 = vpack.c.bf16 %v284_v28, %v284_v28  ;;  %v432_v37 = vpack.c.bf16 %v292_v29, %v292_v29  ;;  %v282_v38 = vmax.f32 %v266_v30, 0.0  ;;  %v290_v39 = vmax.f32 %v274_v31, 0.0 }
  0xde   :  { %v269_v40 = vadd.f32 %v582_v16, %v246_v32  ;;  %v277_v41 = vadd.f32 %v582_v16, %v254_v33  ;;  %v244_v42 = vmul.f32 %v577_v14, %v176_v34  ;;  %v252_v43 = vmul.f32 %v577_v14, %v208_v35  ;;  %v467_v44 = vpop.f32.mrf.mxu0  ;;  %v475_v45 = vpop.f32.mrf.mxu1 }
  0xdf   :  { %365 = vst.msk [vmem:[%s684_s4 + $0x8] sm:$0xf] %vm362_vm2, %v424_v36  ;;  %373 = vst.msk [vmem:[%s684_s4 + $0x28] sm:$0xf] %vm362_vm2, %v432_v37  ;;  %v422_v46 = vpack.c.bf16 %v282_v38, %v282_v38  ;;  %v430_v47 = vpack.c.bf16 %v290_v39, %v290_v39  ;;  %v249_v48 = vmul.f32 %v467_v44, %v577_v14 }
  0xe0   :  { %v257_v49 = vmul.f32 %v475_v45, %v577_v14  ;;  %v285_v50 = vmax.f32 %v269_v40, 0.0  ;;  %v293_v51 = vmax.f32 %v277_v41, 0.0  ;;  %v267_v52 = vadd.f32 %v582_v16, %v244_v42  ;;  %v189_v54 = vpop.f32.mrf.mxu0  ;;  %v221_v55 = vpop.f32.mrf.mxu1 }
  0xe1   :  { %v275_v53 = vadd.f32 %v582_v16, %v252_v43  ;;  %363 = vst.msk [vmem:[%s684_s4] sm:$0xf] %vm362_vm2, %v422_v46  ;;  %371 = vst.msk [vmem:[%s684_s4 + $0x20] sm:$0xf] %vm362_vm2, %v430_v47  ;;  %v272_v56 = vadd.f32 %v582_v16, %v249_v48  ;;  %v247_v58 = vmul.f32 %v577_v14, %v189_v54 }
  0xe2   :  { %v280_v57 = vadd.f32 %v582_v16, %v257_v49  ;;  %v255_v59 = vmul.f32 %v577_v14, %v221_v55  ;;  %v425_v60 = vpack.c.bf16 %v285_v50, %v285_v50  ;;  %v433_v61 = vpack.c.bf16 %v293_v51, %v293_v51  ;;  %v468_v0 = vpop.f32.mrf.mxu0  ;;  %v476_v1 = vpop.f32.mrf.mxu1 }
  0xe3   :  { %v283_v62 = vmax.f32 %v267_v52, 0.0  ;;  %v291_v63 = vmax.f32 %v275_v53, 0.0  ;;  %v288_v2 = vmax.f32 %v272_v56, 0.0  ;;  %v270_v4 = vadd.f32 %v582_v16, %v247_v58 }
  0xe4   :  { %v296_v3 = vmax.f32 %v280_v57, 0.0  ;;  %v278_v5 = vadd.f32 %v582_v16, %v255_v59  ;;  %366 = vst.msk [vmem:[%s684_s4 + $0xc] sm:$0xf] %vm362_vm2, %v425_v60  ;;  %374 = vst.msk [vmem:[%s684_s4 + $0x2c] sm:$0xf] %vm362_vm2, %v433_v61  ;;  %v250_v8 = vmul.f32 %v468_v0, %v577_v14  ;;  %v258_v9 = vmul.f32 %v476_v1, %v577_v14  ;;  %v192_v10 = vpop.f32.mrf.mxu0  ;;  %v224_v11 = vpop.f32.mrf.mxu1 }
  0xe5   :  { %v423_v6 = vpack.c.bf16 %v283_v62, %v283_v62  ;;  %v431_v7 = vpack.c.bf16 %v291_v63, %v291_v63  ;;  %v428_v12 = vpack.c.bf16 %v288_v2, %v288_v2  ;;  %v286_v15 = vmax.f32 %v270_v4, 0.0 }
  0xe6   :  { %v436_v13 = vpack.c.bf16 %v296_v3, %v296_v3  ;;  %v294_v17 = vmax.f32 %v278_v5, 0.0  ;;  %v273_v18 = vadd.f32 %v582_v16, %v250_v8  ;;  %v281_v19 = vadd.f32 %v582_v16, %v258_v9 }
  0xe7   :  { %364 = vst.msk [vmem:[%s684_s4 + $0x4] sm:$0xf] %vm362_vm2, %v423_v6  ;;  %372 = vst.msk [vmem:[%s684_s4 + $0x24] sm:$0xf] %vm362_vm2, %v431_v7  ;;  %v248_v20 = vmul.f32 %v577_v14, %v192_v10  ;;  %v256_v21 = vmul.f32 %v577_v14, %v224_v11  ;;  %v426_v22 = vpack.c.bf16 %v286_v15, %v286_v15 }
  0xe8   :  { %369 = vst.msk [vmem:[%s684_s4 + $0x18] sm:$0xf] %vm362_vm2, %v428_v12  ;;  %377 = vst.msk [vmem:[%s684_s4 + $0x38] sm:$0xf] %vm362_vm2, %v436_v13  ;;  %v434_v23 = vpack.c.bf16 %v294_v17, %v294_v17  ;;  %v289_v24 = vmax.f32 %v273_v18, 0.0  ;;  %v297_v25 = vmax.f32 %v281_v19, 0.0 }
  0xe9   :  { %v271_v26 = vadd.f32 %v582_v16, %v248_v20  ;;  %v279_v27 = vadd.f32 %v582_v16, %v256_v21  ;;  %367 = vst.msk [vmem:[%s684_s4 + $0x10] sm:$0xf] %vm362_vm2, %v426_v22 }
  0xea   :  { %375 = vst.msk [vmem:[%s684_s4 + $0x30] sm:$0xf] %vm362_vm2, %v434_v23  ;;  %v429_v14 = vpack.c.bf16 %v289_v24, %v289_v24  ;;  %v437_v28 = vpack.c.bf16 %v297_v25, %v297_v25 }
  0xeb   :  { %v287_v29 = vmax.f32 %v271_v26, 0.0  ;;  %v295_v30 = vmax.f32 %v279_v27, 0.0 }
  0xec   :  { %370 = vst.msk [vmem:[%s684_s4 + $0x1c] sm:$0xf] %vm362_vm2, %v429_v14  ;;  %378 = vst.msk [vmem:[%s684_s4 + $0x3c] sm:$0xf] %vm362_vm2, %v437_v28 }
  0xed   :  { %v427_v16 = vpack.c.bf16 %v287_v29, %v287_v29  ;;  %v435_v31 = vpack.c.bf16 %v295_v30, %v295_v30 }
  0xef   :  { %368 = vst.msk [vmem:[%s684_s4 + $0x14] sm:$0xf] %vm362_vm2, %v427_v16  ;;  %376 = vst.msk [vmem:[%s684_s4 + $0x34] sm:$0xf] %vm362_vm2, %v435_v31 }

// kernel: deeplab_forward.24
= control target key start
LH: loop header
LB: loop body
LE: loop exit
PB: predicated region body
PF: predicated region fallthrough
CT: control target
= control target key end

     0   :  { %vm82_vm0 = vcmask 130048   ;;  %vm330_vm1 = vcmask 125952   ;;  %s606_s1 = inlined_call_operand.vmem [shape: bf16[16,16], index: 1, kind: input, shape index: {}]   ;;  %s607_s0 = inlined_call_operand.vmem [shape: bf16[128,16], index: 0, kind: input, shape index: {}]   ;;  %s608_s2 = inlined_call_operand.vmem [shape: f32[1,16], index: 2, kind: input, shape index: {}]   ;;  %s609_s3 = inlined_call_operand.vmem [shape: f32[1,16], index: 3, kind: input, shape index: {}]   ;;  %s610_s4 = inlined_call_operand.vmem [shape: bf16[128,16], index: 4, kind: output, shape index: {}]  }
   0x1   :  { %v431_v0 = vld [vmem:[%s606_s1] sm:$0xff]   ;;  %v434_v3 = vld [vmem:[%s607_s0 + $0x8] sm:$0xff]   ;;  %v436_v5 = vld [vmem:[%s607_s0 + $0x10] sm:$0xff]  }
   0x2   :  { %v432_v1 = vld [vmem:[%s607_s0] sm:$0xff]   ;;  %411 = vmatprep.subr.bf16.mxu0 %v431_v0  ;;  %429 = vmatprep.subr.bf16.mxu1 %v431_v0  ;;  %v435_v4 = vld [vmem:[%s607_s0 + $0x28] sm:$0xff]   ;;  %v437_v6 = vld [vmem:[%s607_s0 + $0x30] sm:$0xff]  }
   0x3   :  { %v433_v2 = vld [vmem:[%s607_s0 + $0x20] sm:$0xff]   ;;  %412 = vmatpush3.bf16.msra.mxu0 %v431_v0  ;;  %430 = vmatpush3.bf16.msra.mxu1 %v431_v0  ;;  %v438_v7 = vld [vmem:[%s607_s0 + $0x18] sm:$0xff]  }
   0x4   :  { %413 = vmatprep.mubr.msk.bf16.mxu0 %vm82_vm0, %v432_v1  ;;  %421 = vmatprep.mubr.msk.bf16.mxu1 %vm82_vm0, %v433_v2  ;;  %v439_v8 = vld [vmem:[%s607_s0 + $0x38] sm:$0xff]   ;;  %v503_v9 = vld [vmem:[%s608_s2] ss:$0 sm:$0xff] }
   0x5   :  { %v508_v11 = vld [vmem:[%s609_s3] ss:$0 sm:$0xff] }
   0x6   :  { %414 = vmatmul.mubr.msk.bf16.vlgmr.msra.gmra.mxu0 %vm82_vm0, %v434_v3  ;;  %422 = vmatmul.mubr.msk.bf16.vlgmr.msra.gmra.mxu1 %vm82_vm0, %v435_v4 }
   0x7   :  { %417 = vmatprep.mubr.msk.bf16.mxu0 %vm82_vm0, %v436_v5  ;;  %425 = vmatprep.mubr.msk.bf16.mxu1 %vm82_vm0, %v437_v6 }
   0xe   :  { %418 = vmatmul.mubr.msk.bf16.gmra.mxu0 %vm82_vm0, %v438_v7  ;;  %426 = vmatmul.mubr.msk.bf16.gmra.mxu1 %vm82_vm0, %v439_v8 }
  0xc6   :  { %v415_v10 = vpop.f32.mrf.mxu0  ;;  %v423_v12 = vpop.f32.mrf.mxu1 }
  0xc7   :  { %v213_v13 = vmul.f32 %v415_v10, %v503_v9  ;;  %v221_v14 = vmul.f32 %v423_v12, %v503_v9 }
  0xc8   :  { %v141_v15 = vpop.f32.mrf.mxu0  ;;  %v173_v16 = vpop.f32.mrf.mxu1 }
  0xc9   :  { %v236_v17 = vadd.f32 %v508_v11, %v213_v13  ;;  %v244_v18 = vadd.f32 %v508_v11, %v221_v14  ;;  %v211_v19 = vmul.f32 %v503_v9, %v141_v15  ;;  %v219_v20 = vmul.f32 %v503_v9, %v173_v16 }
  0xca   :  { %v416_v21 = vpop.f32.mrf.mxu0  ;;  %v424_v22 = vpop.f32.mrf.mxu1 }
  0xcb   :  { %v252_v23 = vmax.f32 %v236_v17, 0.0  ;;  %v260_v24 = vmax.f32 %v244_v18, 0.0  ;;  %v234_v25 = vadd.f32 %v508_v11, %v211_v19  ;;  %v242_v26 = vadd.f32 %v508_v11, %v219_v20 }
  0xcc   :  { %v214_v27 = vmul.f32 %v416_v21, %v503_v9  ;;  %v222_v28 = vmul.f32 %v424_v22, %v503_v9  ;;  %v144_v29 = vpop.f32.mrf.mxu0  ;;  %v176_v30 = vpop.f32.mrf.mxu1 }
  0xcd   :  { %v388_v31 = vpack.c.bf16 %v252_v23, %v252_v23  ;;  %v396_v32 = vpack.c.bf16 %v260_v24, %v260_v24  ;;  %v250_v33 = vmax.f32 %v234_v25, 0.0  ;;  %v258_v34 = vmax.f32 %v242_v26, 0.0 }
  0xce   :  { %v237_v35 = vadd.f32 %v508_v11, %v214_v27  ;;  %v245_v36 = vadd.f32 %v508_v11, %v222_v28  ;;  %v212_v37 = vmul.f32 %v503_v9, %v144_v29  ;;  %v220_v38 = vmul.f32 %v503_v9, %v176_v30  ;;  %v419_v39 = vpop.f32.mrf.mxu0  ;;  %v427_v40 = vpop.f32.mrf.mxu1 }
  0xcf   :  { %333 = vst.msk [vmem:[%s610_s4 + $0x8] sm:$0xf] %vm330_vm1, %v388_v31  ;;  %341 = vst.msk [vmem:[%s610_s4 + $0x28] sm:$0xf] %vm330_vm1, %v396_v32  ;;  %v386_v41 = vpack.c.bf16 %v250_v33, %v250_v33  ;;  %v394_v42 = vpack.c.bf16 %v258_v34, %v258_v34  ;;  %v217_v43 = vmul.f32 %v419_v39, %v503_v9 }
  0xd0   :  { %v225_v44 = vmul.f32 %v427_v40, %v503_v9  ;;  %v253_v45 = vmax.f32 %v237_v35, 0.0  ;;  %v261_v46 = vmax.f32 %v245_v36, 0.0  ;;  %v235_v47 = vadd.f32 %v508_v11, %v212_v37  ;;  %v157_v49 = vpop.f32.mrf.mxu0  ;;  %v189_v50 = vpop.f32.mrf.mxu1 }
  0xd1   :  { %v243_v48 = vadd.f32 %v508_v11, %v220_v38  ;;  %331 = vst.msk [vmem:[%s610_s4] sm:$0xf] %vm330_vm1, %v386_v41  ;;  %339 = vst.msk [vmem:[%s610_s4 + $0x20] sm:$0xf] %vm330_vm1, %v394_v42  ;;  %v240_v51 = vadd.f32 %v508_v11, %v217_v43  ;;  %v215_v53 = vmul.f32 %v503_v9, %v157_v49 }
  0xd2   :  { %v248_v52 = vadd.f32 %v508_v11, %v225_v44  ;;  %v223_v54 = vmul.f32 %v503_v9, %v189_v50  ;;  %v389_v55 = vpack.c.bf16 %v253_v45, %v253_v45  ;;  %v397_v56 = vpack.c.bf16 %v261_v46, %v261_v46  ;;  %v420_v59 = vpop.f32.mrf.mxu0  ;;  %v428_v60 = vpop.f32.mrf.mxu1 }
  0xd3   :  { %v251_v57 = vmax.f32 %v235_v47, 0.0  ;;  %v259_v58 = vmax.f32 %v243_v48, 0.0  ;;  %v256_v61 = vmax.f32 %v240_v51, 0.0  ;;  %v238_v63 = vadd.f32 %v508_v11, %v215_v53 }
  0xd4   :  { %v264_v62 = vmax.f32 %v248_v52, 0.0  ;;  %v246_v0 = vadd.f32 %v508_v11, %v223_v54  ;;  %334 = vst.msk [vmem:[%s610_s4 + $0xc] sm:$0xf] %vm330_vm1, %v389_v55  ;;  %342 = vst.msk [vmem:[%s610_s4 + $0x2c] sm:$0xf] %vm330_vm1, %v397_v56  ;;  %v218_v3 = vmul.f32 %v420_v59, %v503_v9  ;;  %v226_v4 = vmul.f32 %v428_v60, %v503_v9  ;;  %v160_v5 = vpop.f32.mrf.mxu0  ;;  %v192_v6 = vpop.f32.mrf.mxu1 }
  0xd5   :  { %v387_v1 = vpack.c.bf16 %v251_v57, %v251_v57  ;;  %v395_v2 = vpack.c.bf16 %v259_v58, %v259_v58  ;;  %v392_v7 = vpack.c.bf16 %v256_v61, %v256_v61  ;;  %v254_v10 = vmax.f32 %v238_v63, 0.0 }
  0xd6   :  { %v400_v8 = vpack.c.bf16 %v264_v62, %v264_v62  ;;  %v262_v12 = vmax.f32 %v246_v0, 0.0  ;;  %v241_v13 = vadd.f32 %v508_v11, %v218_v3  ;;  %v249_v14 = vadd.f32 %v508_v11, %v226_v4 }
  0xd7   :  { %332 = vst.msk [vmem:[%s610_s4 + $0x4] sm:$0xf] %vm330_vm1, %v387_v1  ;;  %340 = vst.msk [vmem:[%s610_s4 + $0x24] sm:$0xf] %vm330_vm1, %v395_v2  ;;  %v216_v15 = vmul.f32 %v503_v9, %v160_v5  ;;  %v224_v16 = vmul.f32 %v503_v9, %v192_v6  ;;  %v390_v17 = vpack.c.bf16 %v254_v10, %v254_v10 }
  0xd8   :  { %337 = vst.msk [vmem:[%s610_s4 + $0x18] sm:$0xf] %vm330_vm1, %v392_v7  ;;  %345 = vst.msk [vmem:[%s610_s4 + $0x38] sm:$0xf] %vm330_vm1, %v400_v8  ;;  %v398_v18 = vpack.c.bf16 %v262_v12, %v262_v12  ;;  %v257_v19 = vmax.f32 %v241_v13, 0.0  ;;  %v265_v20 = vmax.f32 %v249_v14, 0.0 }
  0xd9   :  { %v239_v21 = vadd.f32 %v508_v11, %v216_v15  ;;  %v247_v22 = vadd.f32 %v508_v11, %v224_v16  ;;  %335 = vst.msk [vmem:[%s610_s4 + $0x10] sm:$0xf] %vm330_vm1, %v390_v17 }
  0xda   :  { %343 = vst.msk [vmem:[%s610_s4 + $0x30] sm:$0xf] %vm330_vm1, %v398_v18  ;;  %v393_v9 = vpack.c.bf16 %v257_v19, %v257_v19  ;;  %v401_v23 = vpack.c.bf16 %v265_v20, %v265_v20 }
  0xdb   :  { %v255_v24 = vmax.f32 %v239_v21, 0.0  ;;  %v263_v25 = vmax.f32 %v247_v22, 0.0 }
  0xdc   :  { %338 = vst.msk [vmem:[%s610_s4 + $0x1c] sm:$0xf] %vm330_vm1, %v393_v9  ;;  %346 = vst.msk [vmem:[%s610_s4 + $0x3c] sm:$0xf] %vm330_vm1, %v401_v23 }
  0xdd   :  { %v391_v11 = vpack.c.bf16 %v255_v24, %v255_v24  ;;  %v399_v26 = vpack.c.bf16 %v263_v25, %v263_v25 }
  0xdf   :  { %336 = vst.msk [vmem:[%s610_s4 + $0x14] sm:$0xf] %vm330_vm1, %v391_v11  ;;  %344 = vst.msk [vmem:[%s610_s4 + $0x34] sm:$0xf] %vm330_vm1, %v399_v26 }

// kernel: deeplab_forward.16
= control target key start
LH: loop header
LB: loop body
LE: loop exit
PB: predicated region body
PF: predicated region fallthrough
CT: control target
= control target key end

     0   :  { %vm354_vm0 = vcmask 1044480   ;;  %vm355_vm1 = vcmask 1045504   ;;  %v1518_v1 = vmov 65535   ;;  %vm257_vm2 = vcmask 220160   ;;  %s2072_s1 = inlined_call_operand.vmem [shape: bf16[27,8], index: 1, kind: input, shape index: {}]   ;;  %s2073_s0 = inlined_call_operand.vmem [shape: bf16[512,27], index: 0, kind: input, shape index: {}]   ;;  %s2074_s2 = inlined_call_operand.vmem [shape: f32[1,8], index: 2, kind: input, shape index: {}]   ;;  %s2075_s3 = inlined_call_operand.vmem [shape: f32[1,8], index: 3, kind: input, shape index: {}]   ;;  %s2076_s4 = inlined_call_operand.vmem [shape: bf16[512,8], index: 4, kind: output, shape index: {}]  }
   0x1   :  { %v1484_v0 = vld [vmem:[%s2072_s1 + $0x8] sm:$0x3f]   ;;  %v356_v2 = vsel %vm354_vm0, 4294967295, %v1518_v1  ;;  %v1486_v4 = vld [vmem:[%s2073_s0] sm:$0xff]   ;;  %v1490_v10 = vld [vmem:[%s2073_s0 + $0x10] sm:$0xff]   ;;  %vm1112_vm3 = vcmask 60416  }
   0x2   :  { %v357_v3 = vsel %vm355_vm1, %v356_v2, 0  ;;  %v1485_v6 = vld [vmem:[%s2072_s1] sm:$0xff]   ;;  %1415 = vmatprep.mubr.msk.bf16.mxu0 %vm257_vm2, %v1486_v4  ;;  %v1488_v8 = vld [vmem:[%s2073_s0 + $0x8] sm:$0xff]   ;;  %v1491_v11 = vld [vmem:[%s2073_s0 + $0x90] sm:$0xff]  }
   0x3   :  { %v359_v5 = vand.u32 %v1484_v0, %v357_v3  ;;  %v1487_v7 = vld [vmem:[%s2073_s0 + $0x80] sm:$0xff]   ;;  %v1489_v9 = vld [vmem:[%s2073_s0 + $0x88] sm:$0xff]   ;;  %v1492_v12 = vld [vmem:[%s2073_s0 + $0x18] sm:$0xff]  }
   0x4   :  { %1447 = vmatprep.mubr.msk.bf16.mxu1 %vm257_vm2, %v1487_v7  ;;  %v1493_v13 = vld [vmem:[%s2073_s0 + $0x98] sm:$0xff]   ;;  %v1494_v14 = vld [vmem:[%s2073_s0 + $0x20] sm:$0xff]   ;;  %v1496_v16 = vld [vmem:[%s2073_s0 + $0x28] sm:$0xff]  }
   0x5   :  { %1411 = vmatprep.subr.bf16.mxu0 %v359_v5  ;;  %1479 = vmatprep.subr.bf16.mxu1 %v359_v5  ;;  %v1495_v15 = vld [vmem:[%s2073_s0 + $0xa0] sm:$0xff]   ;;  %v1497_v17 = vld [vmem:[%s2073_s0 + $0xa8] sm:$0xff]   ;;  %v1498_v18 = vld [vmem:[%s2073_s0 + $0x30] sm:$0xff]  }
   0x6   :  { %1412 = vmatpush3.bf16.msra.mxu0 %v359_v5  ;;  %1481 = vmatpush3.bf16.msra.mxu1 %v359_v5  ;;  %v1499_v19 = vld [vmem:[%s2073_s0 + $0xb0] sm:$0xff]   ;;  %v1500_v20 = vld [vmem:[%s2073_s0 + $0x38] sm:$0xff]   ;;  %v1502_v22 = vld [vmem:[%s2073_s0 + $0x40] sm:$0xff]  }
   0x7   :  { %1413 = vmatprep.subr.bf16.mxu0 %v1485_v6  ;;  %1480 = vmatprep.subr.bf16.mxu1 %v1485_v6  ;;  %v1501_v21 = vld [vmem:[%s2073_s0 + $0xb8] sm:$0xff]   ;;  %v1503_v23 = vld [vmem:[%s2073_s0 + $0xc0] sm:$0xff]   ;;  %v1504_v24 = vld [vmem:[%s2073_s0 + $0x48] sm:$0xff]  }
   0x8   :  { %v1505_v25 = vld [vmem:[%s2073_s0 + $0xc8] sm:$0xff]   ;;  %v1506_v26 = vld [vmem:[%s2073_s0 + $0x50] sm:$0xff]   ;;  %v1508_v28 = vld [vmem:[%s2073_s0 + $0x58] sm:$0xff]  }
   0x9   :  { %v1507_v27 = vld [vmem:[%s2073_s0 + $0xd0] sm:$0xff]   ;;  %v1509_v29 = vld [vmem:[%s2073_s0 + $0xd8] sm:$0xff]   ;;  %v1510_v30 = vld [vmem:[%s2073_s0 + $0x60] sm:$0xff]  }
   0xa   :  { %1414 = vmatpush3.bf16.msra.mxu0 %v1485_v6  ;;  %1482 = vmatpush3.bf16.msra.mxu1 %v1485_v6  ;;  %v1511_v31 = vld [vmem:[%s2073_s0 + $0xe0] sm:$0xff]   ;;  %v1512_v32 = vld [vmem:[%s2073_s0 + $0x68] sm:$0xff]   ;;  %v1514_v34 = vld [vmem:[%s2073_s0 + $0x70] sm:$0xff]  }
   0xb   :  { %v1513_v33 = vld [vmem:[%s2073_s0 + $0xe8] sm:$0xff]   ;;  %v1515_v35 = vld [vmem:[%s2073_s0 + $0xf0] sm:$0xff]   ;;  %v1516_v36 = vld [vmem:[%s2073_s0 + $0x78] sm:$0xff]  }
   0xc   :  { %v1517_v37 = vld [vmem:[%s2073_s0 + $0xf8] sm:$0xff]   ;;  %v1681_v38 = vld [vmem:[%s2074_s2] ss:$0 sm:$0xff] }
   0xd   :  { %1416 = vmatmul.mubr.msk.bf16.vlgmr.msra.gmra.mxu0 %vm257_vm2, %v1488_v8  ;;  %1448 = vmatmul.mubr.msk.bf16.vlgmr.msra.gmra.mxu1 %vm257_vm2, %v1489_v9  ;;  %v1686_v40 = vld [vmem:[%s2075_s3] ss:$0 sm:$0xff] }
   0xe   :  { %1419 = vmatprep.mubr.msk.bf16.mxu0 %vm257_vm2, %v1490_v10  ;;  %1451 = vmatprep.mubr.msk.bf16.mxu1 %vm257_vm2, %v1491_v11 }
  0x15   :  { %1420 = vmatmul.mubr.msk.bf16.gmra.mxu0 %vm257_vm2, %v1492_v12  ;;  %1452 = vmatmul.mubr.msk.bf16.gmra.mxu1 %vm257_vm2, %v1493_v13 }
  0x16   :  { %1423 = vmatprep.mubr.msk.bf16.mxu0 %vm257_vm2, %v1494_v14  ;;  %1455 = vmatprep.mubr.msk.bf16.mxu1 %vm257_vm2, %v1495_v15 }
  0x1d   :  { %1424 = vmatmul.mubr.msk.bf16.gmra.mxu0 %vm257_vm2, %v1496_v16  ;;  %1456 = vmatmul.mubr.msk.bf16.gmra.mxu1 %vm257_vm2, %v1497_v17 }
  0x1e   :  { %1427 = vmatprep.mubr.msk.bf16.mxu0 %vm257_vm2, %v1498_v18  ;;  %1459 = vmatprep.mubr.msk.bf16.mxu1 %vm257_vm2, %v1499_v19 }
  0x25   :  { %1428 = vmatmul.mubr.msk.bf16.gmra.mxu0 %vm257_vm2, %v1500_v20  ;;  %1460 = vmatmul.mubr.msk.bf16.gmra.mxu1 %vm257_vm2, %v1501_v21 }
  0x26   :  { %1431 = vmatprep.mubr.msk.bf16.mxu0 %vm257_vm2, %v1502_v22  ;;  %1463 = vmatprep.mubr.msk.bf16.mxu1 %vm257_vm2, %v1503_v23 }
  0x2d   :  { %1432 = vmatmul.mubr.msk.bf16.gmra.mxu0 %vm257_vm2, %v1504_v24  ;;  %1464 = vmatmul.mubr.msk.bf16.gmra.mxu1 %vm257_vm2, %v1505_v25 }
  0x2e   :  { %1435 = vmatprep.mubr.msk.bf16.mxu0 %vm257_vm2, %v1506_v26  ;;  %1467 = vmatprep.mubr.msk.bf16.mxu1 %vm257_vm2, %v1507_v27 }
  0x35   :  { %1436 = vmatmul.mubr.msk.bf16.gmra.mxu0 %vm257_vm2, %v1508_v28  ;;  %1468 = vmatmul.mubr.msk.bf16.gmra.mxu1 %vm257_vm2, %v1509_v29 }
  0x36   :  { %1439 = vmatprep.mubr.msk.bf16.mxu0 %vm257_vm2, %v1510_v30  ;;  %1471 = vmatprep.mubr.msk.bf16.mxu1 %vm257_vm2, %v1511_v31 }
  0x3d   :  { %1440 = vmatmul.mubr.msk.bf16.gmra.mxu0 %vm257_vm2, %v1512_v32  ;;  %1472 = vmatmul.mubr.msk.bf16.gmra.mxu1 %vm257_vm2, %v1513_v33 }
  0x3e   :  { %1443 = vmatprep.mubr.msk.bf16.mxu0 %vm257_vm2, %v1514_v34  ;;  %1475 = vmatprep.mubr.msk.bf16.mxu1 %vm257_vm2, %v1515_v35 }
  0x45   :  { %1444 = vmatmul.mubr.msk.bf16.gmra.mxu0 %vm257_vm2, %v1516_v36  ;;  %1476 = vmatmul.mubr.msk.bf16.gmra.mxu1 %vm257_vm2, %v1517_v37 }
  0xcd   :  { %v1417_v39 = vpop.f32.mrf.mxu0  ;;  %v1449_v41 = vpop.f32.mrf.mxu1 }
  0xce   :  { %v659_v42 = vmul.f32 %v1417_v39, %v1681_v38  ;;  %v691_v43 = vmul.f32 %v1449_v41, %v1681_v38 }
  0xcf   :  { %v395_v44 = vpop.f32.mrf.mxu0  ;;  %v523_v45 = vpop.f32.mrf.mxu1 }
  0xd0   :  { %v730_v46 = vadd.f32 %v1686_v40, %v659_v42  ;;  %v762_v47 = vadd.f32 %v1686_v40, %v691_v43  ;;  %v657_v48 = vmul.f32 %v1681_v38, %v395_v44  ;;  %v689_v49 = vmul.f32 %v1681_v38, %v523_v45 }
  0xd1   :  { %v1418_v50 = vpop.f32.mrf.mxu0  ;;  %v1450_v51 = vpop.f32.mrf.mxu1 }
  0xd2   :  { %v794_v52 = vmax.f32 %v730_v46, 0.0  ;;  %v826_v53 = vmax.f32 %v762_v47, 0.0  ;;  %v728_v54 = vadd.f32 %v1686_v40, %v657_v48  ;;  %v760_v55 = vadd.f32 %v1686_v40, %v689_v49 }
  0xd3   :  { %v660_v56 = vmul.f32 %v1418_v50, %v1681_v38  ;;  %v692_v57 = vmul.f32 %v1450_v51, %v1681_v38  ;;  %v398_v58 = vpop.f32.mrf.mxu0  ;;  %v526_v59 = vpop.f32.mrf.mxu1 }
  0xd4   :  { %v1315_v60 = vpack.c.bf16 %v794_v52, %v794_v52  ;;  %v1347_v61 = vpack.c.bf16 %v826_v53, %v826_v53  ;;  %v792_v62 = vmax.f32 %v728_v54, 0.0  ;;  %v824_v63 = vmax.f32 %v760_v55, 0.0 }
  0xd5   :  { %v731_v0 = vadd.f32 %v1686_v40, %v660_v56  ;;  %v763_v1 = vadd.f32 %v1686_v40, %v692_v57  ;;  %v658_v2 = vmul.f32 %v1681_v38, %v398_v58  ;;  %v690_v3 = vmul.f32 %v1681_v38, %v526_v59  ;;  %v1421_v4 = vpop.f32.mrf.mxu0  ;;  %v1453_v5 = vpop.f32.mrf.mxu1 }
  0xd6   :  { %1115 = vst.msk [vmem:[%s2076_s4 + $0x8] sm:$0xf] %vm1112_vm3, %v1315_v60  ;;  %1147 = vst.msk [vmem:[%s2076_s4 + $0x88] sm:$0xf] %vm1112_vm3, %v1347_v61  ;;  %v1313_v6 = vpack.c.bf16 %v792_v62, %v792_v62  ;;  %v1345_v7 = vpack.c.bf16 %v824_v63, %v824_v63  ;;  %v663_v8 = vmul.f32 %v1421_v4, %v1681_v38 }
  0xd7   :  { %v695_v9 = vmul.f32 %v1453_v5, %v1681_v38  ;;  %v795_v10 = vmax.f32 %v731_v0, 0.0  ;;  %v827_v11 = vmax.f32 %v763_v1, 0.0  ;;  %v729_v12 = vadd.f32 %v1686_v40, %v658_v2  ;;  %v411_v14 = vpop.f32.mrf.mxu0  ;;  %v539_v15 = vpop.f32.mrf.mxu1 }
  0xd8   :  { %v761_v13 = vadd.f32 %v1686_v40, %v690_v3  ;;  %1113 = vst.msk [vmem:[%s2076_s4] sm:$0xf] %vm1112_vm3, %v1313_v6  ;;  %1145 = vst.msk [vmem:[%s2076_s4 + $0x80] sm:$0xf] %vm1112_vm3, %v1345_v7  ;;  %v734_v16 = vadd.f32 %v1686_v40, %v663_v8  ;;  %v661_v18 = vmul.f32 %v1681_v38, %v411_v14 }
  0xd9   :  { %v766_v17 = vadd.f32 %v1686_v40, %v695_v9  ;;  %v693_v19 = vmul.f32 %v1681_v38, %v539_v15  ;;  %v1316_v20 = vpack.c.bf16 %v795_v10, %v795_v10  ;;  %v1348_v21 = vpack.c.bf16 %v827_v11, %v827_v11  ;;  %v1422_v24 = vpop.f32.mrf.mxu0  ;;  %v1454_v25 = vpop.f32.mrf.mxu1 }
  0xda   :  { %v793_v22 = vmax.f32 %v729_v12, 0.0  ;;  %v825_v23 = vmax.f32 %v761_v13, 0.0  ;;  %v798_v26 = vmax.f32 %v734_v16, 0.0  ;;  %v732_v28 = vadd.f32 %v1686_v40, %v661_v18 }
  0xdb   :  { %v830_v27 = vmax.f32 %v766_v17, 0.0  ;;  %v764_v29 = vadd.f32 %v1686_v40, %v693_v19  ;;  %1116 = vst.msk [vmem:[%s2076_s4 + $0xc] sm:$0xf] %vm1112_vm3, %v1316_v20  ;;  %1148 = vst.msk [vmem:[%s2076_s4 + $0x8c] sm:$0xf] %vm1112_vm3, %v1348_v21  ;;  %v664_v32 = vmul.f32 %v1422_v24, %v1681_v38  ;;  %v696_v33 = vmul.f32 %v1454_v25, %v1681_v38  ;;  %v414_v34 = vpop.f32.mrf.mxu0  ;;  %v542_v35 = vpop.f32.mrf.mxu1 }
  0xdc   :  { %v1314_v30 = vpack.c.bf16 %v793_v22, %v793_v22  ;;  %v1346_v31 = vpack.c.bf16 %v825_v23, %v825_v23  ;;  %v1319_v36 = vpack.c.bf16 %v798_v26, %v798_v26  ;;  %v796_v39 = vmax.f32 %v732_v28, 0.0 }
  0xdd   :  { %v1351_v37 = vpack.c.bf16 %v830_v27, %v830_v27  ;;  %v828_v41 = vmax.f32 %v764_v29, 0.0  ;;  %v735_v42 = vadd.f32 %v1686_v40, %v664_v32  ;;  %v767_v43 = vadd.f32 %v1686_v40, %v696_v33  ;;  %v1425_v46 = vpop.f32.mrf.mxu0  ;;  %v1457_v47 = vpop.f32.mrf.mxu1 }
  0xde   :  { %1114 = vst.msk [vmem:[%s2076_s4 + $0x4] sm:$0xf] %vm1112_vm3, %v1314_v30  ;;  %1146 = vst.msk [vmem:[%s2076_s4 + $0x84] sm:$0xf] %vm1112_vm3, %v1346_v31  ;;  %v662_v44 = vmul.f32 %v1681_v38, %v414_v34  ;;  %v694_v45 = vmul.f32 %v1681_v38, %v542_v35  ;;  %v1317_v48 = vpack.c.bf16 %v796_v39, %v796_v39 }
  0xdf   :  { %1119 = vst.msk [vmem:[%s2076_s4 + $0x18] sm:$0xf] %vm1112_vm3, %v1319_v36  ;;  %1151 = vst.msk [vmem:[%s2076_s4 + $0x98] sm:$0xf] %vm1112_vm3, %v1351_v37  ;;  %v1349_v49 = vpack.c.bf16 %v828_v41, %v828_v41  ;;  %v667_v50 = vmul.f32 %v1425_v46, %v1681_v38  ;;  %v699_v51 = vmul.f32 %v1457_v47, %v1681_v38  ;;  %v799_v52 = vmax.f32 %v735_v42, 0.0  ;;  %v427_v56 = vpop.f32.mrf.mxu0  ;;  %v555_v57 = vpop.f32.mrf.mxu1 }
  0xe0   :  { %v831_v53 = vmax.f32 %v767_v43, 0.0  ;;  %v733_v54 = vadd.f32 %v1686_v40, %v662_v44  ;;  %v765_v55 = vadd.f32 %v1686_v40, %v694_v45  ;;  %1117 = vst.msk [vmem:[%s2076_s4 + $0x10] sm:$0xf] %vm1112_vm3, %v1317_v48  ;;  %v665_v60 = vmul.f32 %v1681_v38, %v427_v56 }
  0xe1   :  { %1149 = vst.msk [vmem:[%s2076_s4 + $0x90] sm:$0xf] %vm1112_vm3, %v1349_v49  ;;  %v738_v58 = vadd.f32 %v1686_v40, %v667_v50  ;;  %v770_v59 = vadd.f32 %v1686_v40, %v699_v51  ;;  %v697_v61 = vmul.f32 %v1681_v38, %v555_v57  ;;  %v1320_v62 = vpack.c.bf16 %v799_v52, %v799_v52  ;;  %v1426_v2 = vpop.f32.mrf.mxu0  ;;  %v1458_v3 = vpop.f32.mrf.mxu1 }
  0xe2   :  { %v1352_v63 = vpack.c.bf16 %v831_v53, %v831_v53  ;;  %v797_v0 = vmax.f32 %v733_v54, 0.0  ;;  %v829_v1 = vmax.f32 %v765_v55, 0.0  ;;  %v736_v6 = vadd.f32 %v1686_v40, %v665_v60 }
  0xe3   :  { %v802_v4 = vmax.f32 %v738_v58, 0.0  ;;  %v834_v5 = vmax.f32 %v770_v59, 0.0  ;;  %v768_v7 = vadd.f32 %v1686_v40, %v697_v61  ;;  %1120 = vst.msk [vmem:[%s2076_s4 + $0x1c] sm:$0xf] %vm1112_vm3, %v1320_v62  ;;  %v668_v10 = vmul.f32 %v1426_v2, %v1681_v38  ;;  %v430_v12 = vpop.f32.mrf.mxu0  ;;  %v558_v13 = vpop.f32.mrf.mxu1 }
  0xe4   :  { %1152 = vst.msk [vmem:[%s2076_s4 + $0x9c] sm:$0xf] %vm1112_vm3, %v1352_v63  ;;  %v1318_v8 = vpack.c.bf16 %v797_v0, %v797_v0  ;;  %v1350_v9 = vpack.c.bf16 %v829_v1, %v829_v1  ;;  %v700_v11 = vmul.f32 %v1458_v3, %v1681_v38  ;;  %v800_v16 = vmax.f32 %v736_v6, 0.0 }
  0xe5   :  { %v1323_v14 = vpack.c.bf16 %v802_v4, %v802_v4  ;;  %v1355_v15 = vpack.c.bf16 %v834_v5, %v834_v5  ;;  %v832_v17 = vmax.f32 %v768_v7, 0.0  ;;  %v739_v18 = vadd.f32 %v1686_v40, %v668_v10  ;;  %v1429_v22 = vpop.f32.mrf.mxu0  ;;  %v1461_v23 = vpop.f32.mrf.mxu1 }
  0xe6   :  { %1118 = vst.msk [vmem:[%s2076_s4 + $0x14] sm:$0xf] %vm1112_vm3, %v1318_v8  ;;  %1150 = vst.msk [vmem:[%s2076_s4 + $0x94] sm:$0xf] %vm1112_vm3, %v1350_v9  ;;  %v771_v19 = vadd.f32 %v1686_v40, %v700_v11  ;;  %v666_v20 = vmul.f32 %v1681_v38, %v430_v12  ;;  %v698_v21 = vmul.f32 %v1681_v38, %v558_v13 }
  0xe7   :  { %1123 = vst.msk [vmem:[%s2076_s4 + $0x28] sm:$0xf] %vm1112_vm3, %v1323_v14  ;;  %1155 = vst.msk [vmem:[%s2076_s4 + $0xa8] sm:$0xf] %vm1112_vm3, %v1355_v15  ;;  %v1321_v24 = vpack.c.bf16 %v800_v16, %v800_v16  ;;  %v1353_v25 = vpack.c.bf16 %v832_v17, %v832_v17  ;;  %v671_v26 = vmul.f32 %v1429_v22, %v1681_v38  ;;  %v803_v28 = vmax.f32 %v739_v18, 0.0  ;;  %v443_v32 = vpop.f32.mrf.mxu0  ;;  %v571_v33 = vpop.f32.mrf.mxu1 }
  0xe8   :  { %v703_v27 = vmul.f32 %v1461_v23, %v1681_v38  ;;  %v835_v29 = vmax.f32 %v771_v19, 0.0  ;;  %v737_v30 = vadd.f32 %v1686_v40, %v666_v20  ;;  %v769_v31 = vadd.f32 %v1686_v40, %v698_v21 }
  0xe9   :  { %1121 = vst.msk [vmem:[%s2076_s4 + $0x20] sm:$0xf] %vm1112_vm3, %v1321_v24  ;;  %1153 = vst.msk [vmem:[%s2076_s4 + $0xa0] sm:$0xf] %vm1112_vm3, %v1353_v25  ;;  %v742_v34 = vadd.f32 %v1686_v40, %v671_v26  ;;  %v669_v36 = vmul.f32 %v1681_v38, %v443_v32  ;;  %v701_v37 = vmul.f32 %v1681_v38, %v571_v33  ;;  %v1430_v44 = vpop.f32.mrf.mxu0  ;;  %v1462_v45 = vpop.f32.mrf.mxu1 }
  0xea   :  { %v774_v35 = vadd.f32 %v1686_v40, %v703_v27  ;;  %v1324_v39 = vpack.c.bf16 %v803_v28, %v803_v28  ;;  %v1356_v41 = vpack.c.bf16 %v835_v29, %v835_v29  ;;  %v801_v42 = vmax.f32 %v737_v30, 0.0 }
  0xeb   :  { %v833_v43 = vmax.f32 %v769_v31, 0.0  ;;  %v806_v46 = vmax.f32 %v742_v34, 0.0  ;;  %v740_v48 = vadd.f32 %v1686_v40, %v669_v36  ;;  %v772_v49 = vadd.f32 %v1686_v40, %v701_v37  ;;  %v446_v54 = vpop.f32.mrf.mxu0  ;;  %v574_v55 = vpop.f32.mrf.mxu1 }
  0xec   :  { %v838_v47 = vmax.f32 %v774_v35, 0.0  ;;  %1124 = vst.msk [vmem:[%s2076_s4 + $0x2c] sm:$0xf] %vm1112_vm3, %v1324_v39  ;;  %1156 = vst.msk [vmem:[%s2076_s4 + $0xac] sm:$0xf] %vm1112_vm3, %v1356_v41  ;;  %v1322_v50 = vpack.c.bf16 %v801_v42, %v801_v42  ;;  %v672_v52 = vmul.f32 %v1430_v44, %v1681_v38  ;;  %v704_v53 = vmul.f32 %v1462_v45, %v1681_v38 }
  0xed   :  { %v1354_v51 = vpack.c.bf16 %v833_v43, %v833_v43  ;;  %v1327_v56 = vpack.c.bf16 %v806_v46, %v806_v46  ;;  %v804_v58 = vmax.f32 %v740_v48, 0.0  ;;  %v836_v59 = vmax.f32 %v772_v49, 0.0  ;;  %v1433_v0 = vpop.f32.mrf.mxu0  ;;  %v1465_v1 = vpop.f32.mrf.mxu1 }
  0xee   :  { %v1359_v57 = vpack.c.bf16 %v838_v47, %v838_v47  ;;  %1122 = vst.msk [vmem:[%s2076_s4 + $0x24] sm:$0xf] %vm1112_vm3, %v1322_v50  ;;  %v743_v60 = vadd.f32 %v1686_v40, %v672_v52  ;;  %v775_v61 = vadd.f32 %v1686_v40, %v704_v53  ;;  %v670_v62 = vmul.f32 %v1681_v38, %v446_v54 }
  0xef   :  { %1154 = vst.msk [vmem:[%s2076_s4 + $0xa4] sm:$0xf] %vm1112_vm3, %v1354_v51  ;;  %v702_v63 = vmul.f32 %v1681_v38, %v574_v55  ;;  %1127 = vst.msk [vmem:[%s2076_s4 + $0x38] sm:$0xf] %vm1112_vm3, %v1327_v56  ;;  %v1325_v2 = vpack.c.bf16 %v804_v58, %v804_v58  ;;  %v1357_v3 = vpack.c.bf16 %v836_v59, %v836_v59  ;;  %v459_v10 = vpop.f32.mrf.mxu0  ;;  %v587_v11 = vpop.f32.mrf.mxu1 }
  0xf0   :  { %1159 = vst.msk [vmem:[%s2076_s4 + $0xb8] sm:$0xf] %vm1112_vm3, %v1359_v57  ;;  %v675_v4 = vmul.f32 %v1433_v0, %v1681_v38  ;;  %v707_v5 = vmul.f32 %v1465_v1, %v1681_v38  ;;  %v807_v6 = vmax.f32 %v743_v60, 0.0  ;;  %v839_v7 = vmax.f32 %v775_v61, 0.0 }
  0xf1   :  { %v741_v8 = vadd.f32 %v1686_v40, %v670_v62  ;;  %v773_v9 = vadd.f32 %v1686_v40, %v702_v63  ;;  %1125 = vst.msk [vmem:[%s2076_s4 + $0x30] sm:$0xf] %vm1112_vm3, %v1325_v2  ;;  %1157 = vst.msk [vmem:[%s2076_s4 + $0xb0] sm:$0xf] %vm1112_vm3, %v1357_v3  ;;  %v673_v14 = vmul.f32 %v1681_v38, %v459_v10  ;;  %v1434_v20 = vpop.f32.mrf.mxu0  ;;  %v1466_v21 = vpop.f32.mrf.mxu1 }
  0xf2   :  { %v746_v12 = vadd.f32 %v1686_v40, %v675_v4  ;;  %v778_v13 = vadd.f32 %v1686_v40, %v707_v5  ;;  %v705_v15 = vmul.f32 %v1681_v38, %v587_v11  ;;  %v1328_v16 = vpack.c.bf16 %v807_v6, %v807_v6 }
  0xf3   :  { %v1360_v17 = vpack.c.bf16 %v839_v7, %v839_v7  ;;  %v805_v18 = vmax.f32 %v741_v8, 0.0  ;;  %v837_v19 = vmax.f32 %v773_v9, 0.0  ;;  %v744_v24 = vadd.f32 %v1686_v40, %v673_v14  ;;  %v462_v30 = vpop.f32.mrf.mxu0  ;;  %v590_v31 = vpop.f32.mrf.mxu1 }
  0xf4   :  { %v810_v22 = vmax.f32 %v746_v12, 0.0  ;;  %v842_v23 = vmax.f32 %v778_v13, 0.0  ;;  %v776_v25 = vadd.f32 %v1686_v40, %v705_v15  ;;  %1128 = vst.msk [vmem:[%s2076_s4 + $0x3c] sm:$0xf] %vm1112_vm3, %v1328_v16  ;;  %v676_v28 = vmul.f32 %v1434_v20, %v1681_v38 }
  0xf5   :  { %1160 = vst.msk [vmem:[%s2076_s4 + $0xbc] sm:$0xf] %vm1112_vm3, %v1360_v17  ;;  %v1326_v26 = vpack.c.bf16 %v805_v18, %v805_v18  ;;  %v1358_v27 = vpack.c.bf16 %v837_v19, %v837_v19  ;;  %v708_v29 = vmul.f32 %v1466_v21, %v1681_v38  ;;  %v808_v34 = vmax.f32 %v744_v24, 0.0  ;;  %v1437_v42 = vpop.f32.mrf.mxu0  ;;  %v1469_v43 = vpop.f32.mrf.mxu1 }
  0xf6   :  { %v1331_v32 = vpack.c.bf16 %v810_v22, %v810_v22  ;;  %v1363_v33 = vpack.c.bf16 %v842_v23, %v842_v23  ;;  %v840_v35 = vmax.f32 %v776_v25, 0.0  ;;  %v747_v36 = vadd.f32 %v1686_v40, %v676_v28 }
  0xf7   :  { %1126 = vst.msk [vmem:[%s2076_s4 + $0x34] sm:$0xf] %vm1112_vm3, %v1326_v26  ;;  %1158 = vst.msk [vmem:[%s2076_s4 + $0xb4] sm:$0xf] %vm1112_vm3, %v1358_v27  ;;  %v779_v37 = vadd.f32 %v1686_v40, %v708_v29  ;;  %v674_v39 = vmul.f32 %v1681_v38, %v462_v30  ;;  %v706_v41 = vmul.f32 %v1681_v38, %v590_v31  ;;  %v475_v52 = vpop.f32.mrf.mxu0  ;;  %v603_v53 = vpop.f32.mrf.mxu1 }
  0xf8   :  { %1131 = vst.msk [vmem:[%s2076_s4 + $0x48] sm:$0xf] %vm1112_vm3, %v1331_v32  ;;  %1163 = vst.msk [vmem:[%s2076_s4 + $0xc8] sm:$0xf] %vm1112_vm3, %v1363_v33  ;;  %v1329_v44 = vpack.c.bf16 %v808_v34, %v808_v34  ;;  %v1361_v45 = vpack.c.bf16 %v840_v35, %v840_v35  ;;  %v679_v46 = vmul.f32 %v1437_v42, %v1681_v38  ;;  %v811_v48 = vmax.f32 %v747_v36, 0.0 }
  0xf9   :  { %v711_v47 = vmul.f32 %v1469_v43, %v1681_v38  ;;  %v843_v49 = vmax.f32 %v779_v37, 0.0  ;;  %v745_v50 = vadd.f32 %v1686_v40, %v674_v39  ;;  %v777_v51 = vadd.f32 %v1686_v40, %v706_v41  ;;  %v1438_v62 = vpop.f32.mrf.mxu0  ;;  %v1470_v63 = vpop.f32.mrf.mxu1 }
  0xfa   :  { %1129 = vst.msk [vmem:[%s2076_s4 + $0x40] sm:$0xf] %vm1112_vm3, %v1329_v44  ;;  %1161 = vst.msk [vmem:[%s2076_s4 + $0xc0] sm:$0xf] %vm1112_vm3, %v1361_v45  ;;  %v750_v54 = vadd.f32 %v1686_v40, %v679_v46  ;;  %v677_v56 = vmul.f32 %v1681_v38, %v475_v52  ;;  %v709_v57 = vmul.f32 %v1681_v38, %v603_v53 }
  0xfb   :  { %v782_v55 = vadd.f32 %v1686_v40, %v711_v47  ;;  %v1332_v58 = vpack.c.bf16 %v811_v48, %v811_v48  ;;  %v1364_v59 = vpack.c.bf16 %v843_v49, %v843_v49  ;;  %v809_v60 = vmax.f32 %v745_v50, 0.0  ;;  %v478_v8 = vpop.f32.mrf.mxu0  ;;  %v606_v9 = vpop.f32.mrf.mxu1 }
  0xfc   :  { %v841_v61 = vmax.f32 %v777_v51, 0.0  ;;  %v814_v0 = vmax.f32 %v750_v54, 0.0  ;;  %v748_v2 = vadd.f32 %v1686_v40, %v677_v56  ;;  %v780_v3 = vadd.f32 %v1686_v40, %v709_v57 }
  0xfd   :  { %v846_v1 = vmax.f32 %v782_v55, 0.0  ;;  %1132 = vst.msk [vmem:[%s2076_s4 + $0x4c] sm:$0xf] %vm1112_vm3, %v1332_v58  ;;  %1164 = vst.msk [vmem:[%s2076_s4 + $0xcc] sm:$0xf] %vm1112_vm3, %v1364_v59  ;;  %v1330_v4 = vpack.c.bf16 %v809_v60, %v809_v60  ;;  %v680_v6 = vmul.f32 %v1438_v62, %v1681_v38  ;;  %v712_v7 = vmul.f32 %v1470_v63, %v1681_v38  ;;  %v1441_v18 = vpop.f32.mrf.mxu0  ;;  %v1473_v19 = vpop.f32.mrf.mxu1 }
  0xfe   :  { %v1362_v5 = vpack.c.bf16 %v841_v61, %v841_v61  ;;  %v1335_v10 = vpack.c.bf16 %v814_v0, %v814_v0  ;;  %v812_v12 = vmax.f32 %v748_v2, 0.0  ;;  %v844_v13 = vmax.f32 %v780_v3, 0.0 }
  0xff   :  { %v1367_v11 = vpack.c.bf16 %v846_v1, %v846_v1  ;;  %1130 = vst.msk [vmem:[%s2076_s4 + $0x44] sm:$0xf] %vm1112_vm3, %v1330_v4  ;;  %v751_v14 = vadd.f32 %v1686_v40, %v680_v6  ;;  %v783_v15 = vadd.f32 %v1686_v40, %v712_v7  ;;  %v678_v16 = vmul.f32 %v1681_v38, %v478_v8  ;;  %v491_v28 = vpop.f32.mrf.mxu0  ;;  %v619_v29 = vpop.f32.mrf.mxu1 }
 0x100   :  { %1162 = vst.msk [vmem:[%s2076_s4 + $0xc4] sm:$0xf] %vm1112_vm3, %v1362_v5  ;;  %v710_v17 = vmul.f32 %v1681_v38, %v606_v9  ;;  %1135 = vst.msk [vmem:[%s2076_s4 + $0x58] sm:$0xf] %vm1112_vm3, %v1335_v10  ;;  %v1333_v20 = vpack.c.bf16 %v812_v12, %v812_v12  ;;  %v1365_v21 = vpack.c.bf16 %v844_v13, %v844_v13 }
 0x101   :  { %1167 = vst.msk [vmem:[%s2076_s4 + $0xd8] sm:$0xf] %vm1112_vm3, %v1367_v11  ;;  %v683_v22 = vmul.f32 %v1441_v18, %v1681_v38  ;;  %v715_v23 = vmul.f32 %v1473_v19, %v1681_v38  ;;  %v815_v24 = vmax.f32 %v751_v14, 0.0  ;;  %v847_v25 = vmax.f32 %v783_v15, 0.0  ;;  %v1442_v39 = vpop.f32.mrf.mxu0  ;;  %v1474_v41 = vpop.f32.mrf.mxu1 }
 0x102   :  { %v749_v26 = vadd.f32 %v1686_v40, %v678_v16  ;;  %v781_v27 = vadd.f32 %v1686_v40, %v710_v17  ;;  %1133 = vst.msk [vmem:[%s2076_s4 + $0x50] sm:$0xf] %vm1112_vm3, %v1333_v20  ;;  %1165 = vst.msk [vmem:[%s2076_s4 + $0xd0] sm:$0xf] %vm1112_vm3, %v1365_v21  ;;  %v681_v32 = vmul.f32 %v1681_v38, %v491_v28 }
 0x103   :  { %v754_v30 = vadd.f32 %v1686_v40, %v683_v22  ;;  %v786_v31 = vadd.f32 %v1686_v40, %v715_v23  ;;  %v713_v33 = vmul.f32 %v1681_v38, %v619_v29  ;;  %v1336_v34 = vpack.c.bf16 %v815_v24, %v815_v24  ;;  %v494_v50 = vpop.f32.mrf.mxu0  ;;  %v622_v51 = vpop.f32.mrf.mxu1 }
 0x104   :  { %v1368_v35 = vpack.c.bf16 %v847_v25, %v847_v25  ;;  %v813_v36 = vmax.f32 %v749_v26, 0.0  ;;  %v845_v37 = vmax.f32 %v781_v27, 0.0  ;;  %v752_v44 = vadd.f32 %v1686_v40, %v681_v32 }
 0x105   :  { %v818_v42 = vmax.f32 %v754_v30, 0.0  ;;  %v850_v43 = vmax.f32 %v786_v31, 0.0  ;;  %v784_v45 = vadd.f32 %v1686_v40, %v713_v33  ;;  %1136 = vst.msk [vmem:[%s2076_s4 + $0x5c] sm:$0xf] %vm1112_vm3, %v1336_v34  ;;  %v684_v48 = vmul.f32 %v1442_v39, %v1681_v38  ;;  %v1445_v60 = vpop.f32.mrf.mxu0  ;;  %v1477_v61 = vpop.f32.mrf.mxu1 }
 0x106   :  { %1168 = vst.msk [vmem:[%s2076_s4 + $0xdc] sm:$0xf] %vm1112_vm3, %v1368_v35  ;;  %v1334_v46 = vpack.c.bf16 %v813_v36, %v813_v36  ;;  %v1366_v47 = vpack.c.bf16 %v845_v37, %v845_v37  ;;  %v716_v49 = vmul.f32 %v1474_v41, %v1681_v38  ;;  %v816_v54 = vmax.f32 %v752_v44, 0.0 }
 0x107   :  { %v1339_v52 = vpack.c.bf16 %v818_v42, %v818_v42  ;;  %v1371_v53 = vpack.c.bf16 %v850_v43, %v850_v43  ;;  %v848_v55 = vmax.f32 %v784_v45, 0.0  ;;  %v755_v56 = vadd.f32 %v1686_v40, %v684_v48  ;;  %v507_v6 = vpop.f32.mrf.mxu0  ;;  %v635_v7 = vpop.f32.mrf.mxu1 }
 0x108   :  { %1134 = vst.msk [vmem:[%s2076_s4 + $0x54] sm:$0xf] %vm1112_vm3, %v1334_v46  ;;  %1166 = vst.msk [vmem:[%s2076_s4 + $0xd4] sm:$0xf] %vm1112_vm3, %v1366_v47  ;;  %v787_v57 = vadd.f32 %v1686_v40, %v716_v49  ;;  %v682_v58 = vmul.f32 %v1681_v38, %v494_v50  ;;  %v714_v59 = vmul.f32 %v1681_v38, %v622_v51 }
 0x109   :  { %1139 = vst.msk [vmem:[%s2076_s4 + $0x68] sm:$0xf] %vm1112_vm3, %v1339_v52  ;;  %1171 = vst.msk [vmem:[%s2076_s4 + $0xe8] sm:$0xf] %vm1112_vm3, %v1371_v53  ;;  %v1337_v62 = vpack.c.bf16 %v816_v54, %v816_v54  ;;  %v1369_v63 = vpack.c.bf16 %v848_v55, %v848_v55  ;;  %v687_v0 = vmul.f32 %v1445_v60, %v1681_v38  ;;  %v819_v2 = vmax.f32 %v755_v56, 0.0  ;;  %v1446_v16 = vpop.f32.mrf.mxu0  ;;  %v1478_v17 = vpop.f32.mrf.mxu1 }
 0x10a   :  { %v719_v1 = vmul.f32 %v1477_v61, %v1681_v38  ;;  %v851_v3 = vmax.f32 %v787_v57, 0.0  ;;  %v753_v4 = vadd.f32 %v1686_v40, %v682_v58  ;;  %v785_v5 = vadd.f32 %v1686_v40, %v714_v59 }
 0x10b   :  { %1137 = vst.msk [vmem:[%s2076_s4 + $0x60] sm:$0xf] %vm1112_vm3, %v1337_v62  ;;  %1169 = vst.msk [vmem:[%s2076_s4 + $0xe0] sm:$0xf] %vm1112_vm3, %v1369_v63  ;;  %v758_v8 = vadd.f32 %v1686_v40, %v687_v0  ;;  %v685_v10 = vmul.f32 %v1681_v38, %v507_v6  ;;  %v717_v11 = vmul.f32 %v1681_v38, %v635_v7  ;;  %v510_v26 = vpop.f32.mrf.mxu0  ;;  %v638_v27 = vpop.f32.mrf.mxu1 }
 0x10c   :  { %v790_v9 = vadd.f32 %v1686_v40, %v719_v1  ;;  %v1340_v12 = vpack.c.bf16 %v819_v2, %v819_v2  ;;  %v1372_v13 = vpack.c.bf16 %v851_v3, %v851_v3  ;;  %v817_v14 = vmax.f32 %v753_v4, 0.0 }
 0x10d   :  { %v849_v15 = vmax.f32 %v785_v5, 0.0  ;;  %v822_v18 = vmax.f32 %v758_v8, 0.0  ;;  %v756_v20 = vadd.f32 %v1686_v40, %v685_v10  ;;  %v788_v21 = vadd.f32 %v1686_v40, %v717_v11 }
 0x10e   :  { %v854_v19 = vmax.f32 %v790_v9, 0.0  ;;  %1140 = vst.msk [vmem:[%s2076_s4 + $0x6c] sm:$0xf] %vm1112_vm3, %v1340_v12  ;;  %1172 = vst.msk [vmem:[%s2076_s4 + $0xec] sm:$0xf] %vm1112_vm3, %v1372_v13  ;;  %v1338_v22 = vpack.c.bf16 %v817_v14, %v817_v14  ;;  %v688_v24 = vmul.f32 %v1446_v16, %v1681_v38  ;;  %v720_v25 = vmul.f32 %v1478_v17, %v1681_v38 }
 0x10f   :  { %v1370_v23 = vpack.c.bf16 %v849_v15, %v849_v15  ;;  %v1343_v28 = vpack.c.bf16 %v822_v18, %v822_v18  ;;  %v820_v30 = vmax.f32 %v756_v20, 0.0  ;;  %v852_v31 = vmax.f32 %v788_v21, 0.0 }
 0x110   :  { %v1375_v29 = vpack.c.bf16 %v854_v19, %v854_v19  ;;  %1138 = vst.msk [vmem:[%s2076_s4 + $0x64] sm:$0xf] %vm1112_vm3, %v1338_v22  ;;  %v759_v32 = vadd.f32 %v1686_v40, %v688_v24  ;;  %v791_v33 = vadd.f32 %v1686_v40, %v720_v25  ;;  %v686_v34 = vmul.f32 %v1681_v38, %v510_v26 }
 0x111   :  { %1170 = vst.msk [vmem:[%s2076_s4 + $0xe4] sm:$0xf] %vm1112_vm3, %v1370_v23  ;;  %v718_v35 = vmul.f32 %v1681_v38, %v638_v27  ;;  %1143 = vst.msk [vmem:[%s2076_s4 + $0x78] sm:$0xf] %vm1112_vm3, %v1343_v28  ;;  %v1341_v36 = vpack.c.bf16 %v820_v30, %v820_v30  ;;  %v1373_v37 = vpack.c.bf16 %v852_v31, %v852_v31 }
 0x112   :  { %1175 = vst.msk [vmem:[%s2076_s4 + $0xf8] sm:$0xf] %vm1112_vm3, %v1375_v29  ;;  %v823_v39 = vmax.f32 %v759_v32, 0.0  ;;  %v855_v41 = vmax.f32 %v791_v33, 0.0  ;;  %v757_v42 = vadd.f32 %v1686_v40, %v686_v34 }
 0x113   :  { %v789_v43 = vadd.f32 %v1686_v40, %v718_v35  ;;  %1141 = vst.msk [vmem:[%s2076_s4 + $0x70] sm:$0xf] %vm1112_vm3, %v1341_v36  ;;  %1173 = vst.msk [vmem:[%s2076_s4 + $0xf0] sm:$0xf] %vm1112_vm3, %v1373_v37 }
 0x114   :  { %v1344_v38 = vpack.c.bf16 %v823_v39, %v823_v39  ;;  %v1376_v44 = vpack.c.bf16 %v855_v41, %v855_v41  ;;  %v821_v45 = vmax.f32 %v757_v42, 0.0 }
 0x115   :  { %v853_v46 = vmax.f32 %v789_v43, 0.0 }
 0x116   :  { %1144 = vst.msk [vmem:[%s2076_s4 + $0x7c] sm:$0xf] %vm1112_vm3, %v1344_v38  ;;  %1176 = vst.msk [vmem:[%s2076_s4 + $0xfc] sm:$0xf] %vm1112_vm3, %v1376_v44  ;;  %v1342_v40 = vpack.c.bf16 %v821_v45, %v821_v45 }
 0x117   :  { %v1374_v47 = vpack.c.bf16 %v853_v46, %v853_v46 }
 0x118   :  { %1142 = vst.msk [vmem:[%s2076_s4 + $0x74] sm:$0xf] %vm1112_vm3, %v1342_v40 }
 0x119   :  { %1174 = vst.msk [vmem:[%s2076_s4 + $0xf4] sm:$0xf] %vm1112_vm3, %v1374_v47 }

// kernel: deeplab_forward.18
= control target key start
LH: loop header
LB: loop body
LE: loop exit
PB: predicated region body
PF: predicated region fallthrough
CT: control target
= control target key end

     0   :  { %v278_v0 = vmov 0   ;;  %vm112_vm0 = vcmask 130048   ;;  %vm210_vm1 = vcmask 191488   ;;  %s361_s1 = inlined_call_operand.vmem [shape: bf16[144,24], index: 1, kind: input, shape index: {}]   ;;  %s362_s0 = inlined_call_operand.vmem [shape: bf16[32,144], index: 0, kind: input, shape index: {}]   ;;  %s363_s2 = inlined_call_operand.vmem [shape: f32[1,24], index: 2, kind: input, shape index: {}]   ;;  %s364_s3 = inlined_call_operand.vmem [shape: f32[1,24], index: 3, kind: input, shape index: {}]   ;;  %s365_s4 = inlined_call_operand.vmem [shape: bf16[32,24], index: 4, kind: output, shape index: {}]  }
   0x1   :  { %119 = vmatprep.subr.bf16.mxu0 %v278_v0  ;;  %244 = vmatprep.subr.bf16.mxu1 %v278_v0  ;;  %v263_v1 = vld [vmem:[%s361_s1 + $0x38] sm:$0xff]   ;;  %v264_v2 = vld [vmem:[%s361_s1 + $0x30] sm:$0xff]   ;;  %v265_v3 = vld [vmem:[%s361_s1 + $0x28] sm:$0xff]  }
   0x2   :  { %120 = vmatpush1.bf16.msra.mxu0 %v263_v1  ;;  %253 = vmatpush1.bf16.msra.mxu1 %v263_v1  ;;  %v266_v4 = vld [vmem:[%s361_s1 + $0x20] sm:$0xff]   ;;  %v277_v6 = vld [vmem:[%s362_s0 + $0x14] ss:$8 sps:$4 sm:$0xff]   ;;  %v269_v9 = vld [vmem:[%s361_s1 + $0x8] sm:$0xff]  }
   0x3   :  { %121 = vmatprep.subr.bf16.mxu0 %v278_v0  ;;  %245 = vmatprep.subr.bf16.mxu1 %v278_v0  ;;  %v274_v5 = vld [vmem:[%s362_s0 + $0x4] ss:$8 sps:$4 sm:$0xff]   ;;  %v267_v7 = vld [vmem:[%s361_s1 + $0x18] sm:$0xff]   ;;  %v268_v8 = vld [vmem:[%s361_s1 + $0x10] sm:$0xff]  }
   0x4   :  { %232 = vmatprep.mubr.msk.bf16.mxu0 %vm112_vm0, %v274_v5  ;;  %233 = vmatprep.mubr.msk.bf16.mxu1 %vm112_vm0, %v277_v6  ;;  %v270_v10 = vld [vmem:[%s361_s1] sm:$0xff]   ;;  %v275_v13 = vld [vmem:[%s362_s0 + $0x10] ss:$8 sps:$4 sm:$0xff]  }
   0x5   :  { %v271_v11 = vld [vmem:[%s361_s1 + $0x40] sm:$0xff]  }
   0x6   :  { %122 = vmatpush1.bf16.msra.mxu0 %v264_v2  ;;  %254 = vmatpush1.bf16.msra.mxu1 %v264_v2  ;;  %v272_v12 = vld [vmem:[%s362_s0] ss:$8 sps:$4 sm:$0xff]  }
   0x7   :  { %123 = vmatprep.subr.bf16.mxu0 %v278_v0  ;;  %246 = vmatprep.subr.bf16.mxu1 %v278_v0  ;;  %v234_v14 = vld [vmem:[%s363_s2] ss:$0 sm:$0xff] }
   0x8   :  { %v235_v16 = vld [vmem:[%s364_s3] ss:$0 sm:$0xff] }
   0xa   :  { %124 = vmatpush1.bf16.msra.mxu0 %v265_v3  ;;  %255 = vmatpush1.bf16.msra.mxu1 %v265_v3 }
   0xb   :  { %125 = vmatprep.subr.bf16.mxu0 %v278_v0  ;;  %247 = vmatprep.subr.bf16.mxu1 %v278_v0 }
   0xe   :  { %126 = vmatpush1.bf16.msra.mxu0 %v266_v4  ;;  %256 = vmatpush1.bf16.msra.mxu1 %v266_v4 }
   0xf   :  { %127 = vmatprep.subr.bf16.mxu0 %v278_v0  ;;  %248 = vmatprep.subr.bf16.mxu1 %v278_v0 }
  0x12   :  { %128 = vmatpush1.bf16.msra.mxu0 %v267_v7  ;;  %257 = vmatpush1.bf16.msra.mxu1 %v267_v7 }
  0x13   :  { %129 = vmatprep.subr.bf16.mxu0 %v278_v0  ;;  %249 = vmatprep.subr.bf16.mxu1 %v278_v0 }
  0x16   :  { %130 = vmatpush1.bf16.msra.mxu0 %v268_v8  ;;  %258 = vmatpush1.bf16.msra.mxu1 %v268_v8 }
  0x17   :  { %131 = vmatprep.subr.bf16.mxu0 %v278_v0  ;;  %250 = vmatprep.subr.bf16.mxu1 %v278_v0 }
  0x1a   :  { %132 = vmatpush1.bf16.msra.mxu0 %v269_v9  ;;  %259 = vmatpush1.bf16.msra.mxu1 %v269_v9 }
  0x1b   :  { %133 = vmatprep.subr.bf16.mxu0 %v278_v0  ;;  %251 = vmatprep.subr.bf16.mxu1 %v278_v0 }
  0x1e   :  { %134 = vmatpush1.bf16.msra.mxu0 %v270_v10  ;;  %260 = vmatpush1.bf16.msra.mxu1 %v270_v10 }
  0x1f   :  { %149 = vmatprep.subr.bf16.mxu0 %v278_v0  ;;  %252 = vmatprep.subr.bf16.mxu1 %v278_v0 }
  0x22   :  { %150 = vmatpush2.bf16.msra.mxu0 %v271_v11  ;;  %261 = vmatpush2.bf16.msra.mxu1 %v271_v11 }
  0x25   :  { %152 = vmatmul.mubr.bf16.vlgmr.msra.gmra.mxu0 %v272_v12  ;;  %160 = vmatmul.mubr.bf16.vlgmr.msra.gmra.mxu1 %v275_v13 }
  0xe5   :  { %v153_v15 = vpop.f32.mrf.mxu0  ;;  %v161_v17 = vpop.f32.mrf.mxu1 }
  0xe6   :  { %v175_v18 = vmul.f32 %v234_v14, %v153_v15  ;;  %v177_v19 = vmul.f32 %v234_v14, %v161_v17 }
  0xe7   :  { %v155_v20 = vpop.f32.mrf.mxu0  ;;  %v163_v21 = vpop.f32.mrf.mxu1 }
  0xe8   :  { %v186_v22 = vadd.f32 %v235_v16, %v175_v18  ;;  %v188_v23 = vadd.f32 %v235_v16, %v177_v19 }
  0xe9   :  { %v156_v24 = vpop.f32.mrf.mxu0  ;;  %v164_v25 = vpop.f32.mrf.mxu1 }
  0xea   :  { %v190_v26 = vmax.f32 %v186_v22, 0.0  ;;  %v192_v27 = vmax.f32 %v188_v23, 0.0  ;;  %v176_v28 = vmul.f32 %v234_v14, %v156_v24  ;;  %v178_v29 = vmul.f32 %v234_v14, %v164_v25 }
  0xeb   :  { %v158_v30 = vpop.f32.mrf.mxu0  ;;  %v166_v31 = vpop.f32.mrf.mxu1 }
  0xec   :  { %v240_v32 = vpack.c.bf16 %v190_v26, %v190_v26  ;;  %v242_v33 = vpack.c.bf16 %v192_v27, %v192_v27  ;;  %v187_v34 = vadd.f32 %v235_v16, %v176_v28  ;;  %v189_v35 = vadd.f32 %v235_v16, %v178_v29 }
  0xee   :  { %211 = vst.msk [vmem:[%s365_s4] sm:$0xf] %vm210_vm1, %v240_v32  ;;  %213 = vst.msk [vmem:[%s365_s4 + $0x8] sm:$0xf] %vm210_vm1, %v242_v33  ;;  %v191_v36 = vmax.f32 %v187_v34, 0.0  ;;  %v193_v37 = vmax.f32 %v189_v35, 0.0 }
  0xf0   :  { %v241_v38 = vpack.c.bf16 %v191_v36, %v191_v36  ;;  %v243_v39 = vpack.c.bf16 %v193_v37, %v193_v37 }
  0xf2   :  { %212 = vst.msk [vmem:[%s365_s4 + $0x4] sm:$0xf] %vm210_vm1, %v241_v38  ;;  %214 = vst.msk [vmem:[%s365_s4 + $0xc] sm:$0xf] %vm210_vm1, %v243_v39 }

// kernel: deeplab_forward.19
= control target key start
LH: loop header
LB: loop body
LE: loop exit
PB: predicated region body
PF: predicated region fallthrough
CT: control target
= control target key end

     0   :  { %v241_v0 = vmov 0   ;;  %vm133_vm0 = vcmask 719872   ;;  %vm137_vm1 = vcmask 1043456   ;;  %vm199_vm2 = vcmask 257024   ;;  %s321_s1 = inlined_call_operand.vmem [shape: bf16[216,32], index: 1, kind: input, shape index: {}]   ;;  %s322_s0 = inlined_call_operand.vmem [shape: bf16[8,216], index: 0, kind: input, shape index: {}]   ;;  %s323_s2 = inlined_call_operand.vmem [shape: f32[1,32], index: 2, kind: input, shape index: {}]   ;;  %s324_s3 = inlined_call_operand.vmem [shape: f32[1,32], index: 3, kind: input, shape index: {}]   ;;  %s325_s4 = inlined_call_operand.vmem [shape: bf16[8,32], index: 4, kind: output, shape index: {}]  }
   0x1   :  { %141 = vmatprep.subr.bf16.mxu0 %v241_v0  ;;  %v225_v1 = vld [vmem:[%s321_s1 + $0x38] sm:$0xff]   ;;  %v226_v2 = vld [vmem:[%s321_s1 + $0x30] sm:$0xff]   ;;  %v227_v3 = vld [vmem:[%s321_s1 + $0x28] sm:$0xff]  }
   0x2   :  { %142 = vmatpush1.bf16.msra.mxu0 %v225_v1  ;;  %v228_v4 = vld [vmem:[%s321_s1 + $0x20] sm:$0xff]   ;;  %v229_v6 = vld [vmem:[%s321_s1 + $0x18] sm:$0xff]   ;;  %v230_v8 = vld [vmem:[%s321_s1 + $0x10] sm:$0xff]  }
   0x3   :  { %143 = vmatprep.subr.bf16.mxu0 %v241_v0  ;;  %v18_v5 = vld [vmem:[%s322_s0] sm:$0xff]  ;;  %v231_v9 = vld [vmem:[%s321_s1 + $0x8] sm:$0xff]   ;;  %v235_v14 = vld [vmem:[%s321_s1 + $0x58] sm:$0xff]  }
   0x4   :  { %v206_v7 = vcombine.high %v18_v5, %v18_v5  ;;  %v232_v10 = vld [vmem:[%s321_s1] sm:$0xff]   ;;  %v233_v11 = vld [vmem:[%s321_s1 + $0x68] ss:$0 sps:$4 sm:$0xff]   ;;  %v236_v15 = vld [vmem:[%s321_s1 + $0x50] sm:$0xff]   ;;  %v205_v18 = vcombine.low %v18_v5, %v18_v5 }
   0x5   :  { %v139_v12 = vsel %vm137_vm1, %v233_v11, 0  ;;  %v234_v13 = vld [vmem:[%s321_s1 + $0x60] sm:$0xff]   ;;  %v237_v16 = vld [vmem:[%s321_s1 + $0x48] sm:$0xff]  }
   0x6   :  { %144 = vmatpush1.bf16.msra.mxu0 %v226_v2  ;;  %221 = vmatprep.mubr.msk.bf16.mxu0 %vm133_vm0, %v206_v7  ;;  %v238_v17 = vld [vmem:[%s321_s1 + $0x40] sm:$0xff]  }
   0x7   :  { %145 = vmatprep.subr.bf16.mxu0 %v241_v0  ;;  %v222_v19 = vld [vmem:[%s323_s2] ss:$0 sm:$0xff] }
   0x8   :  { %v223_v21 = vld [vmem:[%s324_s3] ss:$0 sm:$0xff] }
   0xa   :  { %146 = vmatpush1.bf16.msra.mxu0 %v227_v3 }
   0xb   :  { %147 = vmatprep.subr.bf16.mxu0 %v241_v0 }
   0xe   :  { %148 = vmatpush1.bf16.msra.mxu0 %v228_v4 }
   0xf   :  { %149 = vmatprep.subr.bf16.mxu0 %v241_v0 }
  0x12   :  { %150 = vmatpush1.bf16.msra.mxu0 %v229_v6 }
  0x13   :  { %151 = vmatprep.subr.bf16.mxu0 %v241_v0 }
  0x16   :  { %152 = vmatpush1.bf16.msra.mxu0 %v230_v8 }
  0x17   :  { %153 = vmatprep.subr.bf16.mxu0 %v241_v0 }
  0x1a   :  { %154 = vmatpush1.bf16.msra.mxu0 %v231_v9 }
  0x1b   :  { %155 = vmatprep.subr.bf16.mxu0 %v241_v0 }
  0x1e   :  { %156 = vmatpush1.bf16.msra.mxu0 %v232_v10 }
  0x1f   :  { %161 = vmatprep.subr.bf16.mxu0 %v241_v0 }
  0x22   :  { %162 = vmatpush2.bf16.msra.mxu0 %v139_v12 }
  0x23   :  { %163 = vmatprep.subr.bf16.mxu0 %v241_v0 }
  0x26   :  { %164 = vmatpush2.bf16.msra.mxu0 %v234_v13 }
  0x27   :  { %165 = vmatprep.subr.bf16.mxu0 %v241_v0 }
  0x2a   :  { %166 = vmatpush2.bf16.msra.mxu0 %v235_v14 }
  0x2b   :  { %167 = vmatprep.subr.bf16.mxu0 %v241_v0 }
  0x2e   :  { %168 = vmatpush2.bf16.msra.mxu0 %v236_v15 }
  0x2f   :  { %169 = vmatprep.subr.bf16.mxu0 %v241_v0 }
  0x32   :  { %170 = vmatpush2.bf16.msra.mxu0 %v237_v16 }
  0x33   :  { %171 = vmatprep.subr.bf16.mxu0 %v241_v0 }
  0x36   :  { %172 = vmatpush2.bf16.msra.mxu0 %v238_v17 }
  0x39   :  { %174 = vmatmul.mubr.bf16.vlgmr.msra.gmra.mxu0 %v205_v18 }
  0xf9   :  { %v175_v20 = vpop.f32.mrf.mxu0 }
  0xfa   :  { %v188_v22 = vmul.f32 %v222_v19, %v175_v20 }
  0xfb   :  { %v177_v23 = vpop.f32.mrf.mxu0 }
  0xfc   :  { %v196_v24 = vadd.f32 %v223_v21, %v188_v22 }
  0xfd   :  { %v178_v25 = vpop.f32.mrf.mxu0 }
  0xfe   :  { %v197_v26 = vmax.f32 %v196_v24, 0.0 }
  0xff   :  { %v179_v27 = vpop.f32.mrf.mxu0 }
 0x100   :  { %v198_v28 = vpack.c.bf16 %v197_v26, %v197_v26 }
 0x102   :  { %200 = vst.msk [vmem:[%s325_s4] sm:$0xf] %vm199_vm2, %v198_v28 }

// kernel: deeplab_forward.20
= control target key start
LH: loop header
LB: loop body
LE: loop exit
PB: predicated region body
PF: predicated region fallthrough
CT: control target
= control target key end

     0   :  { %v362_v1 = vmov 0.0   ;;  %vm363_vm0 = vmmov 0   ;;  %vm174_vm1 = vcmask 261120   ;;  %vm276_vm2 = vcmask 257024   ;;  %s458_s1 = inlined_call_operand.vmem [shape: bf16[288,32], index: 1, kind: input, shape index: {}]   ;;  %s459_s0 = inlined_call_operand.vmem [shape: bf16[8,288], index: 0, kind: input, shape index: {}]   ;;  %s460_s2 = inlined_call_operand.vmem [shape: f32[1,32], index: 2, kind: input, shape index: {}]   ;;  %s461_s3 = inlined_call_operand.vmem [shape: f32[1,32], index: 3, kind: input, shape index: {}]   ;;  %s462_s4 = inlined_call_operand.vmem [shape: bf16[8,32], index: 4, kind: output, shape index: {}]  }
   0x1   :  { %v341_v0 = vld [vmem:[%s458_s1 + $0x78] sm:$0xff]   ;;  %331 = vmatprep.subr.bf16.mxu1 %v362_v1  ;;  %335 = vmatprep.mubr.msk.bf16.mxu1 %vm363_vm0, %v362_v1  ;;  %v343_v3 = vld [vmem:[%s458_s1 + $0x70] sm:$0xff]   ;;  %v345_v5 = vld [vmem:[%s458_s1 + $0x68] sm:$0xff]  }
   0x2   :  { %v342_v2 = vld [vmem:[%s458_s1 + $0x38] sm:$0xff]   ;;  %306 = vmatprep.subr.bf16.mxu0 %v341_v0  ;;  %v344_v4 = vld [vmem:[%s458_s1 + $0x30] sm:$0xff]   ;;  %v346_v6 = vld [vmem:[%s458_s1 + $0x28] sm:$0xff]  }
   0x3   :  { %307 = vmatpush3.bf16.msra.mxu0 %v342_v2  ;;  %v347_v7 = vld [vmem:[%s458_s1 + $0x60] sm:$0xff]   ;;  %v349_v9 = vld [vmem:[%s458_s1 + $0x58] sm:$0xff]   ;;  %v353_v10 = vld [vmem:[%s458_s1 + $0x88] sm:$0xff]  }
   0x4   :  { %308 = vmatprep.subr.bf16.mxu0 %v343_v3  ;;  %v348_v8 = vld [vmem:[%s458_s1 + $0x20] sm:$0xff]   ;;  %v350_v11 = vld [vmem:[%s458_s1 + $0x18] sm:$0xff]   ;;  %332 = vmatpush3.bf16.msra.mxu1 %v353_v10  ;;  %v351_v13 = vld [vmem:[%s458_s1 + $0x50] sm:$0xff]  }
   0x5   :  { %333 = vmatprep.subr.bf16.mxu1 %v362_v1  ;;  %v356_v12 = vld [vmem:[%s458_s1 + $0x80] sm:$0xff]   ;;  %v359_v14 = vld [vmem:[%s459_s0 + $0x8] ss:$0 sps:$4 sm:$0xff]   ;;  %v352_v16 = vld [vmem:[%s458_s1 + $0x10] sm:$0xff]  }
   0x6   :  { %v18_v15 = vld [vmem:[%s459_s0] sm:$0xff]  ;;  %v354_v18 = vld [vmem:[%s458_s1 + $0x48] sm:$0xff]  }
   0x7   :  { %309 = vmatpush3.bf16.msra.mxu0 %v344_v4  ;;  %v283_v17 = vcombine.high %v18_v15, %v18_v15  ;;  %v355_v19 = vld [vmem:[%s458_s1 + $0x8] sm:$0xff]   ;;  %v357_v20 = vld [vmem:[%s458_s1 + $0x40] sm:$0xff]   ;;  %v282_v22 = vcombine.low %v18_v15, %v18_v15 }
   0x8   :  { %310 = vmatprep.subr.bf16.mxu0 %v345_v5  ;;  %334 = vmatpush3.bf16.msra.mxu1 %v356_v12  ;;  %v358_v21 = vld [vmem:[%s458_s1] sm:$0xff]  }
   0x9   :  { %210 = vmatprep.mubr.bf16.mxu0 %v283_v17  ;;  %v304_v30 = vld [vmem:[%s460_s2] ss:$0 sm:$0xff] }
   0xa   :  { %v305_v33 = vld [vmem:[%s461_s3] ss:$0 sm:$0xff] }
   0xb   :  { %311 = vmatpush3.bf16.msra.mxu0 %v346_v6  ;;  %336 = vmatmul.mubr.msk.bf16.vlgmr.msra.gmra.mxu1 %vm174_vm1, %v359_v14 }
   0xc   :  { %312 = vmatprep.subr.bf16.mxu0 %v347_v7 }
   0xf   :  { %313 = vmatpush3.bf16.msra.mxu0 %v348_v8 }
  0x10   :  { %314 = vmatprep.subr.bf16.mxu0 %v349_v9 }
  0x13   :  { %315 = vmatpush3.bf16.msra.mxu0 %v350_v11 }
  0x14   :  { %316 = vmatprep.subr.bf16.mxu0 %v351_v13 }
  0x17   :  { %317 = vmatpush3.bf16.msra.mxu0 %v352_v16 }
  0x18   :  { %318 = vmatprep.subr.bf16.mxu0 %v354_v18 }
  0x1b   :  { %319 = vmatpush3.bf16.msra.mxu0 %v355_v19 }
  0x1c   :  { %320 = vmatprep.subr.bf16.mxu0 %v357_v20 }
  0x1f   :  { %321 = vmatpush3.bf16.msra.mxu0 %v358_v21 }
  0x22   :  { %211 = vmatmul.mubr.bf16.vlgmr.msra.gmra.mxu0 %v282_v22 }
  0xcb   :  { %v252_v23 = vpop.f32.mrf.mxu1 }
  0xcd   :  { %v337_v24 = vpop.f32.mrf.mxu1 }
  0xcf   :  { %v255_v25 = vpop.f32.mrf.mxu1 }
  0xd1   :  { %v338_v26 = vpop.f32.mrf.mxu1 }
  0xe2   :  { %v322_v27 = vpop.f32.mrf.mxu0 }
  0xe4   :  { %v323_v28 = vpop.f32.mrf.mxu0 }
  0xe5   :  { %v324_v29 = vadd.f32 %v323_v28, %v322_v27 }
  0xe6   :  { %v325_v31 = vpop.f32.mrf.mxu0 }
  0xe7   :  { %v253_v32 = vadd.f32 %v324_v29, %v252_v23 }
  0xe8   :  { %v326_v34 = vpop.f32.mrf.mxu0 }
  0xe9   :  { %v265_v35 = vmul.f32 %v304_v30, %v253_v32 }
  0xeb   :  { %v273_v36 = vadd.f32 %v305_v33, %v265_v35 }
  0xed   :  { %v274_v37 = vmax.f32 %v273_v36, 0.0 }
  0xef   :  { %v275_v38 = vpack.c.bf16 %v274_v37, %v274_v37 }
  0xf1   :  { %277 = vst.msk [vmem:[%s462_s4] sm:$0xf] %vm276_vm2, %v275_v38 }

// kernel: deeplab_forward.25
= control target key start
LH: loop header
LB: loop body
LE: loop exit
PB: predicated region body
PF: predicated region fallthrough
CT: control target
= control target key end

     0   :  { %s292_s9 = smov 0   ;;  %s312_s0 = inlined_call_operand.vmem [shape: bf16[8,2], index: 0, kind: input, shape index: {}]   ;;  %s313_s1 = inlined_call_operand.vmem [shape: bf16[2,2,64], index: 1, kind: input, shape index: {}]   ;;  %s314_s2 = inlined_call_operand.vmem [shape: bf16[2,8,64], index: 2, kind: output, shape index: {}]  }
   0x1 LB: > { %s240_s10 = sadd.s32 4294967295, %s273_s9   ;;  %p244_p0 = scmp.ge.s32.totalorder %s273_s9, 1  ;;  %s273_s9 = sphi %s292_s9, %s12_s9  }
   0x2   : > { %p110_p1 = scmp.lt.s32.totalorder %s273_s9, 3 }
   0x4   : > { %p111_p2 = pnand %p244_p0, %p110_p1 }
   0x5   : > { %p129_p3 = scmp.lt.s32.totalorder (!%p111_p2), %s240_s10, 1 }
   0x6   : > { %114 = sbr.rel (%p111_p2) target bundleno = 217 (0xd9), region = 28 }
   0xb   : > { %v275_v0 = vmov 0.0   ;;  %vm276_vm0 = vmmov 0   ;;  %s316_s10 = smov (!%p129_p3, %s240_s10), 1  ;;  %vm143_vm1 = vcmask 1040384   ;;  %v137_v3 = vld [vmem:[%s312_s0] sm:$0xf] }
   0xc   : > { %251 = vmatprep.subr.bf16.mxu0 %v275_v0  ;;  %253 = vmatprep.mubr.msk.bf16.mxu0 %vm276_vm0, %v275_v0  ;;  %s131_s13 = scalar_lea.vmem %s313_s1, %s316_s10  ;;  %vm139_vm2 = vcmask 15360   ;;  %s245_s16 = sshll.u32 %s316_s10, 2  ;;  %vm188_vm3 = vcmask 519168  }
   0xd   : > { %v138_v1 = vld [vmem:[%s131_s13] sm:$0x1]  ;;  %s135_s19 = scalar_lea.vmem %s314_s2, %s245_s16 }
   0xe   : > { %v145_v2 = vsel %vm143_vm1, %v138_v1, 0 }
   0xf   : > { %252 = vmatpush3.bf16.msra.mxu0 %v145_v2 }
  0x12   : > { %254 = vmatmul.mubr.msk.bf16.vlgmr.msra.gmra.mxu0 %vm139_vm2, %v137_v3 }
  0xd2   : > { %v181_v4 = vpop.f32.mrf.mxu0 }
  0xd3   : > { %v187_v5 = vpack.c.bf16 %v181_v4, %v181_v4 }
  0xd4   : > { %v255_v6 = vpop.f32.mrf.mxu0 }
  0xd5   : > { %189 = vst.msk [vmem:[%s135_s19] sm:$0xf] %vm188_vm3, %v187_v5 }
  0xd6   : > { %v184_v7 = vpop.f32.mrf.mxu0 }
  0xd8   : > { %v256_v8 = vpop.f32.mrf.mxu0 }
  0xd9 PF: > { %s12_s9 = sadd.s32 1, %s273_s9  }
  0xda   : > { %p9_p4 = scmp.ge.s32.totalorder %s12_s9, 4  }
  0xdc   :  { %11 = sbr.rel (!%p9_p4) target bundleno = 1 (0x1), region = 58 }

// kernel: deeplab_forward.21
= control target key start
LH: loop header
LB: loop body
LE: loop exit
PB: predicated region body
PF: predicated region fallthrough
CT: control target
= control target key end

     0   :  { %v368_v1 = vmov 0.0   ;;  %vm369_vm0 = vmmov 0   ;;  %vm177_vm1 = vcmask 261120   ;;  %vm282_vm2 = vcmask 257024   ;;  %s472_s1 = inlined_call_operand.vmem [shape: bf16[288,32], index: 1, kind: input, shape index: {}]   ;;  %s473_s0 = inlined_call_operand.vmem [shape: bf16[8,288], index: 0, kind: input, shape index: {}]   ;;  %s474_s2 = inlined_call_operand.vmem [shape: f32[1,32], index: 2, kind: input, shape index: {}]   ;;  %s475_s4 = inlined_call_operand.vmem [shape: bf16[8,32], index: 4, kind: input, shape index: {}]   ;;  %s476_s3 = inlined_call_operand.vmem [shape: f32[1,32], index: 3, kind: input, shape index: {}]   ;;  %s477_s5 = inlined_call_operand.vmem [shape: bf16[8,32], index: 5, kind: output, shape index: {}]  }
   0x1   :  { %v347_v0 = vld [vmem:[%s472_s1 + $0x78] sm:$0xff]   ;;  %337 = vmatprep.subr.bf16.mxu1 %v368_v1  ;;  %341 = vmatprep.mubr.msk.bf16.mxu1 %vm369_vm0, %v368_v1  ;;  %v349_v3 = vld [vmem:[%s472_s1 + $0x70] sm:$0xff]   ;;  %v351_v5 = vld [vmem:[%s472_s1 + $0x68] sm:$0xff]  }
   0x2   :  { %v348_v2 = vld [vmem:[%s472_s1 + $0x38] sm:$0xff]   ;;  %312 = vmatprep.subr.bf16.mxu0 %v347_v0  ;;  %v350_v4 = vld [vmem:[%s472_s1 + $0x30] sm:$0xff]   ;;  %v352_v6 = vld [vmem:[%s472_s1 + $0x28] sm:$0xff]  }
   0x3   :  { %313 = vmatpush3.bf16.msra.mxu0 %v348_v2  ;;  %v353_v7 = vld [vmem:[%s472_s1 + $0x60] sm:$0xff]   ;;  %v355_v9 = vld [vmem:[%s472_s1 + $0x58] sm:$0xff]   ;;  %v359_v10 = vld [vmem:[%s472_s1 + $0x88] sm:$0xff]  }
   0x4   :  { %314 = vmatprep.subr.bf16.mxu0 %v349_v3  ;;  %v354_v8 = vld [vmem:[%s472_s1 + $0x20] sm:$0xff]   ;;  %v356_v11 = vld [vmem:[%s472_s1 + $0x18] sm:$0xff]   ;;  %338 = vmatpush3.bf16.msra.mxu1 %v359_v10  ;;  %v357_v13 = vld [vmem:[%s472_s1 + $0x50] sm:$0xff]  }
   0x5   :  { %339 = vmatprep.subr.bf16.mxu1 %v368_v1  ;;  %v362_v12 = vld [vmem:[%s472_s1 + $0x80] sm:$0xff]   ;;  %v365_v14 = vld [vmem:[%s473_s0 + $0x8] ss:$0 sps:$4 sm:$0xff]   ;;  %v358_v16 = vld [vmem:[%s472_s1 + $0x10] sm:$0xff]  }
   0x6   :  { %v21_v15 = vld [vmem:[%s473_s0] sm:$0xff]  ;;  %v360_v18 = vld [vmem:[%s472_s1 + $0x48] sm:$0xff]  }
   0x7   :  { %315 = vmatpush3.bf16.msra.mxu0 %v350_v4  ;;  %v289_v17 = vcombine.high %v21_v15, %v21_v15  ;;  %v361_v19 = vld [vmem:[%s472_s1 + $0x8] sm:$0xff]   ;;  %v363_v20 = vld [vmem:[%s472_s1 + $0x40] sm:$0xff]   ;;  %v288_v22 = vcombine.low %v21_v15, %v21_v15 }
   0x8   :  { %316 = vmatprep.subr.bf16.mxu0 %v351_v5  ;;  %340 = vmatpush3.bf16.msra.mxu1 %v362_v12  ;;  %v364_v21 = vld [vmem:[%s472_s1] sm:$0xff]  }
   0x9   :  { %213 = vmatprep.mubr.bf16.mxu0 %v289_v17  ;;  %v310_v30 = vld [vmem:[%s474_s2] ss:$0 sm:$0xff] }
   0xa   :  { %v277_v31 = vld [vmem:[%s475_s4] sm:$0xf] }
   0xb   :  { %317 = vmatpush3.bf16.msra.mxu0 %v352_v6  ;;  %342 = vmatmul.mubr.msk.bf16.vlgmr.msra.gmra.mxu1 %vm177_vm1, %v365_v14  ;;  %v311_v34 = vld [vmem:[%s476_s3] ss:$0 sm:$0xff]  ;;  %v278_v37 = vunpack.c.l.bf16 %v277_v31 }
   0xc   :  { %318 = vmatprep.subr.bf16.mxu0 %v353_v7 }
   0xf   :  { %319 = vmatpush3.bf16.msra.mxu0 %v354_v8 }
  0x10   :  { %320 = vmatprep.subr.bf16.mxu0 %v355_v9 }
  0x13   :  { %321 = vmatpush3.bf16.msra.mxu0 %v356_v11 }
  0x14   :  { %322 = vmatprep.subr.bf16.mxu0 %v357_v13 }
  0x17   :  { %323 = vmatpush3.bf16.msra.mxu0 %v358_v16 }
  0x18   :  { %324 = vmatprep.subr.bf16.mxu0 %v360_v18 }
  0x1b   :  { %325 = vmatpush3.bf16.msra.mxu0 %v361_v19 }
  0x1c   :  { %326 = vmatprep.subr.bf16.mxu0 %v363_v20 }
  0x1f   :  { %327 = vmatpush3.bf16.msra.mxu0 %v364_v21 }
  0x22   :  { %214 = vmatmul.mubr.bf16.vlgmr.msra.gmra.mxu0 %v288_v22 }
  0xcb   :  { %v255_v23 = vpop.f32.mrf.mxu1 }
  0xcd   :  { %v343_v24 = vpop.f32.mrf.mxu1 }
  0xcf   :  { %v258_v25 = vpop.f32.mrf.mxu1 }
  0xd1   :  { %v344_v26 = vpop.f32.mrf.mxu1 }
  0xe2   :  { %v328_v27 = vpop.f32.mrf.mxu0 }
  0xe4   :  { %v329_v28 = vpop.f32.mrf.mxu0 }
  0xe5   :  { %v330_v29 = vadd.f32 %v329_v28, %v328_v27 }
  0xe6   :  { %v331_v32 = vpop.f32.mrf.mxu0 }
  0xe7   :  { %v256_v33 = vadd.f32 %v330_v29, %v255_v23 }
  0xe8   :  { %v332_v35 = vpop.f32.mrf.mxu0 }
  0xe9   :  { %v268_v36 = vmul.f32 %v310_v30, %v256_v33 }
  0xeb   :  { %v276_v38 = vadd.f32 %v311_v34, %v268_v36 }
  0xed   :  { %v279_v39 = vadd.f32 %v278_v37, %v276_v38 }
  0xef   :  { %v280_v40 = vmax.f32 %v279_v39, 0.0 }
  0xf1   :  { %v281_v41 = vpack.c.bf16 %v280_v40, %v280_v40 }
  0xf3   :  { %283 = vst.msk [vmem:[%s477_s5] sm:$0xf] %vm282_vm2, %v281_v41 }

// kernel: deeplab_forward.26
= control target key start
LH: loop header
LB: loop body
LE: loop exit
PB: predicated region body
PF: predicated region fallthrough
CT: control target
= control target key end

     0   :  { %s818_s9 = smov 0   ;;  %s820_s10 = smov 0   ;;  %s910_s0 = inlined_call_operand.vmem [shape: bf16[8,2], index: 0, kind: input, shape index: {}]   ;;  %s911_s1 = inlined_call_operand.vmem [shape: bf16[2,8,2,32], index: 1, kind: input, shape index: {}]   ;;  %s912_s2 = inlined_call_operand.vmem [shape: bf16[2,8,8,32], index: 2, kind: output, shape index: {}]  }
   0x1   :  { %s822_s11 = smov 0  }
   0x2 LB: > { %s24_s12 = sadd.s32 1, %s795_s10  ;;  %p658_p0 = scmp.ge.s32.totalorder %s799_s11, 1  ;;  %s799_s11 = sphi %s822_s11, %s12_s11   ;;  %s795_s10 = sphi %s820_s10, %s914_s10   ;;  %s791_s9 = sphi %s818_s9, %s913_s9  }
   0x3   : > { %p26_p1 = scmp.ge.s32.totalorder %s24_s12, 2  ;;  %p132_p2 = scmp.lt.s32.totalorder %s799_s11, 3 }
   0x5   : > { %s916_s12 = smov (%p26_p1, %s24_s12), 0  ;;  %p133_p3 = pnand %p658_p0, %p132_p2 }
   0x6   : > { %p162_p4 = scmp.lt.s32.totalorder (!%p133_p3), %s791_s9, 1 }
   0x7   : > { %136 = sbr.rel (%p133_p3) target bundleno = 243 (0xf3), region = 28 }
   0xc   : > { %v801_v0 = vmov 0.0   ;;  %s918_s9 = smov (!%p162_p4, %s791_s9), 1  ;;  %vm802_vm0 = vmmov 0   ;;  %vm187_vm1 = vcmask 1040384   ;;  %v181_v7 = vld [vmem:[%s910_s0] sm:$0xf] }
   0xd   : > { %703 = vmatprep.subr.bf16.mxu0 %v801_v0  ;;  %709 = vmatprep.subr.bf16.mxu1 %v801_v0  ;;  %s659_s13 = sshll.u32 %s918_s9, 3  ;;  %vm183_vm2 = vcmask 15360   ;;  %s686_s19 = sshll.u32 %s918_s9, 5  ;;  %vm232_vm3 = vcmask 257024  }
   0xe   : > { %705 = vmatprep.mubr.msk.bf16.mxu0 %vm802_vm0, %v801_v0  ;;  %711 = vmatprep.mubr.msk.bf16.mxu1 %vm802_vm0, %v801_v0  ;;  %s844_s16 = scalar_lea.vmem %s911_s1, %s659_s13  ;;  %s883_s22 = scalar_lea.vmem %s912_s2, %s686_s19 }
   0xf   : > { %v182_v1 = vld [vmem:[%s844_s16] sm:$0x1]  ;;  %v663_v2 = vld [vmem:[%s844_s16 + $0x1] sm:$0x1]  ;;  %v666_v3 = vld [vmem:[%s844_s16 + $0x2] sm:$0x1] }
  0x10   : > { %v189_v4 = vsel %vm187_vm1, %v182_v1, 0  ;;  %v237_v5 = vsel %vm187_vm1, %v663_v2, 0  ;;  %v669_v6 = vld [vmem:[%s844_s16 + $0x3] sm:$0x1]  ;;  %v285_v8 = vsel %vm187_vm1, %v666_v3, 0 }
  0x11   : > { %704 = vmatpush3.bf16.msra.mxu0 %v189_v4  ;;  %710 = vmatpush3.bf16.msra.mxu1 %v237_v5  ;;  %v333_v9 = vsel %vm187_vm1, %v669_v6, 0  ;;  %v672_v10 = vld [vmem:[%s844_s16 + $0x4] sm:$0x1]  ;;  %v675_v11 = vld [vmem:[%s844_s16 + $0x5] sm:$0x1] }
  0x12   : > { %715 = vmatprep.subr.bf16.mxu0 %v801_v0  ;;  %721 = vmatprep.subr.bf16.mxu1 %v801_v0  ;;  %v381_v12 = vsel %vm187_vm1, %v672_v10, 0  ;;  %v429_v13 = vsel %vm187_vm1, %v675_v11, 0  ;;  %v678_v14 = vld [vmem:[%s844_s16 + $0x6] sm:$0x1]  ;;  %v681_v15 = vld [vmem:[%s844_s16 + $0x7] sm:$0x1] }
  0x13   : > { %v477_v16 = vsel %vm187_vm1, %v678_v14, 0  ;;  %v525_v17 = vsel %vm187_vm1, %v681_v15, 0 }
  0x14   : > { %706 = vmatmul.mubr.msk.bf16.vlgmr.msra.gmra.mxu0 %vm183_vm2, %v181_v7  ;;  %712 = vmatmul.mubr.msk.bf16.vlgmr.msra.gmra.mxu1 %vm183_vm2, %v181_v7 }
  0x15   : > { %716 = vmatpush3.bf16.msra.mxu0 %v285_v8  ;;  %722 = vmatpush3.bf16.msra.mxu1 %v333_v9 }
  0x16   : > { %717 = vmatprep.mubr.msk.bf16.mxu0 %vm802_vm0, %v801_v0  ;;  %723 = vmatprep.mubr.msk.bf16.mxu1 %vm802_vm0, %v801_v0 }
  0x17   : > { %727 = vmatprep.subr.bf16.mxu0 %v801_v0  ;;  %733 = vmatprep.subr.bf16.mxu1 %v801_v0 }
  0x1c   : > { %718 = vmatmul.mubr.msk.bf16.vlgmr.msra.gmra.mxu0 %vm183_vm2, %v181_v7  ;;  %724 = vmatmul.mubr.msk.bf16.vlgmr.msra.gmra.mxu1 %vm183_vm2, %v181_v7 }
  0x1d   : > { %728 = vmatpush3.bf16.msra.mxu0 %v381_v12  ;;  %734 = vmatpush3.bf16.msra.mxu1 %v429_v13 }
  0x1e   : > { %729 = vmatprep.mubr.msk.bf16.mxu0 %vm802_vm0, %v801_v0  ;;  %735 = vmatprep.mubr.msk.bf16.mxu1 %vm802_vm0, %v801_v0 }
  0x1f   : > { %739 = vmatprep.subr.bf16.mxu0 %v801_v0  ;;  %745 = vmatprep.subr.bf16.mxu1 %v801_v0 }
  0x24   : > { %730 = vmatmul.mubr.msk.bf16.vlgmr.msra.gmra.mxu0 %vm183_vm2, %v181_v7  ;;  %736 = vmatmul.mubr.msk.bf16.vlgmr.msra.gmra.mxu1 %vm183_vm2, %v181_v7 }
  0x25   : > { %740 = vmatpush3.bf16.msra.mxu0 %v477_v16  ;;  %746 = vmatpush3.bf16.msra.mxu1 %v525_v17 }
  0x26   : > { %741 = vmatprep.mubr.msk.bf16.mxu0 %vm802_vm0, %v801_v0  ;;  %747 = vmatprep.mubr.msk.bf16.mxu1 %vm802_vm0, %v801_v0 }
  0x2c   : > { %742 = vmatmul.mubr.msk.bf16.vlgmr.msra.gmra.mxu0 %vm183_vm2, %v181_v7  ;;  %748 = vmatmul.mubr.msk.bf16.vlgmr.msra.gmra.mxu1 %vm183_vm2, %v181_v7 }
  0xd4   : > { %v225_v18 = vpop.f32.mrf.mxu0  ;;  %v273_v19 = vpop.f32.mrf.mxu1 }
  0xd5   : > { %v231_v20 = vpack.c.bf16 %v225_v18, %v225_v18  ;;  %v279_v21 = vpack.c.bf16 %v273_v19, %v273_v19 }
  0xd6   : > { %v707_v22 = vpop.f32.mrf.mxu0  ;;  %v713_v23 = vpop.f32.mrf.mxu1 }
  0xd7   : > { %233 = vst.msk [vmem:[%s883_s22] sm:$0xf] %vm232_vm3, %v231_v20  ;;  %665 = vst.msk [vmem:[%s883_s22 + $0x4] sm:$0xf] %vm232_vm3, %v279_v21 }
  0xd8   : > { %v228_v24 = vpop.f32.mrf.mxu0  ;;  %v276_v25 = vpop.f32.mrf.mxu1 }
  0xda   : > { %v708_v26 = vpop.f32.mrf.mxu0  ;;  %v714_v27 = vpop.f32.mrf.mxu1 }
  0xdc   : > { %v321_v28 = vpop.f32.mrf.mxu0  ;;  %v369_v29 = vpop.f32.mrf.mxu1 }
  0xdd   : > { %v327_v30 = vpack.c.bf16 %v321_v28, %v321_v28  ;;  %v375_v31 = vpack.c.bf16 %v369_v29, %v369_v29 }
  0xde   : > { %v719_v32 = vpop.f32.mrf.mxu0  ;;  %v725_v33 = vpop.f32.mrf.mxu1 }
  0xdf   : > { %668 = vst.msk [vmem:[%s883_s22 + $0x8] sm:$0xf] %vm232_vm3, %v327_v30  ;;  %671 = vst.msk [vmem:[%s883_s22 + $0xc] sm:$0xf] %vm232_vm3, %v375_v31 }
  0xe0   : > { %v324_v34 = vpop.f32.mrf.mxu0  ;;  %v372_v35 = vpop.f32.mrf.mxu1 }
  0xe2   : > { %v720_v36 = vpop.f32.mrf.mxu0  ;;  %v726_v37 = vpop.f32.mrf.mxu1 }
  0xe4   : > { %v417_v38 = vpop.f32.mrf.mxu0  ;;  %v465_v39 = vpop.f32.mrf.mxu1 }
  0xe5   : > { %v423_v40 = vpack.c.bf16 %v417_v38, %v417_v38  ;;  %v471_v41 = vpack.c.bf16 %v465_v39, %v465_v39 }
  0xe6   : > { %v731_v42 = vpop.f32.mrf.mxu0  ;;  %v737_v43 = vpop.f32.mrf.mxu1 }
  0xe7   : > { %674 = vst.msk [vmem:[%s883_s22 + $0x10] sm:$0xf] %vm232_vm3, %v423_v40  ;;  %677 = vst.msk [vmem:[%s883_s22 + $0x14] sm:$0xf] %vm232_vm3, %v471_v41 }
  0xe8   : > { %v420_v44 = vpop.f32.mrf.mxu0  ;;  %v468_v45 = vpop.f32.mrf.mxu1 }
  0xea   : > { %v732_v46 = vpop.f32.mrf.mxu0  ;;  %v738_v47 = vpop.f32.mrf.mxu1 }
  0xec   : > { %v513_v48 = vpop.f32.mrf.mxu0  ;;  %v561_v49 = vpop.f32.mrf.mxu1 }
  0xed   : > { %v519_v50 = vpack.c.bf16 %v513_v48, %v513_v48  ;;  %v567_v51 = vpack.c.bf16 %v561_v49, %v561_v49 }
  0xee   : > { %v743_v52 = vpop.f32.mrf.mxu0  ;;  %v749_v53 = vpop.f32.mrf.mxu1 }
  0xef   : > { %680 = vst.msk [vmem:[%s883_s22 + $0x18] sm:$0xf] %vm232_vm3, %v519_v50  ;;  %683 = vst.msk [vmem:[%s883_s22 + $0x1c] sm:$0xf] %vm232_vm3, %v567_v51 }
  0xf0   : > { %v516_v54 = vpop.f32.mrf.mxu0  ;;  %v564_v55 = vpop.f32.mrf.mxu1 }
  0xf2   : > { %v744_v56 = vpop.f32.mrf.mxu0  ;;  %v750_v57 = vpop.f32.mrf.mxu1 }
  0xf3 PF: > { %s12_s11 = sadd.s32 1, %s799_s11   ;;  %s913_s9 = smov %s795_s10 }
  0xf4   : > { %p9_p5 = scmp.ge.s32.totalorder %s12_s11, 4   ;;  %s914_s10 = smov %s916_s12 }
  0xf6   :  { %11 = sbr.rel (!%p9_p5) target bundleno = 2 (0x2), region = 72 }

// kernel: deeplab_forward.27
= control target key start
LH: loop header
LB: loop body
LE: loop exit
PB: predicated region body
PF: predicated region fallthrough
CT: control target
= control target key end

     0   :  { %v1025_v0 = vmov 0   ;;  %vm418_vm0 = vcmask 392192   ;;  %vm763_vm1 = vcmask 257024   ;;  %s1353_s1 = inlined_call_operand.vmem [shape: bf16[432,32], index: 1, kind: input, shape index: {}]   ;;  %s1354_s0 = inlined_call_operand.vmem [shape: bf16[128,432], index: 0, kind: input, shape index: {}]   ;;  %s1355_s2 = inlined_call_operand.vmem [shape: f32[1,32], index: 2, kind: input, shape index: {}]   ;;  %s1356_s3 = inlined_call_operand.vmem [shape: f32[1,32], index: 3, kind: input, shape index: {}]   ;;  %s1357_s4 = inlined_call_operand.vmem [shape: bf16[128,32], index: 4, kind: output, shape index: {}]  }
   0x1   :  { %540 = vmatprep.subr.bf16.mxu1 %v1025_v0  ;;  %v950_v1 = vld [vmem:[%s1353_s1 + $0xb8] sm:$0xff]   ;;  %v953_v4 = vld [vmem:[%s1353_s1 + $0xb0] sm:$0xff]   ;;  %v956_v7 = vld [vmem:[%s1353_s1 + $0xa8] sm:$0xff]  }
   0x2   :  { %v951_v2 = vld [vmem:[%s1353_s1 + $0x78] sm:$0xff]   ;;  %541 = vmatpush1.bf16.msra.mxu1 %v950_v1  ;;  %v954_v5 = vld [vmem:[%s1353_s1 + $0x70] sm:$0xff]   ;;  %v957_v8 = vld [vmem:[%s1353_s1 + $0x68] sm:$0xff]  }
   0x3   :  { %v952_v3 = vld [vmem:[%s1353_s1 + $0x38] sm:$0xff]   ;;  %885 = vmatprep.subr.bf16.mxu0 %v951_v2  ;;  %542 = vmatprep.subr.bf16.mxu1 %v1025_v0  ;;  %v955_v6 = vld [vmem:[%s1353_s1 + $0x30] sm:$0xff]   ;;  %v958_v9 = vld [vmem:[%s1353_s1 + $0x28] sm:$0xff]  }
   0x4   :  { %886 = vmatpush3.bf16.msra.mxu0 %v952_v3  ;;  %v959_v10 = vld [vmem:[%s1353_s1 + $0xa0] sm:$0xff]   ;;  %v963_v13 = vld [vmem:[%s1353_s1 + $0x58] sm:$0xff]   ;;  %v966_v16 = vld [vmem:[%s1353_s1 + $0x50] sm:$0xff]  }
   0x5   :  { %887 = vmatprep.subr.bf16.mxu0 %v954_v5  ;;  %v960_v11 = vld [vmem:[%s1353_s1 + $0x60] sm:$0xff]   ;;  %v962_v14 = vld [vmem:[%s1353_s1 + $0x98] sm:$0xff]   ;;  %v965_v17 = vld [vmem:[%s1353_s1 + $0x90] sm:$0xff]  }
   0x6   :  { %543 = vmatpush1.bf16.msra.mxu1 %v953_v4  ;;  %v961_v12 = vld [vmem:[%s1353_s1 + $0x20] sm:$0xff]   ;;  %v964_v15 = vld [vmem:[%s1353_s1 + $0x18] sm:$0xff]   ;;  %v967_v18 = vld [vmem:[%s1353_s1 + $0x10] sm:$0xff]  }
   0x7   :  { %544 = vmatprep.subr.bf16.mxu1 %v1025_v0  ;;  %v969_v19 = vld [vmem:[%s1353_s1 + $0x48] sm:$0xff]   ;;  %v972_v22 = vld [vmem:[%s1353_s1 + $0x40] sm:$0xff]   ;;  %v977_v26 = vld [vmem:[%s1353_s1 + $0xd0] sm:$0xff]  }
   0x8   :  { %888 = vmatpush3.bf16.msra.mxu0 %v955_v6  ;;  %v968_v20 = vld [vmem:[%s1353_s1 + $0x88] sm:$0xff]   ;;  %v976_v23 = vld [vmem:[%s1354_s0 + $0x4] ss:$16 sps:$4 sm:$0xff]   ;;  %v974_v28 = vld [vmem:[%s1354_s0] ss:$16 sps:$4 sm:$0xff]  }
   0x9   :  { %889 = vmatprep.subr.bf16.mxu0 %v957_v8  ;;  %v970_v21 = vld [vmem:[%s1353_s1 + $0x8] sm:$0xff]   ;;  %v971_v24 = vld [vmem:[%s1353_s1 + $0x80] sm:$0xff]   ;;  %475 = vmatprep.mubr.bf16.mxu0 %v976_v23 }
   0xa   :  { %545 = vmatpush1.bf16.msra.mxu1 %v956_v7  ;;  %v973_v25 = vld [vmem:[%s1353_s1] sm:$0xff]   ;;  %v985_v27 = vld [vmem:[%s1354_s0 + $0xc] ss:$16 sps:$4 sm:$0xff]   ;;  %v983_v34 = vld [vmem:[%s1354_s0 + $0x8] ss:$16 sps:$4 sm:$0xff]  }
   0xb   :  { %546 = vmatprep.subr.bf16.mxu1 %v1025_v0  ;;  %v979_v29 = vld [vmem:[%s1354_s0 + $0x24] ss:$16 sps:$4 sm:$0xff]   ;;  %843 = vmatprep.mubr.msk.bf16.mxu1 %vm418_vm0, %v985_v27  ;;  %v978_v30 = vld [vmem:[%s1353_s1 + $0xc8] sm:$0xff]   ;;  %v982_v32 = vld [vmem:[%s1354_s0 + $0x20] ss:$16 sps:$4 sm:$0xff]  }
   0xc   :  { %890 = vmatpush3.bf16.msra.mxu0 %v958_v9  ;;  %v981_v31 = vld [vmem:[%s1353_s1 + $0xc0] sm:$0xff]   ;;  %v989_v35 = vld [vmem:[%s1354_s0 + $0x2c] ss:$16 sps:$4 sm:$0xff]   ;;  %v991_v38 = vld [vmem:[%s1354_s0 + $0x28] ss:$16 sps:$4 sm:$0xff]  }
   0xd   :  { %891 = vmatprep.subr.bf16.mxu0 %v960_v11  ;;  %v986_v33 = vld [vmem:[%s1354_s0 + $0x44] ss:$16 sps:$4 sm:$0xff]   ;;  %v988_v36 = vld [vmem:[%s1354_s0 + $0x40] ss:$16 sps:$4 sm:$0xff]   ;;  %v995_v39 = vld [vmem:[%s1354_s0 + $0x4c] ss:$16 sps:$4 sm:$0xff]  }
   0xe   :  { %547 = vmatpush1.bf16.msra.mxu1 %v959_v10  ;;  %v992_v37 = vld [vmem:[%s1354_s0 + $0x64] ss:$16 sps:$4 sm:$0xff]   ;;  %v994_v40 = vld [vmem:[%s1354_s0 + $0x60] ss:$16 sps:$4 sm:$0xff]   ;;  %v997_v42 = vld [vmem:[%s1354_s0 + $0x48] ss:$16 sps:$4 sm:$0xff]  }
   0xf   :  { %548 = vmatprep.subr.bf16.mxu1 %v1025_v0  ;;  %v998_v41 = vld [vmem:[%s1354_s0 + $0x84] ss:$16 sps:$4 sm:$0xff]   ;;  %v1001_v43 = vld [vmem:[%s1354_s0 + $0x6c] ss:$16 sps:$4 sm:$0xff]   ;;  %v1000_v44 = vld [vmem:[%s1354_s0 + $0x80] ss:$16 sps:$4 sm:$0xff]  }
  0x10   :  { %892 = vmatpush3.bf16.msra.mxu0 %v961_v12  ;;  %v1004_v45 = vld [vmem:[%s1354_s0 + $0xa4] ss:$16 sps:$4 sm:$0xff]   ;;  %v1003_v46 = vld [vmem:[%s1354_s0 + $0x68] ss:$16 sps:$4 sm:$0xff]   ;;  %v1007_v47 = vld [vmem:[%s1354_s0 + $0x8c] ss:$16 sps:$4 sm:$0xff]  }
  0x11   :  { %893 = vmatprep.subr.bf16.mxu0 %v963_v13  ;;  %v1006_v48 = vld [vmem:[%s1354_s0 + $0xa0] ss:$16 sps:$4 sm:$0xff]   ;;  %v1010_v49 = vld [vmem:[%s1354_s0 + $0xc4] ss:$16 sps:$4 sm:$0xff]   ;;  %v1009_v50 = vld [vmem:[%s1354_s0 + $0x88] ss:$16 sps:$4 sm:$0xff]  }
  0x12   :  { %549 = vmatpush1.bf16.msra.mxu1 %v962_v14  ;;  %v1013_v51 = vld [vmem:[%s1354_s0 + $0xac] ss:$16 sps:$4 sm:$0xff]   ;;  %v1012_v52 = vld [vmem:[%s1354_s0 + $0xc0] ss:$16 sps:$4 sm:$0xff]   ;;  %v1016_v53 = vld [vmem:[%s1354_s0 + $0xe4] ss:$16 sps:$4 sm:$0xff]  }
  0x13   :  { %550 = vmatprep.subr.bf16.mxu1 %v1025_v0  ;;  %v1015_v54 = vld [vmem:[%s1354_s0 + $0xa8] ss:$16 sps:$4 sm:$0xff]   ;;  %v1019_v55 = vld [vmem:[%s1354_s0 + $0xcc] ss:$16 sps:$4 sm:$0xff]   ;;  %v1018_v56 = vld [vmem:[%s1354_s0 + $0xe0] ss:$16 sps:$4 sm:$0xff]  }
  0x14   :  { %894 = vmatpush3.bf16.msra.mxu0 %v964_v15  ;;  %v1021_v57 = vld [vmem:[%s1354_s0 + $0xc8] ss:$16 sps:$4 sm:$0xff]   ;;  %v1022_v58 = vld [vmem:[%s1354_s0 + $0xec] ss:$16 sps:$4 sm:$0xff]   ;;  %v1250_v4 = vld [vmem:[%s1355_s2] ss:$0 sm:$0xff] }
  0x15   :  { %895 = vmatprep.subr.bf16.mxu0 %v966_v16  ;;  %v1024_v59 = vld [vmem:[%s1354_s0 + $0xe8] ss:$16 sps:$4 sm:$0xff]   ;;  %v1255_v6 = vld [vmem:[%s1356_s3] ss:$0 sm:$0xff] }
  0x16   :  { %551 = vmatpush1.bf16.msra.mxu1 %v965_v17 }
  0x17   :  { %552 = vmatprep.subr.bf16.mxu1 %v1025_v0 }
  0x18   :  { %896 = vmatpush3.bf16.msra.mxu0 %v967_v18 }
  0x19   :  { %897 = vmatprep.subr.bf16.mxu0 %v969_v19 }
  0x1a   :  { %553 = vmatpush1.bf16.msra.mxu1 %v968_v20 }
  0x1b   :  { %554 = vmatprep.subr.bf16.mxu1 %v1025_v0 }
  0x1c   :  { %898 = vmatpush3.bf16.msra.mxu0 %v970_v21 }
  0x1d   :  { %899 = vmatprep.subr.bf16.mxu0 %v972_v22 }
  0x1e   :  { %555 = vmatpush1.bf16.msra.mxu1 %v971_v24 }
  0x1f   :  { %566 = vmatprep.subr.bf16.mxu1 %v1025_v0 }
  0x20   :  { %900 = vmatpush3.bf16.msra.mxu0 %v973_v25 }
  0x22   :  { %567 = vmatpush2.bf16.msra.mxu1 %v977_v26 }
  0x23   :  { %476 = vmatmul.mubr.bf16.vlgmr.msra.gmra.mxu0 %v974_v28  ;;  %568 = vmatprep.subr.bf16.mxu1 %v1025_v0 }
  0x24   :  { %483 = vmatprep.mubr.bf16.mxu0 %v979_v29 }
  0x26   :  { %569 = vmatpush2.bf16.msra.mxu1 %v978_v30 }
  0x27   :  { %570 = vmatprep.subr.bf16.mxu1 %v1025_v0 }
  0x2a   :  { %571 = vmatpush2.bf16.msra.mxu1 %v981_v31 }
  0x2b   :  { %484 = vmatmul.mubr.bf16.gmra.mxu0 %v982_v32 }
  0x2c   :  { %491 = vmatprep.mubr.bf16.mxu0 %v986_v33 }
  0x2d   :  { %573 = vmatmul.mubr.bf16.vlgmr.msra.gmra.mxu1 %v983_v34 }
  0x2e   :  { %844 = vmatprep.mubr.msk.bf16.mxu1 %vm418_vm0, %v989_v35 }
  0x33   :  { %492 = vmatmul.mubr.bf16.gmra.mxu0 %v988_v36 }
  0x34   :  { %499 = vmatprep.mubr.bf16.mxu0 %v992_v37 }
  0x35   :  { %581 = vmatmul.mubr.bf16.gmra.mxu1 %v991_v38 }
  0x36   :  { %845 = vmatprep.mubr.msk.bf16.mxu1 %vm418_vm0, %v995_v39 }
  0x3b   :  { %500 = vmatmul.mubr.bf16.gmra.mxu0 %v994_v40 }
  0x3c   :  { %507 = vmatprep.mubr.bf16.mxu0 %v998_v41 }
  0x3d   :  { %589 = vmatmul.mubr.bf16.gmra.mxu1 %v997_v42 }
  0x3e   :  { %846 = vmatprep.mubr.msk.bf16.mxu1 %vm418_vm0, %v1001_v43 }
  0x43   :  { %508 = vmatmul.mubr.bf16.gmra.mxu0 %v1000_v44 }
  0x44   :  { %515 = vmatprep.mubr.bf16.mxu0 %v1004_v45 }
  0x45   :  { %597 = vmatmul.mubr.bf16.gmra.mxu1 %v1003_v46 }
  0x46   :  { %847 = vmatprep.mubr.msk.bf16.mxu1 %vm418_vm0, %v1007_v47 }
  0x4b   :  { %516 = vmatmul.mubr.bf16.gmra.mxu0 %v1006_v48 }
  0x4c   :  { %523 = vmatprep.mubr.bf16.mxu0 %v1010_v49 }
  0x4d   :  { %605 = vmatmul.mubr.bf16.gmra.mxu1 %v1009_v50 }
  0x4e   :  { %848 = vmatprep.mubr.msk.bf16.mxu1 %vm418_vm0, %v1013_v51 }
  0x53   :  { %524 = vmatmul.mubr.bf16.gmra.mxu0 %v1012_v52 }
  0x54   :  { %531 = vmatprep.mubr.bf16.mxu0 %v1016_v53 }
  0x55   :  { %613 = vmatmul.mubr.bf16.gmra.mxu1 %v1015_v54 }
  0x56   :  { %849 = vmatprep.mubr.msk.bf16.mxu1 %vm418_vm0, %v1019_v55 }
  0x5b   :  { %532 = vmatmul.mubr.bf16.gmra.mxu0 %v1018_v56 }
  0x5d   :  { %621 = vmatmul.mubr.bf16.gmra.mxu1 %v1021_v57 }
  0x5e   :  { %850 = vmatprep.mubr.msk.bf16.mxu1 %vm418_vm0, %v1022_v58 }
  0x65   :  { %629 = vmatmul.mubr.bf16.gmra.mxu1 %v1024_v59 }
  0xe3   :  { %v901_v60 = vpop.f32.mrf.mxu0 }
  0xe5   :  { %v902_v61 = vpop.f32.mrf.mxu0 }
  0xe6   :  { %v903_v1 = vadd.f32 %v902_v61, %v901_v60 }
  0xe7   :  { %v904_v62 = vpop.f32.mrf.mxu0 }
  0xe9   :  { %v905_v63 = vpop.f32.mrf.mxu0 }
  0xea   :  { %v906_v9 = vadd.f32 %v905_v63, %v904_v62 }
  0xeb   :  { %v907_v0 = vpop.f32.mrf.mxu0 }
  0xed   :  { %v908_v2 = vpop.f32.mrf.mxu0  ;;  %v574_v3 = vpop.f32.mrf.mxu1 }
  0xee   :  { %v575_v5 = vadd.f32 %v903_v1, %v574_v3  ;;  %v909_v17 = vadd.f32 %v908_v2, %v907_v0 }
  0xef   :  { %v910_v7 = vpop.f32.mrf.mxu0  ;;  %v576_v8 = vpop.f32.mrf.mxu1 }
  0xf0   :  { %v644_v10 = vmul.f32 %v1250_v4, %v575_v5 }
  0xf1   :  { %v911_v11 = vpop.f32.mrf.mxu0  ;;  %v577_v12 = vpop.f32.mrf.mxu1 }
  0xf2   :  { %v667_v13 = vadd.f32 %v1255_v6, %v644_v10  ;;  %v578_v14 = vadd.f32 %v906_v9, %v577_v12  ;;  %v912_v27 = vadd.f32 %v911_v11, %v910_v7 }
  0xf3   :  { %v913_v15 = vpop.f32.mrf.mxu0  ;;  %v579_v16 = vpop.f32.mrf.mxu1 }
  0xf4   :  { %v683_v18 = vmax.f32 %v667_v13, 0.0  ;;  %v645_v19 = vmul.f32 %v1250_v4, %v578_v14 }
  0xf5   :  { %v914_v20 = vpop.f32.mrf.mxu0  ;;  %v582_v21 = vpop.f32.mrf.mxu1 }
  0xf6   :  { %v869_v22 = vpack.c.bf16 %v683_v18, %v683_v18  ;;  %v668_v23 = vadd.f32 %v1255_v6, %v645_v19  ;;  %v583_v24 = vadd.f32 %v909_v17, %v582_v21  ;;  %v915_v37 = vadd.f32 %v914_v20, %v913_v15 }
  0xf7   :  { %v916_v25 = vpop.f32.mrf.mxu0  ;;  %v584_v26 = vpop.f32.mrf.mxu1 }
  0xf8   :  { %764 = vst.msk [vmem:[%s1357_s4] sm:$0xf] %vm763_vm1, %v869_v22  ;;  %v684_v28 = vmax.f32 %v668_v23, 0.0  ;;  %v646_v29 = vmul.f32 %v1250_v4, %v583_v24 }
  0xf9   :  { %v917_v30 = vpop.f32.mrf.mxu0  ;;  %v585_v31 = vpop.f32.mrf.mxu1 }
  0xfa   :  { %v870_v32 = vpack.c.bf16 %v684_v28, %v684_v28  ;;  %v669_v33 = vadd.f32 %v1255_v6, %v646_v29  ;;  %v586_v34 = vadd.f32 %v912_v27, %v585_v31  ;;  %v918_v47 = vadd.f32 %v917_v30, %v916_v25 }
  0xfb   :  { %v919_v35 = vpop.f32.mrf.mxu0  ;;  %v587_v36 = vpop.f32.mrf.mxu1 }
  0xfc   :  { %765 = vst.msk [vmem:[%s1357_s4 + $0x4] sm:$0xf] %vm763_vm1, %v870_v32  ;;  %v685_v38 = vmax.f32 %v669_v33, 0.0  ;;  %v647_v39 = vmul.f32 %v1250_v4, %v586_v34 }
  0xfd   :  { %v920_v40 = vpop.f32.mrf.mxu0  ;;  %v590_v41 = vpop.f32.mrf.mxu1 }
  0xfe   :  { %v871_v42 = vpack.c.bf16 %v685_v38, %v685_v38  ;;  %v670_v43 = vadd.f32 %v1255_v6, %v647_v39  ;;  %v591_v44 = vadd.f32 %v915_v37, %v590_v41  ;;  %v921_v57 = vadd.f32 %v920_v40, %v919_v35 }
  0xff   :  { %v922_v45 = vpop.f32.mrf.mxu0  ;;  %v592_v46 = vpop.f32.mrf.mxu1 }
 0x100   :  { %766 = vst.msk [vmem:[%s1357_s4 + $0x8] sm:$0xf] %vm763_vm1, %v871_v42  ;;  %v686_v48 = vmax.f32 %v670_v43, 0.0  ;;  %v648_v49 = vmul.f32 %v1250_v4, %v591_v44 }
 0x101   :  { %v923_v50 = vpop.f32.mrf.mxu0  ;;  %v593_v51 = vpop.f32.mrf.mxu1 }
 0x102   :  { %v872_v52 = vpack.c.bf16 %v686_v48, %v686_v48  ;;  %v671_v53 = vadd.f32 %v1255_v6, %v648_v49  ;;  %v594_v54 = vadd.f32 %v918_v47, %v593_v51  ;;  %v924_v3 = vadd.f32 %v923_v50, %v922_v45 }
 0x103   :  { %v925_v55 = vpop.f32.mrf.mxu0  ;;  %v595_v56 = vpop.f32.mrf.mxu1 }
 0x104   :  { %767 = vst.msk [vmem:[%s1357_s4 + $0xc] sm:$0xf] %vm763_vm1, %v872_v52  ;;  %v687_v58 = vmax.f32 %v671_v53, 0.0  ;;  %v649_v59 = vmul.f32 %v1250_v4, %v594_v54 }
 0x105   :  { %v926_v60 = vpop.f32.mrf.mxu0  ;;  %v598_v61 = vpop.f32.mrf.mxu1 }
 0x106   :  { %v873_v62 = vpack.c.bf16 %v687_v58, %v687_v58  ;;  %v672_v63 = vadd.f32 %v1255_v6, %v649_v59  ;;  %v599_v0 = vadd.f32 %v921_v57, %v598_v61  ;;  %v927_v15 = vadd.f32 %v926_v60, %v925_v55 }
 0x107   :  { %v928_v1 = vpop.f32.mrf.mxu0  ;;  %v600_v2 = vpop.f32.mrf.mxu1 }
 0x108   :  { %768 = vst.msk [vmem:[%s1357_s4 + $0x10] sm:$0xf] %vm763_vm1, %v873_v62  ;;  %v688_v5 = vmax.f32 %v672_v63, 0.0  ;;  %v650_v7 = vmul.f32 %v1250_v4, %v599_v0 }
 0x109   :  { %v929_v8 = vpop.f32.mrf.mxu0  ;;  %v601_v9 = vpop.f32.mrf.mxu1 }
 0x10a   :  { %v874_v10 = vpack.c.bf16 %v688_v5, %v688_v5  ;;  %v673_v11 = vadd.f32 %v1255_v6, %v650_v7  ;;  %v602_v12 = vadd.f32 %v924_v3, %v601_v9  ;;  %v930_v25 = vadd.f32 %v929_v8, %v928_v1 }
 0x10b   :  { %v931_v13 = vpop.f32.mrf.mxu0  ;;  %v603_v14 = vpop.f32.mrf.mxu1 }
 0x10c   :  { %769 = vst.msk [vmem:[%s1357_s4 + $0x14] sm:$0xf] %vm763_vm1, %v874_v10  ;;  %v689_v16 = vmax.f32 %v673_v11, 0.0  ;;  %v651_v17 = vmul.f32 %v1250_v4, %v602_v12 }
 0x10d   :  { %v932_v18 = vpop.f32.mrf.mxu0  ;;  %v606_v19 = vpop.f32.mrf.mxu1 }
 0x10e   :  { %v875_v20 = vpack.c.bf16 %v689_v16, %v689_v16  ;;  %v674_v21 = vadd.f32 %v1255_v6, %v651_v17  ;;  %v607_v22 = vadd.f32 %v927_v15, %v606_v19  ;;  %v933_v35 = vadd.f32 %v932_v18, %v931_v13 }
 0x10f   :  { %v934_v23 = vpop.f32.mrf.mxu0  ;;  %v608_v24 = vpop.f32.mrf.mxu1 }
 0x110   :  { %770 = vst.msk [vmem:[%s1357_s4 + $0x18] sm:$0xf] %vm763_vm1, %v875_v20  ;;  %v690_v26 = vmax.f32 %v674_v21, 0.0  ;;  %v652_v27 = vmul.f32 %v1250_v4, %v607_v22 }
 0x111   :  { %v935_v28 = vpop.f32.mrf.mxu0  ;;  %v609_v29 = vpop.f32.mrf.mxu1 }
 0x112   :  { %v876_v30 = vpack.c.bf16 %v690_v26, %v690_v26  ;;  %v675_v31 = vadd.f32 %v1255_v6, %v652_v27  ;;  %v610_v32 = vadd.f32 %v930_v25, %v609_v29  ;;  %v936_v45 = vadd.f32 %v935_v28, %v934_v23 }
 0x113   :  { %v937_v33 = vpop.f32.mrf.mxu0  ;;  %v611_v34 = vpop.f32.mrf.mxu1 }
 0x114   :  { %771 = vst.msk [vmem:[%s1357_s4 + $0x1c] sm:$0xf] %vm763_vm1, %v876_v30  ;;  %v691_v36 = vmax.f32 %v675_v31, 0.0  ;;  %v653_v37 = vmul.f32 %v1250_v4, %v610_v32 }
 0x115   :  { %v938_v38 = vpop.f32.mrf.mxu0  ;;  %v614_v39 = vpop.f32.mrf.mxu1 }
 0x116   :  { %v877_v40 = vpack.c.bf16 %v691_v36, %v691_v36  ;;  %v676_v41 = vadd.f32 %v1255_v6, %v653_v37  ;;  %v615_v42 = vadd.f32 %v933_v35, %v614_v39  ;;  %v939_v55 = vadd.f32 %v938_v38, %v937_v33 }
 0x117   :  { %v940_v43 = vpop.f32.mrf.mxu0  ;;  %v616_v44 = vpop.f32.mrf.mxu1 }
 0x118   :  { %772 = vst.msk [vmem:[%s1357_s4 + $0x20] sm:$0xf] %vm763_vm1, %v877_v40  ;;  %v692_v46 = vmax.f32 %v676_v41, 0.0  ;;  %v654_v47 = vmul.f32 %v1250_v4, %v615_v42 }
 0x119   :  { %v941_v48 = vpop.f32.mrf.mxu0  ;;  %v617_v49 = vpop.f32.mrf.mxu1 }
 0x11a   :  { %v878_v50 = vpack.c.bf16 %v692_v46, %v692_v46  ;;  %v677_v51 = vadd.f32 %v1255_v6, %v654_v47  ;;  %v618_v52 = vadd.f32 %v936_v45, %v617_v49  ;;  %v942_v0 = vadd.f32 %v941_v48, %v940_v43 }
 0x11b   :  { %v943_v53 = vpop.f32.mrf.mxu0  ;;  %v619_v54 = vpop.f32.mrf.mxu1 }
 0x11c   :  { %773 = vst.msk [vmem:[%s1357_s4 + $0x24] sm:$0xf] %vm763_vm1, %v878_v50  ;;  %v693_v56 = vmax.f32 %v677_v51, 0.0  ;;  %v655_v57 = vmul.f32 %v1250_v4, %v618_v52 }
 0x11d   :  { %v944_v58 = vpop.f32.mrf.mxu0  ;;  %v622_v59 = vpop.f32.mrf.mxu1 }
 0x11e   :  { %v879_v60 = vpack.c.bf16 %v693_v56, %v693_v56  ;;  %v678_v61 = vadd.f32 %v1255_v6, %v655_v57  ;;  %v623_v62 = vadd.f32 %v939_v55, %v622_v59  ;;  %v945_v11 = vadd.f32 %v944_v58, %v943_v53 }
 0x11f   :  { %v624_v63 = vpop.f32.mrf.mxu1  ;;  %v946_v3 = vpop.f32.mrf.mxu0 }
 0x120   :  { %774 = vst.msk [vmem:[%s1357_s4 + $0x28] sm:$0xf] %vm763_vm1, %v879_v60  ;;  %v694_v1 = vmax.f32 %v678_v61, 0.0  ;;  %v656_v2 = vmul.f32 %v1250_v4, %v623_v62 }
 0x121   :  { %v625_v5 = vpop.f32.mrf.mxu1  ;;  %v947_v14 = vpop.f32.mrf.mxu0 }
 0x122   :  { %v880_v7 = vpack.c.bf16 %v694_v1, %v694_v1  ;;  %v679_v8 = vadd.f32 %v1255_v6, %v656_v2  ;;  %v626_v9 = vadd.f32 %v942_v0, %v625_v5  ;;  %v948_v20 = vadd.f32 %v947_v14, %v946_v3 }
 0x123   :  { %v627_v10 = vpop.f32.mrf.mxu1 }
 0x124   :  { %775 = vst.msk [vmem:[%s1357_s4 + $0x2c] sm:$0xf] %vm763_vm1, %v880_v7  ;;  %v695_v12 = vmax.f32 %v679_v8, 0.0  ;;  %v657_v13 = vmul.f32 %v1250_v4, %v626_v9 }
 0x125   :  { %v630_v15 = vpop.f32.mrf.mxu1 }
 0x126   :  { %v881_v16 = vpack.c.bf16 %v695_v12, %v695_v12  ;;  %v680_v17 = vadd.f32 %v1255_v6, %v657_v13  ;;  %v631_v18 = vadd.f32 %v945_v11, %v630_v15 }
 0x127   :  { %v632_v19 = vpop.f32.mrf.mxu1 }
 0x128   :  { %776 = vst.msk [vmem:[%s1357_s4 + $0x30] sm:$0xf] %vm763_vm1, %v881_v16  ;;  %v696_v21 = vmax.f32 %v680_v17, 0.0  ;;  %v658_v22 = vmul.f32 %v1250_v4, %v631_v18 }
 0x129   :  { %v633_v23 = vpop.f32.mrf.mxu1 }
 0x12a   :  { %v882_v24 = vpack.c.bf16 %v696_v21, %v696_v21  ;;  %v681_v25 = vadd.f32 %v1255_v6, %v658_v22  ;;  %v634_v26 = vadd.f32 %v948_v20, %v633_v23 }
 0x12b   :  { %v635_v27 = vpop.f32.mrf.mxu1 }
 0x12c   :  { %777 = vst.msk [vmem:[%s1357_s4 + $0x34] sm:$0xf] %vm763_vm1, %v882_v24  ;;  %v697_v28 = vmax.f32 %v681_v25, 0.0  ;;  %v659_v29 = vmul.f32 %v1250_v4, %v634_v26 }
 0x12e   :  { %v883_v30 = vpack.c.bf16 %v697_v28, %v697_v28  ;;  %v682_v31 = vadd.f32 %v1255_v6, %v659_v29 }
 0x130   :  { %778 = vst.msk [vmem:[%s1357_s4 + $0x38] sm:$0xf] %vm763_vm1, %v883_v30  ;;  %v698_v32 = vmax.f32 %v682_v31, 0.0 }
 0x132   :  { %v884_v33 = vpack.c.bf16 %v698_v32, %v698_v32 }
 0x134   :  { %779 = vst.msk [vmem:[%s1357_s4 + $0x3c] sm:$0xf] %vm763_vm1, %v884_v33 }

// kernel: deeplab_forward.28
= control target key start
LH: loop header
LB: loop body
LE: loop exit
PB: predicated region body
PF: predicated region fallthrough
CT: control target
= control target key end

     0   :  { %vm314_vm0 = vcmask 261120   ;;  %vm659_vm1 = vcmask 257024   ;;  %s1213_s1 = inlined_call_operand.vmem [shape: bf16[288,32], index: 1, kind: input, shape index: {}]   ;;  %s1214_s0 = inlined_call_operand.vmem [shape: bf16[128,288], index: 0, kind: input, shape index: {}]   ;;  %s1215_s2 = inlined_call_operand.vmem [shape: f32[1,32], index: 2, kind: input, shape index: {}]   ;;  %s1216_s3 = inlined_call_operand.vmem [shape: f32[1,32], index: 3, kind: input, shape index: {}]   ;;  %s1217_s4 = inlined_call_operand.vmem [shape: bf16[128,32], index: 4, kind: output, shape index: {}]  }
   0x1   :  { %v874_v0 = vld [vmem:[%s1213_s1 + $0x78] sm:$0xff]   ;;  %v876_v2 = vld [vmem:[%s1213_s1 + $0x70] sm:$0xff]   ;;  %v878_v4 = vld [vmem:[%s1213_s1 + $0x68] sm:$0xff]  }
   0x2   :  { %v875_v1 = vld [vmem:[%s1213_s1 + $0x38] sm:$0xff]   ;;  %764 = vmatprep.subr.bf16.mxu0 %v874_v0  ;;  %858 = vmatprep.subr.bf16.mxu1 %v874_v0  ;;  %v877_v3 = vld [vmem:[%s1213_s1 + $0x30] sm:$0xff]   ;;  %v879_v5 = vld [vmem:[%s1213_s1 + $0x28] sm:$0xff]  }
   0x3   :  { %765 = vmatpush3.bf16.msra.mxu0 %v875_v1  ;;  %866 = vmatpush3.bf16.msra.mxu1 %v875_v1  ;;  %v880_v6 = vld [vmem:[%s1213_s1 + $0x60] sm:$0xff]   ;;  %v882_v8 = vld [vmem:[%s1213_s1 + $0x58] sm:$0xff]   ;;  %v884_v10 = vld [vmem:[%s1213_s1 + $0x50] sm:$0xff]  }
   0x4   :  { %766 = vmatprep.subr.bf16.mxu0 %v876_v2  ;;  %859 = vmatprep.subr.bf16.mxu1 %v876_v2  ;;  %v881_v7 = vld [vmem:[%s1213_s1 + $0x20] sm:$0xff]   ;;  %v883_v9 = vld [vmem:[%s1213_s1 + $0x18] sm:$0xff]   ;;  %v885_v13 = vld [vmem:[%s1213_s1 + $0x10] sm:$0xff]  }
   0x5   :  { %v892_v11 = vld [vmem:[%s1214_s0 + $0x4] ss:$12 sps:$4 sm:$0xff]   ;;  %v895_v12 = vld [vmem:[%s1214_s0 + $0x94] ss:$12 sps:$4 sm:$0xff]   ;;  %v886_v14 = vld [vmem:[%s1213_s1 + $0x48] sm:$0xff]  }
   0x6   :  { %371 = vmatprep.mubr.bf16.mxu0 %v892_v11  ;;  %419 = vmatprep.mubr.bf16.mxu1 %v895_v12  ;;  %v887_v15 = vld [vmem:[%s1213_s1 + $0x8] sm:$0xff]   ;;  %v888_v16 = vld [vmem:[%s1213_s1 + $0x40] sm:$0xff]   ;;  %v893_v20 = vld [vmem:[%s1214_s0 + $0x90] ss:$12 sps:$4 sm:$0xff]  }
   0x7   :  { %767 = vmatpush3.bf16.msra.mxu0 %v877_v3  ;;  %867 = vmatpush3.bf16.msra.mxu1 %v877_v3  ;;  %v889_v17 = vld [vmem:[%s1213_s1] sm:$0xff]   ;;  %v896_v19 = vld [vmem:[%s1213_s1 + $0x88] sm:$0xff]   ;;  %v907_v28 = vld [vmem:[%s1214_s0 + $0x30] ss:$12 sps:$4 sm:$0xff]  }
   0x8   :  { %768 = vmatprep.subr.bf16.mxu0 %v878_v4  ;;  %860 = vmatprep.subr.bf16.mxu1 %v878_v4  ;;  %v890_v18 = vld [vmem:[%s1214_s0] ss:$12 sps:$4 sm:$0xff]   ;;  %v897_v21 = vld [vmem:[%s1214_s0 + $0x1c] ss:$12 sps:$4 sm:$0xff]   ;;  %v901_v24 = vld [vmem:[%s1214_s0 + $0x18] ss:$12 sps:$4 sm:$0xff]  }
   0x9   :  { %v899_v22 = vld [vmem:[%s1214_s0 + $0xac] ss:$12 sps:$4 sm:$0xff]   ;;  %v903_v23 = vld [vmem:[%s1213_s1 + $0x80] sm:$0xff]   ;;  %v902_v25 = vld [vmem:[%s1214_s0 + $0xa8] ss:$12 sps:$4 sm:$0xff]  }
   0xa   :  { %v904_v26 = vld [vmem:[%s1214_s0 + $0x34] ss:$12 sps:$4 sm:$0xff]   ;;  %v909_v30 = vld [vmem:[%s1214_s0 + $0x4c] ss:$12 sps:$4 sm:$0xff]   ;;  %v913_v33 = vld [vmem:[%s1214_s0 + $0x50] ss:$12 sps:$4 sm:$0xff]  }
   0xb   :  { %769 = vmatpush3.bf16.msra.mxu0 %v879_v5  ;;  %868 = vmatpush3.bf16.msra.mxu1 %v879_v5  ;;  %v906_v27 = vld [vmem:[%s1214_s0 + $0x8] ss:$12 sps:$4 sm:$0xff]   ;;  %v908_v29 = vld [vmem:[%s1214_s0 + $0x20] ss:$12 sps:$4 sm:$0xff]   ;;  %v911_v31 = vld [vmem:[%s1214_s0 + $0x38] ss:$12 sps:$4 sm:$0xff]  }
   0xc   :  { %770 = vmatprep.subr.bf16.mxu0 %v880_v6  ;;  %861 = vmatprep.subr.bf16.mxu1 %v880_v6  ;;  %v912_v32 = vld [vmem:[%s1214_s0 + $0x48] ss:$12 sps:$4 sm:$0xff]   ;;  %v914_v34 = vld [vmem:[%s1214_s0 + $0x64] ss:$12 sps:$4 sm:$0xff]   ;;  %v917_v36 = vld [vmem:[%s1214_s0 + $0x60] ss:$12 sps:$4 sm:$0xff]  }
   0xd   :  { %v916_v35 = vld [vmem:[%s1214_s0 + $0x68] ss:$12 sps:$4 sm:$0xff]   ;;  %v918_v37 = vld [vmem:[%s1214_s0 + $0x80] ss:$12 sps:$4 sm:$0xff]   ;;  %v921_v39 = vld [vmem:[%s1214_s0 + $0x98] ss:$12 sps:$4 sm:$0xff]  }
   0xe   :  { %v919_v38 = vld [vmem:[%s1214_s0 + $0x7c] ss:$12 sps:$4 sm:$0xff]   ;;  %v922_v40 = vld [vmem:[%s1214_s0 + $0x78] ss:$12 sps:$4 sm:$0xff]   ;;  %v1102_v61 = vld [vmem:[%s1215_s2] ss:$0 sm:$0xff] }
   0xf   :  { %771 = vmatpush3.bf16.msra.mxu0 %v881_v7  ;;  %869 = vmatpush3.bf16.msra.mxu1 %v881_v7  ;;  %v923_v41 = vld [vmem:[%s1214_s0 + $0xb0] ss:$12 sps:$4 sm:$0xff]   ;;  %v1107_v0 = vld [vmem:[%s1216_s3] ss:$0 sm:$0xff] }
  0x10   :  { %772 = vmatprep.subr.bf16.mxu0 %v882_v8  ;;  %862 = vmatprep.subr.bf16.mxu1 %v882_v8 }
  0x13   :  { %773 = vmatpush3.bf16.msra.mxu0 %v883_v9  ;;  %870 = vmatpush3.bf16.msra.mxu1 %v883_v9 }
  0x14   :  { %774 = vmatprep.subr.bf16.mxu0 %v884_v10  ;;  %863 = vmatprep.subr.bf16.mxu1 %v884_v10 }
  0x17   :  { %775 = vmatpush3.bf16.msra.mxu0 %v885_v13  ;;  %871 = vmatpush3.bf16.msra.mxu1 %v885_v13 }
  0x18   :  { %776 = vmatprep.subr.bf16.mxu0 %v886_v14  ;;  %864 = vmatprep.subr.bf16.mxu1 %v886_v14 }
  0x1b   :  { %777 = vmatpush3.bf16.msra.mxu0 %v887_v15  ;;  %872 = vmatpush3.bf16.msra.mxu1 %v887_v15 }
  0x1c   :  { %778 = vmatprep.subr.bf16.mxu0 %v888_v16  ;;  %865 = vmatprep.subr.bf16.mxu1 %v888_v16 }
  0x1f   :  { %779 = vmatpush3.bf16.msra.mxu0 %v889_v17  ;;  %873 = vmatpush3.bf16.msra.mxu1 %v889_v17 }
  0x20   :  { %838 = vmatprep.subr.bf16.mxu1 %v896_v19 }
  0x22   :  { %372 = vmatmul.mubr.bf16.vlgmr.msra.gmra.mxu0 %v890_v18  ;;  %420 = vmatmul.mubr.bf16.vlgmr.msra.gmra.mxu1 %v893_v20 }
  0x23   :  { %839 = vmatpush3.bf16.msra.mxu1 %v896_v19  ;;  %379 = vmatprep.mubr.bf16.mxu0 %v897_v21 }
  0x24   :  { %427 = vmatprep.mubr.bf16.mxu1 %v899_v22  ;;  %840 = vmatprep.subr.bf16.mxu1 %v903_v23 }
  0x27   :  { %841 = vmatpush3.bf16.msra.mxu1 %v903_v23 }
  0x2a   :  { %380 = vmatmul.mubr.bf16.gmra.mxu0 %v901_v24  ;;  %428 = vmatmul.mubr.bf16.gmra.mxu1 %v902_v25 }
  0x2b   :  { %387 = vmatprep.mubr.bf16.mxu0 %v904_v26  ;;  %842 = vmatprep.mubr.msk.bf16.mxu1 %vm314_vm0, %v906_v27 }
  0x32   :  { %388 = vmatmul.mubr.bf16.gmra.mxu0 %v907_v28  ;;  %843 = vmatmul.mubr.msk.bf16.vlgmr.msra.gmra.mxu1 %vm314_vm0, %v908_v29 }
  0x33   :  { %395 = vmatprep.mubr.bf16.mxu0 %v909_v30  ;;  %846 = vmatprep.mubr.msk.bf16.mxu1 %vm314_vm0, %v911_v31 }
  0x3a   :  { %396 = vmatmul.mubr.bf16.gmra.mxu0 %v912_v32  ;;  %847 = vmatmul.mubr.msk.bf16.gmra.mxu1 %vm314_vm0, %v913_v33 }
  0x3b   :  { %403 = vmatprep.mubr.bf16.mxu0 %v914_v34  ;;  %850 = vmatprep.mubr.msk.bf16.mxu1 %vm314_vm0, %v916_v35 }
  0x42   :  { %404 = vmatmul.mubr.bf16.gmra.mxu0 %v917_v36  ;;  %851 = vmatmul.mubr.msk.bf16.gmra.mxu1 %vm314_vm0, %v918_v37 }
  0x43   :  { %411 = vmatprep.mubr.bf16.mxu0 %v919_v38  ;;  %854 = vmatprep.mubr.msk.bf16.mxu1 %vm314_vm0, %v921_v39 }
  0x4a   :  { %412 = vmatmul.mubr.bf16.gmra.mxu0 %v922_v40  ;;  %855 = vmatmul.mubr.msk.bf16.gmra.mxu1 %vm314_vm0, %v923_v41 }
  0xe2   :  { %v780_v42 = vpop.f32.mrf.mxu0  ;;  %v1083_v43 = vpop.f32.mrf.mxu1 }
  0xe4   :  { %v781_v44 = vpop.f32.mrf.mxu0  ;;  %v1085_v45 = vpop.f32.mrf.mxu1 }
  0xe5   :  { %v782_v62 = vadd.f32 %v781_v44, %v780_v42 }
  0xe6   :  { %v783_v46 = vpop.f32.mrf.mxu0  ;;  %v1087_v47 = vpop.f32.mrf.mxu1 }
  0xe8   :  { %v784_v48 = vpop.f32.mrf.mxu0  ;;  %v1089_v49 = vpop.f32.mrf.mxu1 }
  0xe9   :  { %v785_v11 = vadd.f32 %v784_v48, %v783_v46 }
  0xea   :  { %v786_v50 = vpop.f32.mrf.mxu0  ;;  %v1091_v51 = vpop.f32.mrf.mxu1 }
  0xec   :  { %v787_v52 = vpop.f32.mrf.mxu0  ;;  %v1093_v53 = vpop.f32.mrf.mxu1 }
  0xed   :  { %v788_v58 = vadd.f32 %v787_v52, %v786_v50 }
  0xee   :  { %v789_v54 = vpop.f32.mrf.mxu0  ;;  %v1095_v55 = vpop.f32.mrf.mxu1 }
  0xf0   :  { %v790_v56 = vpop.f32.mrf.mxu0  ;;  %v1097_v57 = vpop.f32.mrf.mxu1 }
  0xf1   :  { %v791_v3 = vadd.f32 %v790_v56, %v789_v54 }
  0xf2   :  { %v792_v59 = vpop.f32.mrf.mxu0  ;;  %v844_v60 = vpop.f32.mrf.mxu1 }
  0xf3   :  { %v479_v63 = vadd.f32 %v844_v60, %v788_v58 }
  0xf4   :  { %v793_v1 = vpop.f32.mrf.mxu0  ;;  %v470_v2 = vpop.f32.mrf.mxu1 }
  0xf5   :  { %v542_v4 = vmul.f32 %v1102_v61, %v479_v63  ;;  %v471_v5 = vadd.f32 %v782_v62, %v470_v2  ;;  %v794_v21 = vadd.f32 %v793_v1, %v792_v59 }
  0xf6   :  { %v795_v6 = vpop.f32.mrf.mxu0  ;;  %v845_v7 = vpop.f32.mrf.mxu1 }
  0xf7   :  { %v565_v8 = vadd.f32 %v1107_v0, %v542_v4  ;;  %v540_v9 = vmul.f32 %v1102_v61, %v471_v5  ;;  %v482_v10 = vadd.f32 %v845_v7, %v791_v3 }
  0xf8   :  { %v796_v12 = vpop.f32.mrf.mxu0  ;;  %v473_v13 = vpop.f32.mrf.mxu1 }
  0xf9   :  { %v581_v14 = vmax.f32 %v565_v8, 0.0  ;;  %v563_v15 = vadd.f32 %v1107_v0, %v540_v9  ;;  %v543_v16 = vmul.f32 %v1102_v61, %v482_v10  ;;  %v474_v17 = vadd.f32 %v785_v11, %v473_v13 }
  0xfa   :  { %v798_v18 = vpop.f32.mrf.mxu0  ;;  %v848_v19 = vpop.f32.mrf.mxu1  ;;  %v797_v35 = vadd.f32 %v796_v12, %v795_v6  ;;  %v824_v13 = vadd.f32 %v1093_v53, %v1091_v51 }
  0xfb   :  { %v750_v20 = vpack.c.bf16 %v581_v14, %v581_v14  ;;  %v579_v22 = vmax.f32 %v563_v15, 0.0  ;;  %v566_v23 = vadd.f32 %v1107_v0, %v543_v16  ;;  %v541_v24 = vmul.f32 %v1102_v61, %v474_v17 }
  0xfc   :  { %v799_v25 = vpop.f32.mrf.mxu0  ;;  %v486_v26 = vpop.f32.mrf.mxu1 }
  0xfd   :  { %662 = vst.msk [vmem:[%s1217_s4 + $0x8] sm:$0xf] %vm659_vm1, %v750_v20  ;;  %v748_v27 = vpack.c.bf16 %v579_v22, %v579_v22  ;;  %v582_v28 = vmax.f32 %v566_v23, 0.0  ;;  %v800_v29 = vadd.f32 %v799_v25, %v798_v18  ;;  %v487_v30 = vadd.f32 %v794_v21, %v486_v26 }
  0xfe   :  { %v564_v31 = vadd.f32 %v1107_v0, %v541_v24  ;;  %v801_v32 = vpop.f32.mrf.mxu0  ;;  %v849_v33 = vpop.f32.mrf.mxu1  ;;  %v818_v20 = vadd.f32 %v1085_v45, %v1083_v43 }
  0xff   :  { %660 = vst.msk [vmem:[%s1217_s4] sm:$0xf] %vm659_vm1, %v748_v27  ;;  %v751_v34 = vpack.c.bf16 %v582_v28, %v582_v28  ;;  %v495_v36 = vadd.f32 %v848_v19, %v800_v29  ;;  %v544_v37 = vmul.f32 %v1102_v61, %v487_v30  ;;  %v827_v27 = vadd.f32 %v1097_v57, %v1095_v55 }
 0x100   :  { %v580_v38 = vmax.f32 %v564_v31, 0.0  ;;  %v802_v39 = vpop.f32.mrf.mxu0  ;;  %v489_v40 = vpop.f32.mrf.mxu1 }
 0x101   :  { %663 = vst.msk [vmem:[%s1217_s4 + $0xc] sm:$0xf] %vm659_vm1, %v751_v34  ;;  %v546_v41 = vmul.f32 %v1102_v61, %v495_v36  ;;  %v567_v42 = vadd.f32 %v1107_v0, %v544_v37  ;;  %v803_v44 = vadd.f32 %v802_v39, %v801_v32  ;;  %v490_v46 = vadd.f32 %v797_v35, %v489_v40 }
 0x102   :  { %v749_v48 = vpack.c.bf16 %v580_v38, %v580_v38  ;;  %v804_v50 = vpop.f32.mrf.mxu0  ;;  %v852_v52 = vpop.f32.mrf.mxu1  ;;  %v821_v35 = vadd.f32 %v1089_v49, %v1087_v47 }
 0x103   :  { %v569_v54 = vadd.f32 %v1107_v0, %v546_v41  ;;  %v583_v56 = vmax.f32 %v567_v42, 0.0  ;;  %v498_v58 = vadd.f32 %v849_v33, %v803_v44  ;;  %v545_v59 = vmul.f32 %v1102_v61, %v490_v46 }
 0x104   :  { %661 = vst.msk [vmem:[%s1217_s4 + $0x4] sm:$0xf] %vm659_vm1, %v749_v48  ;;  %v805_v60 = vpop.f32.mrf.mxu0  ;;  %v502_v62 = vpop.f32.mrf.mxu1 }
 0x105   :  { %v585_v63 = vmax.f32 %v569_v54, 0.0  ;;  %v752_v1 = vpack.c.bf16 %v583_v56, %v583_v56  ;;  %v547_v2 = vmul.f32 %v1102_v61, %v498_v58  ;;  %v568_v3 = vadd.f32 %v1107_v0, %v545_v59 }
 0x106   :  { %v806_v4 = vadd.f32 %v805_v60, %v804_v50  ;;  %v807_v5 = vpop.f32.mrf.mxu0  ;;  %v853_v6 = vpop.f32.mrf.mxu1 }
 0x107   :  { %v754_v7 = vpack.c.bf16 %v585_v63, %v585_v63  ;;  %664 = vst.msk [vmem:[%s1217_s4 + $0x10] sm:$0xf] %vm659_vm1, %v752_v1  ;;  %v570_v8 = vadd.f32 %v1107_v0, %v547_v2  ;;  %v584_v9 = vmax.f32 %v568_v3, 0.0 }
 0x108   :  { %v503_v10 = vadd.f32 %v806_v4, %v502_v62  ;;  %v808_v11 = vpop.f32.mrf.mxu0  ;;  %v505_v12 = vpop.f32.mrf.mxu1 }
 0x109   :  { %666 = vst.msk [vmem:[%s1217_s4 + $0x18] sm:$0xf] %vm659_vm1, %v754_v7  ;;  %v586_v14 = vmax.f32 %v570_v8, 0.0  ;;  %v753_v15 = vpack.c.bf16 %v584_v9, %v584_v9  ;;  %v809_v16 = vadd.f32 %v808_v11, %v807_v5 }
 0x10a   :  { %v548_v17 = vmul.f32 %v1102_v61, %v503_v10  ;;  %v810_v18 = vpop.f32.mrf.mxu0  ;;  %v856_v19 = vpop.f32.mrf.mxu1 }
 0x10b   :  { %v755_v21 = vpack.c.bf16 %v586_v14, %v586_v14  ;;  %665 = vst.msk [vmem:[%s1217_s4 + $0x14] sm:$0xf] %vm659_vm1, %v753_v15  ;;  %v506_v51 = vadd.f32 %v809_v16, %v505_v12  ;;  %v527_v53 = vadd.f32 %v856_v19, %v824_v13 }
 0x10c   :  { %v571_v22 = vadd.f32 %v1107_v0, %v548_v17  ;;  %v811_v23 = vpop.f32.mrf.mxu0  ;;  %v518_v24 = vpop.f32.mrf.mxu1 }
 0x10d   :  { %667 = vst.msk [vmem:[%s1217_s4 + $0x1c] sm:$0xf] %vm659_vm1, %v755_v21  ;;  %v549_v25 = vmul.f32 %v1102_v61, %v506_v51  ;;  %v554_v43 = vmul.f32 %v1102_v61, %v527_v53  ;;  %v812_v45 = vadd.f32 %v811_v23, %v810_v18  ;;  %v519_v26 = vadd.f32 %v818_v20, %v518_v24 }
 0x10e   :  { %v587_v28 = vmax.f32 %v571_v22, 0.0  ;;  %v813_v29 = vpop.f32.mrf.mxu0  ;;  %v857_v30 = vpop.f32.mrf.mxu1 }
 0x10f   :  { %v572_v31 = vadd.f32 %v1107_v0, %v549_v25  ;;  %v577_v32 = vadd.f32 %v1107_v0, %v554_v43  ;;  %v511_v33 = vadd.f32 %v852_v52, %v812_v45  ;;  %v552_v34 = vmul.f32 %v1102_v61, %v519_v26 }
 0x110   :  { %v756_v36 = vpack.c.bf16 %v587_v28, %v587_v28  ;;  %v530_v37 = vadd.f32 %v857_v30, %v827_v27  ;;  %v814_v38 = vpop.f32.mrf.mxu0  ;;  %v521_v39 = vpop.f32.mrf.mxu1 }
 0x111   :  { %v588_v40 = vmax.f32 %v572_v31, 0.0  ;;  %v593_v41 = vmax.f32 %v577_v32, 0.0  ;;  %v550_v55 = vmul.f32 %v1102_v61, %v511_v33  ;;  %v575_v57 = vadd.f32 %v1107_v0, %v552_v34 }
 0x112   :  { %668 = vst.msk [vmem:[%s1217_s4 + $0x20] sm:$0xf] %vm659_vm1, %v756_v36  ;;  %v555_v42 = vmul.f32 %v1102_v61, %v530_v37  ;;  %v815_v44 = vadd.f32 %v814_v38, %v813_v29  ;;  %v522_v46 = vadd.f32 %v821_v35, %v521_v39 }
 0x113   :  { %v757_v47 = vpack.c.bf16 %v588_v40, %v588_v40  ;;  %v762_v49 = vpack.c.bf16 %v593_v41, %v593_v41  ;;  %v573_v48 = vadd.f32 %v1107_v0, %v550_v55  ;;  %v591_v50 = vmax.f32 %v575_v57, 0.0 }
 0x114   :  { %v578_v52 = vadd.f32 %v1107_v0, %v555_v42  ;;  %v514_v54 = vadd.f32 %v853_v6, %v815_v44  ;;  %v553_v56 = vmul.f32 %v1102_v61, %v522_v46 }
 0x115   :  { %669 = vst.msk [vmem:[%s1217_s4 + $0x24] sm:$0xf] %vm659_vm1, %v757_v47  ;;  %674 = vst.msk [vmem:[%s1217_s4 + $0x38] sm:$0xf] %vm659_vm1, %v762_v49  ;;  %v589_v58 = vmax.f32 %v573_v48, 0.0  ;;  %v760_v59 = vpack.c.bf16 %v591_v50, %v591_v50 }
 0x116   :  { %v594_v60 = vmax.f32 %v578_v52, 0.0  ;;  %v551_v62 = vmul.f32 %v1102_v61, %v514_v54  ;;  %v576_v63 = vadd.f32 %v1107_v0, %v553_v56 }
 0x117   :  { %v758_v1 = vpack.c.bf16 %v589_v58, %v589_v58  ;;  %672 = vst.msk [vmem:[%s1217_s4 + $0x30] sm:$0xf] %vm659_vm1, %v760_v59 }
 0x118   :  { %v763_v2 = vpack.c.bf16 %v594_v60, %v594_v60  ;;  %v574_v3 = vadd.f32 %v1107_v0, %v551_v62  ;;  %v592_v4 = vmax.f32 %v576_v63, 0.0 }
 0x119   :  { %670 = vst.msk [vmem:[%s1217_s4 + $0x28] sm:$0xf] %vm659_vm1, %v758_v1 }
 0x11a   :  { %675 = vst.msk [vmem:[%s1217_s4 + $0x3c] sm:$0xf] %vm659_vm1, %v763_v2  ;;  %v590_v61 = vmax.f32 %v574_v3, 0.0  ;;  %v761_v5 = vpack.c.bf16 %v592_v4, %v592_v4 }
 0x11c   :  { %v759_v6 = vpack.c.bf16 %v590_v61, %v590_v61  ;;  %673 = vst.msk [vmem:[%s1217_s4 + $0x34] sm:$0xf] %vm659_vm1, %v761_v5 }
 0x11e   :  { %671 = vst.msk [vmem:[%s1217_s4 + $0x2c] sm:$0xf] %vm659_vm1, %v759_v6 }

// kernel: deeplab_forward.29
= control target key start
LH: loop header
LB: loop body
LE: loop exit
PB: predicated region body
PF: predicated region fallthrough
CT: control target
= control target key end

     0   :  { %vm90_vm0 = vcmask 261120   ;;  %vm258_vm1 = vcmask 171008   ;;  %s494_s1 = inlined_call_operand.vmem [shape: bf16[32,21], index: 1, kind: input, shape index: {}]   ;;  %s495_s0 = inlined_call_operand.vmem [shape: bf16[128,32], index: 0, kind: input, shape index: {}]   ;;  %s496_s2 = inlined_call_operand.vmem [shape: f32[1,21], index: 2, kind: input, shape index: {}]   ;;  %s497_s3 = inlined_call_operand.vmem [shape: f32[1,21], index: 3, kind: input, shape index: {}]   ;;  %s498_s4 = inlined_call_operand.vmem [shape: f32[128,21], index: 4, kind: output, shape index: {}]  }
   0x1   :  { %v333_v0 = vld [vmem:[%s494_s1 + $0x8] sm:$0xff]   ;;  %v334_v1 = vld [vmem:[%s494_s1] sm:$0xff]   ;;  %v339_v6 = vld [vmem:[%s495_s0 + $0x10] sm:$0xff]  }
   0x2   :  { %309 = vmatprep.subr.bf16.mxu0 %v333_v0  ;;  %329 = vmatprep.subr.bf16.mxu1 %v333_v0  ;;  %v335_v2 = vld [vmem:[%s495_s0] sm:$0xff]   ;;  %v337_v4 = vld [vmem:[%s495_s0 + $0x8] sm:$0xff]   ;;  %v340_v7 = vld [vmem:[%s495_s0 + $0x30] sm:$0xff]  }
   0x3   :  { %310 = vmatpush3.bf16.msra.mxu0 %v333_v0  ;;  %331 = vmatpush3.bf16.msra.mxu1 %v333_v0  ;;  %v336_v3 = vld [vmem:[%s495_s0 + $0x20] sm:$0xff]   ;;  %v338_v5 = vld [vmem:[%s495_s0 + $0x28] sm:$0xff]   ;;  %v341_v8 = vld [vmem:[%s495_s0 + $0x18] sm:$0xff]  }
   0x4   :  { %311 = vmatprep.subr.bf16.mxu0 %v334_v1  ;;  %330 = vmatprep.subr.bf16.mxu1 %v334_v1  ;;  %v342_v9 = vld [vmem:[%s495_s0 + $0x38] sm:$0xff]   ;;  %v297_v10 = vld [vmem:[%s496_s2] ss:$0 sm:$0xff] }
   0x5   :  { %313 = vmatprep.mubr.msk.bf16.mxu0 %vm90_vm0, %v335_v2  ;;  %321 = vmatprep.mubr.msk.bf16.mxu1 %vm90_vm0, %v336_v3  ;;  %v412_v12 = vld [vmem:[%s497_s3] ss:$0 sm:$0xff] }
   0x7   :  { %312 = vmatpush3.bf16.msra.mxu0 %v334_v1  ;;  %332 = vmatpush3.bf16.msra.mxu1 %v334_v1 }
   0xa   :  { %314 = vmatmul.mubr.msk.bf16.vlgmr.msra.gmra.mxu0 %vm90_vm0, %v337_v4  ;;  %322 = vmatmul.mubr.msk.bf16.vlgmr.msra.gmra.mxu1 %vm90_vm0, %v338_v5 }
   0xb   :  { %317 = vmatprep.mubr.msk.bf16.mxu0 %vm90_vm0, %v339_v6  ;;  %325 = vmatprep.mubr.msk.bf16.mxu1 %vm90_vm0, %v340_v7 }
  0x12   :  { %318 = vmatmul.mubr.msk.bf16.gmra.mxu0 %vm90_vm0, %v341_v8  ;;  %326 = vmatmul.mubr.msk.bf16.gmra.mxu1 %vm90_vm0, %v342_v9 }
  0xca   :  { %v315_v11 = vpop.f32.mrf.mxu0  ;;  %v323_v13 = vpop.f32.mrf.mxu1 }
  0xcb   :  { %v221_v14 = vmul.f32 %v315_v11, %v297_v10  ;;  %v229_v15 = vmul.f32 %v323_v13, %v297_v10 }
  0xcc   :  { %v149_v16 = vpop.f32.mrf.mxu0  ;;  %v181_v17 = vpop.f32.mrf.mxu1 }
  0xcd   :  { %v244_v18 = vadd.f32 %v412_v12, %v221_v14  ;;  %v252_v19 = vadd.f32 %v412_v12, %v229_v15  ;;  %v219_v20 = vmul.f32 %v297_v10, %v149_v16  ;;  %v227_v21 = vmul.f32 %v297_v10, %v181_v17 }
  0xce   :  { %v316_v22 = vpop.f32.mrf.mxu0  ;;  %v324_v23 = vpop.f32.mrf.mxu1 }
  0xcf   :  { %261 = vst.msk [vmem:[%s498_s4 + $0x10] sm:$0xff] %vm258_vm1, %v244_v18  ;;  %269 = vst.msk [vmem:[%s498_s4 + $0x50] sm:$0xff] %vm258_vm1, %v252_v19  ;;  %v242_v24 = vadd.f32 %v412_v12, %v219_v20  ;;  %v250_v25 = vadd.f32 %v412_v12, %v227_v21  ;;  %v222_v26 = vmul.f32 %v316_v22, %v297_v10 }
  0xd0   :  { %v230_v27 = vmul.f32 %v324_v23, %v297_v10  ;;  %v152_v28 = vpop.f32.mrf.mxu0  ;;  %v184_v29 = vpop.f32.mrf.mxu1 }
  0xd1   :  { %259 = vst.msk [vmem:[%s498_s4] sm:$0xff] %vm258_vm1, %v242_v24  ;;  %267 = vst.msk [vmem:[%s498_s4 + $0x40] sm:$0xff] %vm258_vm1, %v250_v25  ;;  %v245_v30 = vadd.f32 %v412_v12, %v222_v26  ;;  %v220_v32 = vmul.f32 %v297_v10, %v152_v28  ;;  %v228_v33 = vmul.f32 %v297_v10, %v184_v29 }
  0xd2   :  { %v253_v31 = vadd.f32 %v412_v12, %v230_v27  ;;  %v319_v34 = vpop.f32.mrf.mxu0  ;;  %v327_v35 = vpop.f32.mrf.mxu1 }
  0xd3   :  { %262 = vst.msk [vmem:[%s498_s4 + $0x18] sm:$0xff] %vm258_vm1, %v245_v30  ;;  %v243_v36 = vadd.f32 %v412_v12, %v220_v32  ;;  %v251_v37 = vadd.f32 %v412_v12, %v228_v33  ;;  %v225_v38 = vmul.f32 %v319_v34, %v297_v10  ;;  %v233_v39 = vmul.f32 %v327_v35, %v297_v10 }
  0xd4   :  { %270 = vst.msk [vmem:[%s498_s4 + $0x58] sm:$0xff] %vm258_vm1, %v253_v31  ;;  %v165_v40 = vpop.f32.mrf.mxu0  ;;  %v197_v41 = vpop.f32.mrf.mxu1 }
  0xd5   :  { %260 = vst.msk [vmem:[%s498_s4 + $0x8] sm:$0xff] %vm258_vm1, %v243_v36  ;;  %268 = vst.msk [vmem:[%s498_s4 + $0x48] sm:$0xff] %vm258_vm1, %v251_v37  ;;  %v248_v42 = vadd.f32 %v412_v12, %v225_v38  ;;  %v256_v43 = vadd.f32 %v412_v12, %v233_v39  ;;  %v223_v44 = vmul.f32 %v297_v10, %v165_v40 }
  0xd6   :  { %v231_v45 = vmul.f32 %v297_v10, %v197_v41  ;;  %v320_v46 = vpop.f32.mrf.mxu0  ;;  %v328_v47 = vpop.f32.mrf.mxu1 }
  0xd7   :  { %265 = vst.msk [vmem:[%s498_s4 + $0x30] sm:$0xff] %vm258_vm1, %v248_v42  ;;  %273 = vst.msk [vmem:[%s498_s4 + $0x70] sm:$0xff] %vm258_vm1, %v256_v43  ;;  %v246_v48 = vadd.f32 %v412_v12, %v223_v44  ;;  %v226_v50 = vmul.f32 %v320_v46, %v297_v10  ;;  %v234_v51 = vmul.f32 %v328_v47, %v297_v10 }
  0xd8   :  { %v254_v49 = vadd.f32 %v412_v12, %v231_v45  ;;  %v168_v52 = vpop.f32.mrf.mxu0  ;;  %v200_v53 = vpop.f32.mrf.mxu1 }
  0xd9   :  { %263 = vst.msk [vmem:[%s498_s4 + $0x20] sm:$0xff] %vm258_vm1, %v246_v48  ;;  %v249_v54 = vadd.f32 %v412_v12, %v226_v50  ;;  %v257_v55 = vadd.f32 %v412_v12, %v234_v51  ;;  %v224_v56 = vmul.f32 %v297_v10, %v168_v52  ;;  %v232_v57 = vmul.f32 %v297_v10, %v200_v53 }
  0xda   :  { %271 = vst.msk [vmem:[%s498_s4 + $0x60] sm:$0xff] %vm258_vm1, %v254_v49 }
  0xdb   :  { %266 = vst.msk [vmem:[%s498_s4 + $0x38] sm:$0xff] %vm258_vm1, %v249_v54  ;;  %274 = vst.msk [vmem:[%s498_s4 + $0x78] sm:$0xff] %vm258_vm1, %v257_v55  ;;  %v247_v58 = vadd.f32 %v412_v12, %v224_v56  ;;  %v255_v59 = vadd.f32 %v412_v12, %v232_v57 }
  0xdd   :  { %264 = vst.msk [vmem:[%s498_s4 + $0x28] sm:$0xff] %vm258_vm1, %v247_v58  ;;  %272 = vst.msk [vmem:[%s498_s4 + $0x68] sm:$0xff] %vm258_vm1, %v255_v59 }

// kernel: deeplab_forward.30
= control target key start
LH: loop header
LB: loop body
LE: loop exit
PB: predicated region body
PF: predicated region fallthrough
CT: control target
= control target key end

     0   :  { %s368_s9 = smov 0   ;;  %s397_s0 = inlined_call_operand.vmem [shape: f32[32,8], index: 0, kind: input, shape index: {}]   ;;  %s398_s1 = inlined_call_operand.vmem [shape: f32[2,8,168], index: 1, kind: input, shape index: {}]   ;;  %s399_s2 = inlined_call_operand.vmem [shape: f32[2,32,168], index: 2, kind: output, shape index: {}]  }
   0x1 LB: > { %s316_s10 = sadd.s32 4294967295, %s350_s9   ;;  %p320_p0 = scmp.ge.s32.totalorder %s350_s9, 1  ;;  %s350_s9 = sphi %s368_s9, %s12_s9  }
   0x2   : > { %p112_p1 = scmp.lt.s32.totalorder %s350_s9, 3 }
   0x4   : > { %p113_p2 = pnand %p320_p0, %p112_p1 }
   0x5   : > { %p134_p3 = scmp.lt.s32.totalorder (!%p113_p2), %s316_s10, 1 }
   0x6   : > { %116 = sbr.rel (%p113_p2) target bundleno = 217 (0xd9), region = 28 }
   0xb   : > { %v352_v0 = vmov 0.0   ;;  %s401_s10 = smov (!%p134_p3, %s316_s10), 1  ;;  %v144_v1 = vld [vmem:[%s397_s0] sm:$0xff]  ;;  %vm150_vm0 = vcmask 64512   ;;  %v146_v4 = vld [vmem:[%s397_s0 + $0x10] sm:$0xff]  ;;  %v145_v5 = vld [vmem:[%s397_s0 + $0x8] sm:$0xff] }
   0xc   : > { %227 = vmatprep.mubr.f32.mxu0 %v352_v0  ;;  %239 = vmatprep.mubr.f32.mxu1 %v352_v0  ;;  %s331_s11 = sshll.u32 %s401_s10, 4  ;;  %v147_v6 = vld [vmem:[%s397_s0 + $0x18] sm:$0xff]  ;;  %s332_s23 = sshll.u32 %s401_s10, 6  ;;  %vm253_vm1 = vcmask 326656  }
   0xd   : > { %s138_s14 = scalar_lea.vmem %s398_s1, %s331_s11  ;;  %s143_s26 = scalar_lea.vmem %s399_s2, %s332_s23 }
   0xe   : > { %v149_v2 = vld [vmem:[%s138_s14 + $0x8] sm:$0xff]  ;;  %v148_v3 = vld [vmem:[%s138_s14] sm:$0xff] }
   0xf   : > { %193 = vmatprep.subr.mxu0 %v149_v2  ;;  %333 = vmatprep.subr.mxu1 %v149_v2 }
  0x10   : > { %194 = vmatpush1.msra.mxu0 %v148_v3  ;;  %334 = vmatpush1.msra.mxu1 %v148_v3 }
  0x11   : > { %325 = vmatmul.mubr.msk.f32.vlgmr.msra.gmra.mxu0 %vm150_vm0, %v144_v1  ;;  %327 = vmatmul.mubr.msk.f32.vlgmr.msra.gmra.mxu1 %vm150_vm0, %v146_v4 }
  0x12   : > { %233 = vmatprep.mubr.f32.mxu0 %v352_v0  ;;  %245 = vmatprep.mubr.f32.mxu1 %v352_v0 }
  0x15   : > { %326 = vmatmul.mubr.msk.f32.gmra.mxu0 %vm150_vm0, %v145_v5  ;;  %328 = vmatmul.mubr.msk.f32.gmra.mxu1 %vm150_vm0, %v147_v6 }
  0xd1   : > { %v229_v7 = vpop.f32.mrf.mxu0  ;;  %v241_v8 = vpop.f32.mrf.mxu1 }
  0xd2   : > { %252 = vst [vmem:[%s143_s26] sm:$0xff] %v229_v7  ;;  %257 = vst [vmem:[%s143_s26 + $0x20] sm:$0xff] %v241_v8 }
  0xd3   : > { %v231_v9 = vpop.f32.mrf.mxu0  ;;  %v243_v10 = vpop.f32.mrf.mxu1 }
  0xd4   : > { %254 = vst.msk [vmem:[%s143_s26 + $0x8] sm:$0xff] %vm253_vm1, %v231_v9  ;;  %258 = vst.msk [vmem:[%s143_s26 + $0x28] sm:$0xff] %vm253_vm1, %v243_v10 }
  0xd5   : > { %v235_v11 = vpop.f32.mrf.mxu0  ;;  %v247_v12 = vpop.f32.mrf.mxu1 }
  0xd6   : > { %255 = vst [vmem:[%s143_s26 + $0x10] sm:$0xff] %v235_v11  ;;  %259 = vst [vmem:[%s143_s26 + $0x30] sm:$0xff] %v247_v12 }
  0xd7   : > { %v237_v13 = vpop.f32.mrf.mxu0  ;;  %v249_v14 = vpop.f32.mrf.mxu1 }
  0xd8   : > { %256 = vst.msk [vmem:[%s143_s26 + $0x18] sm:$0xff] %vm253_vm1, %v237_v13  ;;  %260 = vst.msk [vmem:[%s143_s26 + $0x38] sm:$0xff] %vm253_vm1, %v249_v14 }
  0xd9 PF: > { %s12_s9 = sadd.s32 1, %s350_s9  }
  0xda   : > { %p9_p4 = scmp.ge.s32.totalorder %s12_s9, 4  }
  0xdc   :  { %11 = sbr.rel (!%p9_p4) target bundleno = 1 (0x1), region = 58 }

// kernel: deeplab_forward.31
= control target key start
LH: loop header
LB: loop body
LE: loop exit
PB: predicated region body
PF: predicated region fallthrough
CT: control target
= control target key end

     0   :  { %s1313_s9 = smov 0   ;;  %s1315_s10 = smov 0   ;;  %s1497_s0 = inlined_call_operand.vmem [shape: f32[32,8], index: 0, kind: input, shape index: {}]   ;;  %s1498_s1 = inlined_call_operand.vmem [shape: f32[2,32,8,21], index: 1, kind: input, shape index: {}]   ;;  %s1499_s2 = inlined_call_operand.vmem [shape: f32[2,32,32,21], index: 2, kind: output, shape index: {}]  }
   0x1   :  { %s1317_s11 = smov 0   ;;  %s1319_s12 = smov 0  }
   0x2   :  { %s1321_s13 = smov 0  }
   0x3 LB: > { %s21_s14 = sadd.s32 1, %s1288_s11  ;;  %s24_s15 = sadd.s32 1, %s1292_s12  ;;  %s1296_s13 = sphi %s1321_s13, %s12_s13   ;;  %s1292_s12 = sphi %s1319_s12, %s1503_s12   ;;  %s1288_s11 = sphi %s1317_s11, %s1502_s11   ;;  %s1284_s10 = sphi %s1315_s10, %s1501_s10   ;;  %s1280_s9 = sphi %s1313_s9, %s1500_s9  }
   0x4   : > { %p22_p0 = scmp.ge.s32.totalorder %s21_s14, 4  ;;  %p1037_p1 = scmp.ge.s32.totalorder %s1296_s13, 1 }
   0x5   : > { %p133_p2 = scmp.lt.s32.totalorder %s1296_s13, 9 }
   0x6   : > { %s1505_s14 = smov (%p22_p0, %s21_s14), 0  ;;  %s1507_s15 = smov (!%p22_p0, %s24_s15), %s1292_s12 }
   0x7   : > { %p134_p3 = pnand %p1037_p1, %p133_p2  ;;  %p26_p4 = scmp.ge.s32.totalorder %s1507_s15, 2 }
   0x8   : > { %s1038_s16 = sshll.u32 (!%p134_p3), %s1280_s9, 3  ;;  %p165_p5 = scmp.lt.s32.totalorder (!%p134_p3), %s1284_s10, 1 }
   0x9   : > { %s1509_s15 = smov (%p26_p4, %s1507_s15), 0  ;;  %137 = sbr.rel (%p134_p3) target bundleno = 246 (0xf6), region = 28 }
   0xa   : > { %p167_p6 = scmp.lt.s32.totalorder (!%p134_p3), %s1038_s16, 31 }
   0xe   : > { %v1346_v0 = vld [vmem:[%s1497_s0] sm:$0xff]  ;;  %vm190_vm0 = vcmask 64512   ;;  %s1511_s10 = smov (!%p165_p5, %s1284_s10), 1  ;;  %s1513_s16 = smov (!%p167_p6, %s1038_s16), 31  ;;  %v186_v3 = vld [vmem:[%s1497_s0 + $0x8] sm:$0xff]  ;;  %v187_v6 = vld [vmem:[%s1497_s0 + $0x10] sm:$0xff] }
   0xf   : > { %1156 = vmatprep.mubr.msk.f32.mxu0 %vm190_vm0, %v1346_v0  ;;  %1164 = vmatprep.mubr.msk.f32.mxu1 %vm190_vm0, %v1346_v0  ;;  %s1039_s19 = sshll.u32 %s1511_s10, 5  ;;  %s1043_s20 = sshll.u32 %s1511_s10, 7  ;;  %v188_v7 = vld [vmem:[%s1497_s0 + $0x18] sm:$0xff]  ;;  %vm288_vm1 = vcmask 171008  }
  0x10   : > { %s170_s21 = sadd.s32 %s1039_s19, %s1513_s16  ;;  %s1042_s22 = sshll.u32 %s1513_s16, 2 }
  0x11   : > { %s1040_s23 = sshll.u32 %s170_s21, 3  ;;  %s1352_s24 = sadd.s32 %s1043_s20, %s1042_s22 }
  0x12   : > { %s1357_s27 = scalar_lea.vmem %s1498_s1, %s1040_s23  ;;  %s1044_s6 = sshll.u32 %s1352_s24, 3 }
  0x13   : > { %v189_v1 = vld [vmem:[%s1357_s27] sm:$0xff]  ;;  %v1049_v2 = vld [vmem:[%s1357_s27 + $0x8] sm:$0xff]  ;;  %v1058_v4 = vld [vmem:[%s1357_s27 + $0x10] sm:$0xff]  ;;  %s1416_s9 = scalar_lea.vmem %s1499_s2, %s1044_s6 }
  0x14   : > { %1154 = vmatprep.subr.mxu0 %v189_v1  ;;  %1162 = vmatprep.subr.mxu1 %v1049_v2  ;;  %v1067_v5 = vld [vmem:[%s1357_s27 + $0x18] sm:$0xff]  ;;  %v1076_v8 = vld [vmem:[%s1357_s27 + $0x20] sm:$0xff]  ;;  %v1085_v9 = vld [vmem:[%s1357_s27 + $0x28] sm:$0xff] }
  0x15   : > { %1155 = vmatpush3.msra.mxu0 %v189_v1  ;;  %1163 = vmatpush3.msra.mxu1 %v1049_v2  ;;  %v1094_v10 = vld [vmem:[%s1357_s27 + $0x30] sm:$0xff]  ;;  %v1103_v11 = vld [vmem:[%s1357_s27 + $0x38] sm:$0xff] }
  0x16   : > { %1157 = vmatmul.mubr.msk.f32.vlgmr.msra.gmra.mxu0 %vm190_vm0, %v186_v3  ;;  %1165 = vmatmul.mubr.msk.f32.vlgmr.msra.gmra.mxu1 %vm190_vm0, %v186_v3 }
  0x17   : > { %1170 = vmatprep.subr.mxu0 %v1058_v4  ;;  %1178 = vmatprep.subr.mxu1 %v1067_v5 }
  0x18   : > { %1171 = vmatpush3.msra.mxu0 %v1058_v4  ;;  %1179 = vmatpush3.msra.mxu1 %v1067_v5 }
  0x19   : > { %1159 = vmatprep.mubr.msk.f32.mxu0 %vm190_vm0, %v187_v6  ;;  %1167 = vmatprep.mubr.msk.f32.mxu1 %vm190_vm0, %v187_v6 }
  0x1a   : > { %1160 = vmatmul.mubr.msk.f32.gmra.mxu0 %vm190_vm0, %v188_v7  ;;  %1168 = vmatmul.mubr.msk.f32.gmra.mxu1 %vm190_vm0, %v188_v7 }
  0x1b   : > { %1172 = vmatprep.mubr.msk.f32.mxu0 %vm190_vm0, %v1346_v0  ;;  %1180 = vmatprep.mubr.msk.f32.mxu1 %vm190_vm0, %v1346_v0 }
  0x1c   : > { %1186 = vmatprep.subr.mxu0 %v1076_v8  ;;  %1194 = vmatprep.subr.mxu1 %v1085_v9 }
  0x1e   : > { %1173 = vmatmul.mubr.msk.f32.vlgmr.msra.gmra.mxu0 %vm190_vm0, %v186_v3  ;;  %1181 = vmatmul.mubr.msk.f32.vlgmr.msra.gmra.mxu1 %vm190_vm0, %v186_v3 }
  0x1f   : > { %1187 = vmatpush3.msra.mxu0 %v1076_v8  ;;  %1195 = vmatpush3.msra.mxu1 %v1085_v9 }
  0x20   : > { %1175 = vmatprep.mubr.msk.f32.mxu0 %vm190_vm0, %v187_v6  ;;  %1183 = vmatprep.mubr.msk.f32.mxu1 %vm190_vm0, %v187_v6 }
  0x21   : > { %1202 = vmatprep.subr.mxu0 %v1094_v10  ;;  %1210 = vmatprep.subr.mxu1 %v1103_v11 }
  0x22   : > { %1176 = vmatmul.mubr.msk.f32.gmra.mxu0 %vm190_vm0, %v188_v7  ;;  %1184 = vmatmul.mubr.msk.f32.gmra.mxu1 %vm190_vm0, %v188_v7 }
  0x23   : > { %1188 = vmatprep.mubr.msk.f32.mxu0 %vm190_vm0, %v1346_v0  ;;  %1196 = vmatprep.mubr.msk.f32.mxu1 %vm190_vm0, %v1346_v0 }
  0x26   : > { %1189 = vmatmul.mubr.msk.f32.vlgmr.msra.gmra.mxu0 %vm190_vm0, %v186_v3  ;;  %1197 = vmatmul.mubr.msk.f32.vlgmr.msra.gmra.mxu1 %vm190_vm0, %v186_v3 }
  0x27   : > { %1203 = vmatpush3.msra.mxu0 %v1094_v10  ;;  %1211 = vmatpush3.msra.mxu1 %v1103_v11 }
  0x28   : > { %1191 = vmatprep.mubr.msk.f32.mxu0 %vm190_vm0, %v187_v6  ;;  %1199 = vmatprep.mubr.msk.f32.mxu1 %vm190_vm0, %v187_v6 }
  0x2a   : > { %1192 = vmatmul.mubr.msk.f32.gmra.mxu0 %vm190_vm0, %v188_v7  ;;  %1200 = vmatmul.mubr.msk.f32.gmra.mxu1 %vm190_vm0, %v188_v7 }
  0x2b   : > { %1204 = vmatprep.mubr.msk.f32.mxu0 %vm190_vm0, %v1346_v0  ;;  %1212 = vmatprep.mubr.msk.f32.mxu1 %vm190_vm0, %v1346_v0 }
  0x2e   : > { %1205 = vmatmul.mubr.msk.f32.vlgmr.msra.gmra.mxu0 %vm190_vm0, %v186_v3  ;;  %1213 = vmatmul.mubr.msk.f32.vlgmr.msra.gmra.mxu1 %vm190_vm0, %v186_v3 }
  0x2f   : > { %1207 = vmatprep.mubr.msk.f32.mxu0 %vm190_vm0, %v187_v6  ;;  %1215 = vmatprep.mubr.msk.f32.mxu1 %vm190_vm0, %v187_v6 }
  0x32   : > { %1208 = vmatmul.mubr.msk.f32.gmra.mxu0 %vm190_vm0, %v188_v7  ;;  %1216 = vmatmul.mubr.msk.f32.gmra.mxu1 %vm190_vm0, %v188_v7 }
  0xd6   : > { %v1158_v12 = vpop.f32.mrf.mxu0  ;;  %v1166_v13 = vpop.f32.mrf.mxu1 }
  0xd7   : > { %290 = vst.msk [vmem:[%s1416_s9 + $0x8] sm:$0xff] %vm288_vm1, %v1158_v12  ;;  %1055 = vst.msk [vmem:[%s1416_s9 + $0x28] sm:$0xff] %vm288_vm1, %v1166_v13 }
  0xd8   : > { %v269_v14 = vpop.f32.mrf.mxu0  ;;  %v361_v15 = vpop.f32.mrf.mxu1 }
  0xd9   : > { %289 = vst.msk [vmem:[%s1416_s9] sm:$0xff] %vm288_vm1, %v269_v14  ;;  %1054 = vst.msk [vmem:[%s1416_s9 + $0x20] sm:$0xff] %vm288_vm1, %v361_v15 }
  0xda   : > { %v1161_v16 = vpop.f32.mrf.mxu0  ;;  %v1169_v17 = vpop.f32.mrf.mxu1 }
  0xdb   : > { %292 = vst.msk [vmem:[%s1416_s9 + $0x18] sm:$0xff] %vm288_vm1, %v1161_v16  ;;  %1057 = vst.msk [vmem:[%s1416_s9 + $0x38] sm:$0xff] %vm288_vm1, %v1169_v17 }
  0xdc   : > { %v279_v18 = vpop.f32.mrf.mxu0  ;;  %v371_v19 = vpop.f32.mrf.mxu1 }
  0xdd   : > { %291 = vst.msk [vmem:[%s1416_s9 + $0x10] sm:$0xff] %vm288_vm1, %v279_v18  ;;  %1056 = vst.msk [vmem:[%s1416_s9 + $0x30] sm:$0xff] %vm288_vm1, %v371_v19 }
  0xde   : > { %v1174_v20 = vpop.f32.mrf.mxu0  ;;  %v1182_v21 = vpop.f32.mrf.mxu1 }
  0xdf   : > { %1064 = vst.msk [vmem:[%s1416_s9 + $0x48] sm:$0xff] %vm288_vm1, %v1174_v20  ;;  %1073 = vst.msk [vmem:[%s1416_s9 + $0x68] sm:$0xff] %vm288_vm1, %v1182_v21 }
  0xe0   : > { %v453_v22 = vpop.f32.mrf.mxu0  ;;  %v545_v23 = vpop.f32.mrf.mxu1 }
  0xe1   : > { %1063 = vst.msk [vmem:[%s1416_s9 + $0x40] sm:$0xff] %vm288_vm1, %v453_v22  ;;  %1072 = vst.msk [vmem:[%s1416_s9 + $0x60] sm:$0xff] %vm288_vm1, %v545_v23 }
  0xe2   : > { %v1177_v24 = vpop.f32.mrf.mxu0  ;;  %v1185_v25 = vpop.f32.mrf.mxu1 }
  0xe3   : > { %1066 = vst.msk [vmem:[%s1416_s9 + $0x58] sm:$0xff] %vm288_vm1, %v1177_v24  ;;  %1075 = vst.msk [vmem:[%s1416_s9 + $0x78] sm:$0xff] %vm288_vm1, %v1185_v25 }
  0xe4   : > { %v463_v26 = vpop.f32.mrf.mxu0  ;;  %v555_v27 = vpop.f32.mrf.mxu1 }
  0xe5   : > { %1065 = vst.msk [vmem:[%s1416_s9 + $0x50] sm:$0xff] %vm288_vm1, %v463_v26  ;;  %1074 = vst.msk [vmem:[%s1416_s9 + $0x70] sm:$0xff] %vm288_vm1, %v555_v27 }
  0xe6   : > { %v1190_v28 = vpop.f32.mrf.mxu0  ;;  %v1198_v29 = vpop.f32.mrf.mxu1 }
  0xe7   : > { %1082 = vst.msk [vmem:[%s1416_s9 + $0x88] sm:$0xff] %vm288_vm1, %v1190_v28  ;;  %1091 = vst.msk [vmem:[%s1416_s9 + $0xa8] sm:$0xff] %vm288_vm1, %v1198_v29 }
  0xe8   : > { %v637_v30 = vpop.f32.mrf.mxu0  ;;  %v729_v31 = vpop.f32.mrf.mxu1 }
  0xe9   : > { %1081 = vst.msk [vmem:[%s1416_s9 + $0x80] sm:$0xff] %vm288_vm1, %v637_v30  ;;  %1090 = vst.msk [vmem:[%s1416_s9 + $0xa0] sm:$0xff] %vm288_vm1, %v729_v31 }
  0xea   : > { %v1193_v32 = vpop.f32.mrf.mxu0  ;;  %v1201_v33 = vpop.f32.mrf.mxu1 }
  0xeb   : > { %1084 = vst.msk [vmem:[%s1416_s9 + $0x98] sm:$0xff] %vm288_vm1, %v1193_v32  ;;  %1093 = vst.msk [vmem:[%s1416_s9 + $0xb8] sm:$0xff] %vm288_vm1, %v1201_v33 }
  0xec   : > { %v647_v34 = vpop.f32.mrf.mxu0  ;;  %v739_v35 = vpop.f32.mrf.mxu1 }
  0xed   : > { %1083 = vst.msk [vmem:[%s1416_s9 + $0x90] sm:$0xff] %vm288_vm1, %v647_v34  ;;  %1092 = vst.msk [vmem:[%s1416_s9 + $0xb0] sm:$0xff] %vm288_vm1, %v739_v35 }
  0xee   : > { %v1206_v36 = vpop.f32.mrf.mxu0  ;;  %v1214_v37 = vpop.f32.mrf.mxu1 }
  0xef   : > { %1100 = vst.msk [vmem:[%s1416_s9 + $0xc8] sm:$0xff] %vm288_vm1, %v1206_v36  ;;  %1109 = vst.msk [vmem:[%s1416_s9 + $0xe8] sm:$0xff] %vm288_vm1, %v1214_v37 }
  0xf0   : > { %v821_v38 = vpop.f32.mrf.mxu0  ;;  %v913_v39 = vpop.f32.mrf.mxu1 }
  0xf1   : > { %1099 = vst.msk [vmem:[%s1416_s9 + $0xc0] sm:$0xff] %vm288_vm1, %v821_v38  ;;  %1108 = vst.msk [vmem:[%s1416_s9 + $0xe0] sm:$0xff] %vm288_vm1, %v913_v39 }
  0xf2   : > { %v1209_v40 = vpop.f32.mrf.mxu0  ;;  %v1217_v41 = vpop.f32.mrf.mxu1 }
  0xf3   : > { %1102 = vst.msk [vmem:[%s1416_s9 + $0xd8] sm:$0xff] %vm288_vm1, %v1209_v40  ;;  %1111 = vst.msk [vmem:[%s1416_s9 + $0xf8] sm:$0xff] %vm288_vm1, %v1217_v41 }
  0xf4   : > { %v831_v42 = vpop.f32.mrf.mxu0  ;;  %v923_v43 = vpop.f32.mrf.mxu1 }
  0xf5   : > { %1101 = vst.msk [vmem:[%s1416_s9 + $0xd0] sm:$0xff] %vm288_vm1, %v831_v42  ;;  %1110 = vst.msk [vmem:[%s1416_s9 + $0xf0] sm:$0xff] %vm288_vm1, %v923_v43 }
  0xf6 PF: > { %s12_s13 = sadd.s32 1, %s1296_s13   ;;  %s1500_s9 = smov %s1288_s11 }
  0xf7   : > { %p9_p7 = scmp.ge.s32.totalorder %s12_s13, 10   ;;  %s1501_s10 = smov %s1292_s12 }
  0xf8   : > { %s1502_s11 = smov %s1505_s14  ;;  %s1503_s12 = smov %s1509_s15 }
  0xf9   :  { %11 = sbr.rel (!%p9_p7) target bundleno = 3 (0x3), region = 72 }

</bundles_post_ra>
